<compile_context>
chip_gen: v7x
topology: tpu7x:2x2x1
jax: 0.10.0
libtpu: 0.0.40
codegen_flags: <defaults>
</compile_context>

<pallas_src>
import jax
import jax.numpy as jnp
from jax import lax
from jax.experimental import pallas as pl
from jax.experimental.pallas import tpu as pltpu

EPS = 1e-6            # LayerNorm2d eps (NAFNet convention)
SCALING = 2.0         # lora_alpha / r = (2*r)/r
VMEM_LIMIT = 32 * 1024 * 1024   # TODO(synk): per-generation limit + H-tiling for big HW


# ----------------------------------------------------------------------------
# Fused kernel: grid = (batch, num_blocks + 1).
#   k == 0 : CustomSeqEnc preamble -> resident out block
#   k >= 1 : NAFBlock (k-1) on the carried activation
# ----------------------------------------------------------------------------
def make_fused_kernel(H, W):
    HW = H * W

    def kernel(x_ref, d_ref, wp1_ref, bp1_ref, wp2_ref, wp3t_ref, bp3_ref,
               wp4_ref, evec_ref, wmat_ref, wvec_ref, out_ref):
        k = pl.program_id(1)
        C = out_ref.shape[1]

        # ---------------- step 0: encoder preamble ----------------
        @pl.when(k == 0)
        def _():
            C16 = wp3t_ref.shape[1]
            x = x_ref[0]                                 # (C, HW) f32
            d = d_ref[0]                                 # (384, HW) bf16
            ev = evec_ref[...]                           # (C, 5)
            gn, bn = ev[:, 0:1], ev[:, 1:2]
            bp2, bp4, beta_e = ev[:, 2:3], ev[:, 3:4], ev[:, 4:5]

            # LayerNorm2d over channels (per pixel).
            mu = jnp.mean(x, axis=0, keepdims=True)
            var = jnp.mean((x - mu) ** 2, axis=0, keepdims=True)
            xn = (x - mu) * lax.rsqrt(var + EPS) * gn + bn

            # Prior path: conv1 (384->128) + GELU, conv2 (128->C).
            # TODO(synk): PyTorch nn.GELU() is exact-erf; tanh approximation used here.
            t = jnp.dot(wp1_ref[...], d, preferred_element_type=jnp.float32) + bp1_ref[...]
            t = jax.nn.gelu(t, approximate=True)
            y = jnp.dot(wp2_ref[...], t.astype(jnp.bfloat16),
                        preferred_element_type=jnp.float32) + bp2

            # Bottleneck gate (C -> C//16 -> C): C//16 is tiny, rank-1 VPU FMAs.
            wp3t = wp3t_ref[...]                         # (C, C16) = Wp3^T
            wp4c = wp4_ref[...]                          # (C, C16)
            acc = jnp.zeros((C, HW), jnp.float32)
            for o in range(C16):
                s_o = (jnp.sum(wp3t[:, o:o + 1] * y, axis=0, keepdims=True)
                       + bp3_ref[o:o + 1, :])
                s_o = jnp.maximum(s_o, 0.0)
                acc = acc + wp4c[:, o:o + 1] * s_o
            mod = jax.nn.sigmoid(acc + bp4)

            out_ref[0] = x + beta_e * (xn * mod)

        # ---------------- steps 1..NB: NAFBlocks ----------------
        @pl.when(k > 0)
        def _():
            bi = jnp.maximum(k - 1, 0)
            wm = wmat_ref[bi]                            # (8C, C) bf16, resident slab
            wv = wvec_ref[bi]                            # (2C, 20) f32, resident slab

            w1 = wm[0:2 * C]                             # conv1 (gate halves merged)
            wscaT = wm[2 * C:3 * C]                      # Wsca^T
            w3 = wm[3 * C:4 * C]
            w3b = wm[4 * C:5 * C]                        # W3 * bsca (SCA bias fold)
            w4 = wm[5 * C:7 * C]                         # conv4 (gate halves merged)
            w5 = wm[7 * C:8 * C]

            def colC(j):
                return wv[0:C, j:j + 1]

            def col2C(j):
                return wv[:, j:j + 1]

            g1, be1, b1 = colC(0), colC(1), col2C(2)
            taps, bdw = wv[:, 3:12], col2C(12)
            b3, beta = colC(13), colC(14)
            g2, be2, b4 = colC(15), colC(16), col2C(17)
            b5, gamma = colC(18), colC(19)

            # Edge masks for the rolled 3x3 depthwise reads (rolls wrap around HW).
            pos = lax.broadcasted_iota(jnp.int32, (1, HW), 1)
            colx = pos % W
            m_top = (pos >= W).astype(jnp.float32)
            m_bot = (pos < (H - 1) * W).astype(jnp.float32)
            m_l = (colx > 0).astype(jnp.float32)
            m_r = (colx < (W - 1)).astype(jnp.float32)

            def dw3x3(h, tp, bias):
                # h: (2C, HW).  8 XLU lane-rolls + masks; center tap unshifted.
                acc = tp[:, 4:5] * h
                for t in range(9):
                    if t == 4:
                        continue
                    dy, dx = t // 3 - 1, t % 3 - 1
                    off = dy * W + dx
                    sh = pltpu.roll(h, (-off) % HW, axis=1)   # sh[p] = h[p + off]
                    m = None
                    if dy == -1:
                        m = m_top
                    elif dy == 1:
                        m = m_bot
                    if dx == -1:
                        m = m_l if m is None else m * m_l
                    elif dx == 1:
                        m = m_r if m is None else m * m_r
                    acc = acc + tp[:, t:t + 1] * (sh * m)
                return acc + bias

            # ---- LayerNorm2d #1, conv1 (single (2C,C) matmul), dw3x3, SimpleGate ----
            x = out_ref[0]                               # (C, HW) carried activation
            mu = jnp.mean(x, axis=0, keepdims=True)
            var = jnp.mean((x - mu) ** 2, axis=0, keepdims=True)
            xn = (x - mu) * lax.rsqrt(var + EPS) * g1 + be1
            h = jnp.dot(w1, xn.astype(jnp.bfloat16),
                        preferred_element_type=jnp.float32) + b1       # (2C, HW)
            h = dw3x3(h, taps, bdw)
            g = h[0:C] * h[C:2 * C]                      # SimpleGate (aligned split)

            # ---- SCA folded into conv3: W3_eff = W3*sca_row + W3*bsca ----
            pooled = jnp.mean(g, axis=1, keepdims=True)                 # (C, 1)
            sca_row = jnp.sum(wscaT.astype(jnp.float32) * pooled,
                              axis=0, keepdims=True)                    # (1, C)
            w3_eff = (w3.astype(jnp.float32) * sca_row
                      + w3b.astype(jnp.float32)).astype(jnp.bfloat16)
            x3 = jnp.dot(w3_eff, g.astype(jnp.bfloat16),
                         preferred_element_type=jnp.float32) + b3

            y = out_ref[0] + x3 * beta                   # reload x: shorter live range
            out_ref[0] = y

            # ---- LayerNorm2d #2, conv4 (single (2C,C) matmul), SimpleGate, conv5 ----
            mu2 = jnp.mean(y, axis=0, keepdims=True)
            var2 = jnp.mean((y - mu2) ** 2, axis=0, keepdims=True)
            yn = (y - mu2) * lax.rsqrt(var2 + EPS) * g2 + be2
            f = jnp.dot(w4, yn.astype(jnp.bfloat16),
                        preferred_element_type=jnp.float32) + b4        # (2C, HW)
            ff = (f[0:C] * f[C:2 * C]).astype(jnp.bfloat16)
            x5 = jnp.dot(w5, ff, preferred_element_type=jnp.float32) + b5
            out_ref[0] = out_ref[0] + x5 * gamma

    return kernel


# ----------------------------------------------------------------------------
# pallas_call wrapper.
# ----------------------------------------------------------------------------
def custom_seq_enc_forward(x_nchw, de_prior_nchw, packed):
    """CustomSeqEnc forward: NCHW in/out; free reshapes to the (C, H*W) layout."""
    B, C, H, W = x_nchw.shape
    HW = H * W
    P = de_prior_nchw.shape[1]
    x = x_nchw.reshape(B, C, HW)
    # TODO(synk): produce de_prior in bf16 upstream so this cast fuses into the producer.
    d = de_prior_nchw.reshape(B, P, HW).astype(jnp.bfloat16)

    enc = packed['enc']
    wmat, wvec = packed['blocks']['wmat'], packed['blocks']['wvec']
    NB, C8 = wmat.shape[0], wmat.shape[1]
    NV = wvec.shape[2]
    C16 = enc['wp3t'].shape[1]

    out = pl.pallas_call(
        make_fused_kernel(H, W),
        out_shape=jax.ShapeDtypeStruct((B, C, HW), jnp.float32),
        grid=(B, NB + 1),
        in_specs=[
            pl.BlockSpec((1, C, HW), lambda b, k: (b, 0, 0)),       # x (once per b)
            pl.BlockSpec((1, P, HW), lambda b, k: (b, 0, 0)),       # de_prior, bf16
            pl.BlockSpec((128, P), lambda b, k: (0, 0)),            # enc conv1 W
            pl.BlockSpec((128, 1), lambda b, k: (0, 0)),            # enc conv1 b
            pl.BlockSpec((C, 128), lambda b, k: (0, 0)),            # enc conv2 W
            pl.BlockSpec((C, C16), lambda b, k: (0, 0)),            # enc conv3 W^T
            pl.BlockSpec((C16, 1), lambda b, k: (0, 0)),            # enc conv3 b
            pl.BlockSpec((C, C16), lambda b, k: (0, 0)),            # enc conv4 W
            pl.BlockSpec((C, 5), lambda b, k: (0, 0)),              # enc vector slab
            pl.BlockSpec((NB, C8, C), lambda b, k: (0, 0, 0)),      # block MXU slab (resident)
            pl.BlockSpec((NB, 2 * C, NV), lambda b, k: (0, 0, 0)),  # block vec slab (resident)
        ],
        out_specs=pl.BlockSpec((1, C, HW), lambda b, k: (b, 0, 0)),  # resident carry over k
        compiler_params=pltpu.CompilerParams(
            dimension_semantics=("parallel", "arbitrary"),
            vmem_limit_bytes=VMEM_LIMIT),
    )(x, d, enc['wp1'], enc['bp1'], enc['wp2'], enc['wp3t'], enc['bp3'], enc['wp4'],
      enc['vec'], wmat, wvec)
    return out.reshape(B, C, H, W)


# ----------------------------------------------------------------------------
# Parameter construction & LoRA-mixture merging / packing (plain JAX, host-side,
# hoisted out of the forward path: depends only on probs).
# ----------------------------------------------------------------------------
def init_conv_mix(key, in_c, out_c, k, groups, num_experts, r):
    k1, k2, k3, k4 = jax.random.split(key, 4)
    fan_in = (in_c // groups) * k * k
    w = jax.random.normal(k1, (out_c, in_c // groups, k, k), jnp.float32) / jnp.sqrt(fan_in)
    b = 0.01 * jax.random.normal(k2, (out_c,), jnp.float32)
    A = 0.02 * jax.random.normal(k3, (num_experts, r * k, in_c * k), jnp.float32)
    Bm = 0.02 * jax.random.normal(k4, (num_experts, (out_c // groups) * k, r * k), jnp.float32)
    return {'w': w, 'b': b, 'A': A, 'B': Bm}


def merge_conv_mix(cm, probs):
    # TODO(synk): lora.Conv2dMix top_k routing is approximated by a probs-weighted sum of
    # merged per-expert LoRA deltas; grouped-conv merged layout mirrors loralib ConvLoRA.
    delta = jnp.einsum('e,epr,eri->pi', probs, cm['B'], cm['A'])
    return cm['w'] + SCALING * delta.reshape(cm['w'].shape), cm['b']


def init_block(key, c, num_experts, r):
    dw = 2 * c
    ks = jax.random.split(key, 8)
    return {
        'c': c,
        'conv1': init_conv_mix(ks[0], c, dw, 1, 1, num_experts, r),
        'conv2': init_conv_mix(ks[1], dw, dw, 3, dw, num_experts, r),
        'conv3': init_conv_mix(ks[2], dw // 2, c, 1, 1, num_experts, r),
        'sca':   init_conv_mix(ks[3], dw // 2, dw // 2, 1, 1, num_experts, r),
        'conv4': init_conv_mix(ks[4], c, 2 * c, 1, 1, num_experts, r),
        'conv5': init_conv_mix(ks[5], c, c, 1, 1, num_experts, r),
        'g1': jnp.ones((c,), jnp.float32), 'be1': jnp.zeros((c,), jnp.float32),
        'g2': jnp.ones((c,), jnp.float32), 'be2': jnp.zeros((c,), jnp.float32),
        # PyTorch inits beta/gamma to zeros (identity block); small nonzero values
        # exercise the residual-scaling path in this synthetic test.
        'beta': 0.1 * jax.random.normal(ks[6], (c,), jnp.float32),
        'gamma': 0.1 * jax.random.normal(ks[7], (c,), jnp.float32),
    }


def init_enc(key, chan, num_experts, r):
    c16 = max(chan // 16, 1)
    ks = jax.random.split(key, 5)
    return {
        'conv1': init_conv_mix(ks[0], 384, 128, 1, 1, num_experts, r),
        'conv2': init_conv_mix(ks[1], 128, chan, 1, 1, num_experts, r),
        'conv3': init_conv_mix(ks[2], chan, c16, 1, 1, num_experts, r),
        'conv4': init_conv_mix(ks[3], c16, chan, 1, 1, num_experts, r),
        'g': jnp.ones((chan,), jnp.float32), 'be': jnp.zeros((chan,), jnp.float32),
        'beta': 0.1 * jax.random.normal(ks[4], (chan,), jnp.float32),
    }


def init_custom_seq_enc(key, chan, num_blocks, num_experts, r):
    kb, ke = jax.random.split(key)
    return {
        'blocks': [init_block(k, chan, num_experts, r)
                   for k in jax.random.split(kb, num_blocks)],
        'enc': init_enc(ke, chan, num_experts, r),
    }


def prepare_weights(params, probs):
    """Merge the LoRA mixtures and pack per-block weights into two resident slabs."""
    wmats, wvecs = [], []
    for bp in params['blocks']:
        c = bp['c']
        w1, b1 = merge_conv_mix(bp['conv1'], probs)
        w2, b2 = merge_conv_mix(bp['conv2'], probs)
        wsca, bsca = merge_conv_mix(bp['sca'], probs)
        w3, b3 = merge_conv_mix(bp['conv3'], probs)
        w4, b4 = merge_conv_mix(bp['conv4'], probs)
        w5, b5 = merge_conv_mix(bp['conv5'], probs)
        w1 = w1.reshape(2 * c, c)
        w2 = w2.reshape(2 * c, 9)
        wsca = wsca.reshape(c, c)
        w3 = w3.reshape(c, c)
        w4 = w4.reshape(2 * c, c)
        w5 = w5.reshape(c, c)
        w3b = w3 * bsca[None, :]                     # SCA bias folded into conv3 columns
        # (8c, c) bf16 MXU slab: [W1(2c); Wsca^T(c); W3(c); W3*bsca(c); W4(2c); W5(c)]
        wmats.append(jnp.concatenate(
            [w1, wsca.T, w3, w3b, w4, w5], axis=0).astype(jnp.bfloat16))
        z = jnp.zeros((c,), jnp.float32)

        def up(v):
            return jnp.concatenate([v, z], axis=0)

        cols = ([up(bp['g1']), up(bp['be1']), b1]
                + [w2[:, t] for t in range(9)]
                + [b2, up(b3), up(bp['beta']), up(bp['g2']), up(bp['be2']),
                   b4, up(b5), up(bp['gamma'])])
        wvecs.append(jnp.stack(cols, axis=1))        # (2c, 20) f32 vector slab
    blocks = {'wmat': jnp.stack(wmats, 0), 'wvec': jnp.stack(wvecs, 0)}

    e = params['enc']
    c = e['conv2']['w'].shape[0]
    c16 = e['conv3']['w'].shape[0]
    wp1, bp1 = merge_conv_mix(e['conv1'], probs)
    wp2, bp2 = merge_conv_mix(e['conv2'], probs)
    wp3, bp3 = merge_conv_mix(e['conv3'], probs)
    wp4, bp4 = merge_conv_mix(e['conv4'], probs)
    enc = {
        'wp1': wp1.reshape(128, 384).astype(jnp.bfloat16),
        'bp1': bp1.reshape(128, 1),
        'wp2': wp2.reshape(c, 128).astype(jnp.bfloat16),
        'wp3t': wp3.reshape(c16, c).T,               # (c, c16) for VPU rank-1 path
        'bp3': bp3.reshape(c16, 1),
        'wp4': wp4.reshape(c, c16),
        'vec': jnp.stack([e['g'], e['be'], bp2, bp4, e['beta']], axis=1),
    }
    return {'blocks': blocks, 'enc': enc}


# ----------------------------------------------------------------------------
if __name__ == "__main__":
    key = jax.random.PRNGKey(0)
    B, C, H, W = 2, 32, 16, 16
    PRIOR_C = 384
    num_blocks, num_experts, r = 2, 3, 4

    kx, kd, kp, kw = jax.random.split(key, 4)
    x = jax.random.normal(kx, (B, C, H, W), jnp.float32)
    de_prior = jax.random.normal(kd, (B, PRIOR_C, H, W), jnp.float32)
    probs = jax.nn.softmax(jax.random.normal(kp, (num_experts,), jnp.float32))
    params = init_custom_seq_enc(kw, C, num_blocks, num_experts, r)

    packed = prepare_weights(params, probs)      # hoisted: depends only on probs
    fwd = jax.jit(custom_seq_enc_forward)
    out = jax.block_until_ready(fwd(x, de_prior, packed))

    assert out.shape == (B, C, H, W)
    assert bool(jnp.all(jnp.isfinite(out)))
    print("KERNEL_OK")
</pallas_src>

<mosaic_0001>
module attributes {stable_mosaic.version = 11 : i64} {
  func.func @kernel(%arg0: i32, %arg1: i32, %arg2: memref<1x32x256xf32, #tpu.memory_space<vmem>>, %arg3: memref<1x384x256xbf16, #tpu.memory_space<vmem>>, %arg4: memref<128x384xbf16, #tpu.memory_space<vmem>>, %arg5: memref<128x1xf32, #tpu.memory_space<vmem>>, %arg6: memref<32x128xbf16, #tpu.memory_space<vmem>>, %arg7: memref<32x2xf32, #tpu.memory_space<vmem>>, %arg8: memref<2x1xf32, #tpu.memory_space<vmem>>, %arg9: memref<32x2xf32, #tpu.memory_space<vmem>>, %arg10: memref<32x5xf32, #tpu.memory_space<vmem>>, %arg11: memref<2x256x32xbf16, #tpu.memory_space<vmem>>, %arg12: memref<2x64x20xf32, #tpu.memory_space<vmem>>, %arg13: memref<1x32x256xf32, #tpu.memory_space<vmem>>) attributes {dimension_semantics = [#tpu.dimension_semantics<parallel>, #tpu.dimension_semantics<arbitrary>], iteration_bounds = array<i64: 2, 3>, scalar_prefetch = 0 : i64, scratch_operands = 0 : i64, tpu.core_type = #tpu.core_type<tc>, window_params = [{transform_indices = @transform_0, window_bounds = array<i64: 1, 32, 256>}, {transform_indices = @transform_1, window_bounds = array<i64: 1, 384, 256>}, {pipeline_mode = #tpu.pipeline_mode<synchronous>, transform_indices = @transform_2, window_bounds = array<i64: 128, 384>}, {pipeline_mode = #tpu.pipeline_mode<synchronous>, transform_indices = @transform_3, window_bounds = array<i64: 128, 1>}, {pipeline_mode = #tpu.pipeline_mode<synchronous>, transform_indices = @transform_4, window_bounds = array<i64: 32, 128>}, {pipeline_mode = #tpu.pipeline_mode<synchronous>, transform_indices = @transform_5, window_bounds = array<i64: 32, 2>}, {pipeline_mode = #tpu.pipeline_mode<synchronous>, transform_indices = @transform_6, window_bounds = array<i64: 2, 1>}, {pipeline_mode = #tpu.pipeline_mode<synchronous>, transform_indices = @transform_7, window_bounds = array<i64: 32, 2>}, {pipeline_mode = #tpu.pipeline_mode<synchronous>, transform_indices = @transform_8, window_bounds = array<i64: 32, 5>}, {pipeline_mode = #tpu.pipeline_mode<synchronous>, transform_indices = @transform_9, window_bounds = array<i64: 2, 256, 32>}, {pipeline_mode = #tpu.pipeline_mode<synchronous>, transform_indices = @transform_10, window_bounds = array<i64: 2, 64, 20>}, {transform_indices = @transform_11, window_bounds = array<i64: 1, 32, 256>}]} {
    %c0_i32 = arith.constant 0 : i32
    %0 = arith.cmpi eq, %arg1, %c0_i32 : i32
    %1 = arith.extui %0 : i1 to i32
    %c0_i32_0 = arith.constant 0 : i32
    %2 = arith.cmpi ne, %1, %c0_i32_0 : i32
    scf.if %2 {
      %c0 = arith.constant 0 : index
      %c0_3 = arith.constant 0 : index
      %c0_4 = arith.constant 0 : index
      %6 = vector.load %arg2[%c0, %c0_3, %c0_4] : memref<1x32x256xf32, #tpu.memory_space<vmem>>, vector<1x32x256xf32>
      %7 = vector.shape_cast %6 : vector<1x32x256xf32> to vector<32x256xf32>
      %c0_5 = arith.constant 0 : index
      %c0_6 = arith.constant 0 : index
      %c0_7 = arith.constant 0 : index
      %8 = vector.load %arg3[%c0_5, %c0_6, %c0_7] : memref<1x384x256xbf16, #tpu.memory_space<vmem>>, vector<1x384x256xbf16>
      %9 = vector.shape_cast %8 : vector<1x384x256xbf16> to vector<384x256xbf16>
      %c0_8 = arith.constant 0 : index
      %c0_9 = arith.constant 0 : index
      %10 = vector.load %arg10[%c0_8, %c0_9] : memref<32x5xf32, #tpu.memory_space<vmem>>, vector<32x5xf32>
      %11 = vector.extract_strided_slice %10 {offsets = [0, 0], sizes = [32, 1], strides = [1, 1]} : vector<32x5xf32> to vector<32x1xf32>
      %12 = vector.extract_strided_slice %10 {offsets = [0, 1], sizes = [32, 1], strides = [1, 1]} : vector<32x5xf32> to vector<32x1xf32>
      %13 = vector.extract_strided_slice %10 {offsets = [0, 2], sizes = [32, 1], strides = [1, 1]} : vector<32x5xf32> to vector<32x1xf32>
      %14 = vector.extract_strided_slice %10 {offsets = [0, 3], sizes = [32, 1], strides = [1, 1]} : vector<32x5xf32> to vector<32x1xf32>
      %15 = vector.extract_strided_slice %10 {offsets = [0, 4], sizes = [32, 1], strides = [1, 1]} : vector<32x5xf32> to vector<32x1xf32>
      %cst = arith.constant dense<0.000000e+00> : vector<256xf32>
      %16 = vector.multi_reduction <add>, %7, %cst [0] : vector<32x256xf32> to vector<256xf32>
      %17 = vector.shape_cast %16 : vector<256xf32> to vector<1x256xf32>
      %cst_10 = arith.constant 3.200000e+01 : f32
      %18 = vector.broadcast %cst_10 : f32 to vector<1x256xf32>
      %19 = arith.divf %17, %18 : vector<1x256xf32>
      %20 = vector.broadcast %19 : vector<1x256xf32> to vector<32x256xf32>
      %21 = arith.subf %7, %20 : vector<32x256xf32>
      %22 = arith.mulf %21, %21 : vector<32x256xf32>
      %cst_11 = arith.constant dense<0.000000e+00> : vector<256xf32>
      %23 = vector.multi_reduction <add>, %22, %cst_11 [0] : vector<32x256xf32> to vector<256xf32>
      %24 = vector.shape_cast %23 : vector<256xf32> to vector<1x256xf32>
      %cst_12 = arith.constant 3.200000e+01 : f32
      %25 = vector.broadcast %cst_12 : f32 to vector<1x256xf32>
      %26 = arith.divf %24, %25 : vector<1x256xf32>
      %27 = vector.broadcast %19 : vector<1x256xf32> to vector<32x256xf32>
      %28 = arith.subf %7, %27 : vector<32x256xf32>
      %cst_13 = arith.constant 9.99999997E-7 : f32
      %29 = vector.broadcast %cst_13 : f32 to vector<1x256xf32>
      %30 = arith.addf %26, %29 : vector<1x256xf32>
      %31 = math.rsqrt %30 : vector<1x256xf32>
      %32 = vector.broadcast %31 : vector<1x256xf32> to vector<32x256xf32>
      %33 = arith.mulf %28, %32 : vector<32x256xf32>
      %34 = vector.broadcast %11 : vector<32x1xf32> to vector<32x256xf32>
      %35 = arith.mulf %33, %34 : vector<32x256xf32>
      %36 = vector.broadcast %12 : vector<32x1xf32> to vector<32x256xf32>
      %37 = arith.addf %35, %36 : vector<32x256xf32>
      %c0_14 = arith.constant 0 : index
      %c0_15 = arith.constant 0 : index
      %38 = vector.load %arg4[%c0_14, %c0_15] : memref<128x384xbf16, #tpu.memory_space<vmem>>, vector<128x384xbf16>
      %cst_16 = arith.constant dense<0.000000e+00> : vector<128x256xf32>
      %39 = tpu.matmul %38, %9, %cst_16 {dimension_numbers = #tpu.dot_dimension_numbers<[1], [0], [0], [1], [0, 0, 1, 1], [], []>} : vector<128x384xbf16>, vector<384x256xbf16>, vector<128x256xf32> -> vector<128x256xf32>
      %c0_17 = arith.constant 0 : index
      %c0_18 = arith.constant 0 : index
      %40 = vector.load %arg5[%c0_17, %c0_18] : memref<128x1xf32, #tpu.memory_space<vmem>>, vector<128x1xf32>
      %41 = vector.broadcast %40 : vector<128x1xf32> to vector<128x256xf32>
      %42 = arith.addf %39, %41 : vector<128x256xf32>
      %43 = arith.mulf %42, %42 : vector<128x256xf32>
      %44 = arith.mulf %42, %43 : vector<128x256xf32>
      %cst_19 = arith.constant 4.471500e-02 : f32
      %45 = vector.broadcast %cst_19 : f32 to vector<128x256xf32>
      %46 = arith.mulf %45, %44 : vector<128x256xf32>
      %47 = arith.addf %42, %46 : vector<128x256xf32>
      %cst_20 = arith.constant 0.797884583 : f32
      %48 = vector.broadcast %cst_20 : f32 to vector<128x256xf32>
      %49 = arith.mulf %48, %47 : vector<128x256xf32>
      %50 = math.tanh %49 : vector<128x256xf32>
      %cst_21 = arith.constant 1.000000e+00 : f32
      %51 = vector.broadcast %cst_21 : f32 to vector<128x256xf32>
      %52 = arith.addf %51, %50 : vector<128x256xf32>
      %cst_22 = arith.constant 5.000000e-01 : f32
      %53 = vector.broadcast %cst_22 : f32 to vector<128x256xf32>
      %54 = arith.mulf %53, %52 : vector<128x256xf32>
      %55 = arith.mulf %42, %54 : vector<128x256xf32>
      %c0_23 = arith.constant 0 : index
      %c0_24 = arith.constant 0 : index
      %56 = vector.load %arg6[%c0_23, %c0_24] : memref<32x128xbf16, #tpu.memory_space<vmem>>, vector<32x128xbf16>
      %57 = arith.truncf %55 : vector<128x256xf32> to vector<128x256xbf16>
      %cst_25 = arith.constant dense<0.000000e+00> : vector<32x256xf32>
      %58 = tpu.matmul %56, %57, %cst_25 {dimension_numbers = #tpu.dot_dimension_numbers<[1], [0], [0], [1], [0, 0, 1, 1], [], []>} : vector<32x128xbf16>, vector<128x256xbf16>, vector<32x256xf32> -> vector<32x256xf32>
      %59 = vector.broadcast %13 : vector<32x1xf32> to vector<32x256xf32>
      %60 = arith.addf %58, %59 : vector<32x256xf32>
      %c0_26 = arith.constant 0 : index
      %c0_27 = arith.constant 0 : index
      %61 = vector.load %arg7[%c0_26, %c0_27] : memref<32x2xf32, #tpu.memory_space<vmem>>, vector<32x2xf32>
      %c0_28 = arith.constant 0 : index
      %c0_29 = arith.constant 0 : index
      %62 = vector.load %arg9[%c0_28, %c0_29] : memref<32x2xf32, #tpu.memory_space<vmem>>, vector<32x2xf32>
      %cst_30 = arith.constant 0.000000e+00 : f32
      %63 = vector.broadcast %cst_30 : f32 to vector<32x256xf32>
      %64 = vector.extract_strided_slice %61 {offsets = [0, 0], sizes = [32, 1], strides = [1, 1]} : vector<32x2xf32> to vector<32x1xf32>
      %65 = vector.broadcast %64 : vector<32x1xf32> to vector<32x256xf32>
      %66 = arith.mulf %65, %60 : vector<32x256xf32>
      %cst_31 = arith.constant dense<0.000000e+00> : vector<256xf32>
      %67 = vector.multi_reduction <add>, %66, %cst_31 [0] : vector<32x256xf32> to vector<256xf32>
      %68 = vector.shape_cast %67 : vector<256xf32> to vector<1x256xf32>
      %c0_32 = arith.constant 0 : index
      %c0_33 = arith.constant 0 : index
      %69 = vector.load %arg8[%c0_32, %c0_33] : memref<2x1xf32, #tpu.memory_space<vmem>>, vector<1x1xf32>
      %70 = vector.broadcast %69 : vector<1x1xf32> to vector<1x256xf32>
      %71 = arith.addf %68, %70 : vector<1x256xf32>
      %cst_34 = arith.constant 0.000000e+00 : f32
      %72 = vector.broadcast %cst_34 : f32 to vector<1x256xf32>
      %73 = arith.maximumf %71, %72 : vector<1x256xf32>
      %74 = vector.extract_strided_slice %62 {offsets = [0, 0], sizes = [32, 1], strides = [1, 1]} : vector<32x2xf32> to vector<32x1xf32>
      %75 = vector.broadcast %74 : vector<32x1xf32> to vector<32x256xf32>
      %76 = vector.broadcast %73 : vector<1x256xf32> to vector<32x256xf32>
      %77 = arith.mulf %75, %76 : vector<32x256xf32>
      %78 = arith.addf %63, %77 : vector<32x256xf32>
      %79 = vector.extract_strided_slice %61 {offsets = [0, 1], sizes = [32, 1], strides = [1, 1]} : vector<32x2xf32> to vector<32x1xf32>
      %80 = vector.broadcast %79 : vector<32x1xf32> to vector<32x256xf32>
      %81 = arith.mulf %80, %60 : vector<32x256xf32>
      %cst_35 = arith.constant dense<0.000000e+00> : vector<256xf32>
      %82 = vector.multi_reduction <add>, %81, %cst_35 [0] : vector<32x256xf32> to vector<256xf32>
      %83 = vector.shape_cast %82 : vector<256xf32> to vector<1x256xf32>
      %c1 = arith.constant 1 : index
      %c0_36 = arith.constant 0 : index
      %84 = vector.load %arg8[%c1, %c0_36] : memref<2x1xf32, #tpu.memory_space<vmem>>, vector<1x1xf32>
      %85 = vector.broadcast %84 : vector<1x1xf32> to vector<1x256xf32>
      %86 = arith.addf %83, %85 : vector<1x256xf32>
      %cst_37 = arith.constant 0.000000e+00 : f32
      %87 = vector.broadcast %cst_37 : f32 to vector<1x256xf32>
      %88 = arith.maximumf %86, %87 : vector<1x256xf32>
      %89 = vector.extract_strided_slice %62 {offsets = [0, 1], sizes = [32, 1], strides = [1, 1]} : vector<32x2xf32> to vector<32x1xf32>
      %90 = vector.broadcast %89 : vector<32x1xf32> to vector<32x256xf32>
      %91 = vector.broadcast %88 : vector<1x256xf32> to vector<32x256xf32>
      %92 = arith.mulf %90, %91 : vector<32x256xf32>
      %93 = arith.addf %78, %92 : vector<32x256xf32>
      %94 = vector.broadcast %14 : vector<32x1xf32> to vector<32x256xf32>
      %95 = arith.addf %93, %94 : vector<32x256xf32>
      %96 = arith.negf %95 : vector<32x256xf32>
      %97 = math.exp %96 : vector<32x256xf32>
      %cst_38 = arith.constant 1.000000e+00 : f32
      %98 = vector.broadcast %cst_38 : f32 to vector<32x256xf32>
      %99 = arith.addf %98, %97 : vector<32x256xf32>
      %100 = arith.divf %98, %99 : vector<32x256xf32>
      %101 = arith.mulf %37, %100 : vector<32x256xf32>
      %102 = vector.broadcast %15 : vector<32x1xf32> to vector<32x256xf32>
      %103 = arith.mulf %102, %101 : vector<32x256xf32>
      %104 = arith.addf %7, %103 : vector<32x256xf32>
      %c0_39 = arith.constant 0 : index
      %c0_40 = arith.constant 0 : index
      %c0_41 = arith.constant 0 : index
      %105 = vector.load %arg13[%c0_39, %c0_40, %c0_41] : memref<1x32x256xf32, #tpu.memory_space<vmem>>, vector<1x32x256xf32>
      %106 = vector.shape_cast %105 : vector<1x32x256xf32> to vector<32x256xf32>
      %107 = vector.shape_cast %104 : vector<32x256xf32> to vector<1x32x256xf32>
      tpu.vector_store %arg13[%c0_39, %c0_40, %c0_41], %107 {strides = array<i32>} : memref<1x32x256xf32, #tpu.memory_space<vmem>>, vector<1x32x256xf32>,
    } else {
    }
    %c0_i32_1 = arith.constant 0 : i32
    %3 = arith.cmpi sgt, %arg1, %c0_i32_1 : i32
    %4 = arith.extui %3 : i1 to i32
    %c0_i32_2 = arith.constant 0 : i32
    %5 = arith.cmpi ne, %4, %c0_i32_2 : i32
    scf.if %5 {
      %c1_i32 = arith.constant 1 : i32
      %6 = arith.subi %arg1, %c1_i32 : i32
      %c0_i32_3 = arith.constant 0 : i32
      %7 = arith.maxsi %6, %c0_i32_3 : i32
      %8 = arith.index_cast %7 : i32 to index
      %c0 = arith.constant 0 : index
      %c0_4 = arith.constant 0 : index
      %9 = vector.load %arg11[%8, %c0, %c0_4] : memref<2x256x32xbf16, #tpu.memory_space<vmem>>, vector<1x256x32xbf16>
      %10 = vector.shape_cast %9 : vector<1x256x32xbf16> to vector<256x32xbf16>
      %11 = arith.index_cast %7 : i32 to index
      %c0_5 = arith.constant 0 : index
      %c0_6 = arith.constant 0 : index
      %12 = vector.load %arg12[%11, %c0_5, %c0_6] : memref<2x64x20xf32, #tpu.memory_space<vmem>>, vector<1x64x20xf32>
      %13 = vector.shape_cast %12 : vector<1x64x20xf32> to vector<64x20xf32>
      %14 = vector.extract_strided_slice %10 {offsets = [0, 0], sizes = [64, 32], strides = [1, 1]} : vector<256x32xbf16> to vector<64x32xbf16>
      %15 = vector.extract_strided_slice %10 {offsets = [64, 0], sizes = [32, 32], strides = [1, 1]} : vector<256x32xbf16> to vector<32x32xbf16>
      %16 = vector.extract_strided_slice %10 {offsets = [96, 0], sizes = [32, 32], strides = [1, 1]} : vector<256x32xbf16> to vector<32x32xbf16>
      %17 = vector.extract_strided_slice %10 {offsets = [128, 0], sizes = [32, 32], strides = [1, 1]} : vector<256x32xbf16> to vector<32x32xbf16>
      %18 = vector.extract_strided_slice %10 {offsets = [160, 0], sizes = [64, 32], strides = [1, 1]} : vector<256x32xbf16> to vector<64x32xbf16>
      %19 = vector.extract_strided_slice %10 {offsets = [224, 0], sizes = [32, 32], strides = [1, 1]} : vector<256x32xbf16> to vector<32x32xbf16>
      %20 = vector.extract_strided_slice %13 {offsets = [0, 0], sizes = [32, 1], strides = [1, 1]} : vector<64x20xf32> to vector<32x1xf32>
      %21 = vector.extract_strided_slice %13 {offsets = [0, 1], sizes = [32, 1], strides = [1, 1]} : vector<64x20xf32> to vector<32x1xf32>
      %22 = vector.extract_strided_slice %13 {offsets = [0, 2], sizes = [64, 1], strides = [1, 1]} : vector<64x20xf32> to vector<64x1xf32>
      %23 = vector.extract_strided_slice %13 {offsets = [0, 3], sizes = [64, 9], strides = [1, 1]} : vector<64x20xf32> to vector<64x9xf32>
      %24 = vector.extract_strided_slice %13 {offsets = [0, 12], sizes = [64, 1], strides = [1, 1]} : vector<64x20xf32> to vector<64x1xf32>
      %25 = vector.extract_strided_slice %13 {offsets = [0, 13], sizes = [32, 1], strides = [1, 1]} : vector<64x20xf32> to vector<32x1xf32>
      %26 = vector.extract_strided_slice %13 {offsets = [0, 14], sizes = [32, 1], strides = [1, 1]} : vector<64x20xf32> to vector<32x1xf32>
      %27 = vector.extract_strided_slice %13 {offsets = [0, 15], sizes = [32, 1], strides = [1, 1]} : vector<64x20xf32> to vector<32x1xf32>
      %28 = vector.extract_strided_slice %13 {offsets = [0, 16], sizes = [32, 1], strides = [1, 1]} : vector<64x20xf32> to vector<32x1xf32>
      %29 = vector.extract_strided_slice %13 {offsets = [0, 17], sizes = [64, 1], strides = [1, 1]} : vector<64x20xf32> to vector<64x1xf32>
      %30 = vector.extract_strided_slice %13 {offsets = [0, 18], sizes = [32, 1], strides = [1, 1]} : vector<64x20xf32> to vector<32x1xf32>
      %31 = vector.extract_strided_slice %13 {offsets = [0, 19], sizes = [32, 1], strides = [1, 1]} : vector<64x20xf32> to vector<32x1xf32>
      %32 = tpu.iota {dimensions = array<i32: 1>} : vector<1x256xi32>
      %c16_i32 = arith.constant 16 : i32
      %c0_i32_7 = arith.constant 0 : i32
      %33 = arith.cmpi eq, %c16_i32, %c0_i32_7 : i32
      %c1_i32_8 = arith.constant 1 : i32
      %34 = arith.select %33, %c1_i32_8, %c16_i32 : i32
      %35 = vector.broadcast %34 : i32 to vector<1x256xi32>
      %36 = arith.remsi %32, %35 : vector<1x256xi32>
      %c0_i32_9 = arith.constant 0 : i32
      %37 = vector.broadcast %c0_i32_9 : i32 to vector<1x256xi32>
      %38 = arith.cmpi ne, %36, %37 : vector<1x256xi32>
      %c0_i32_10 = arith.constant 0 : i32
      %39 = vector.broadcast %c0_i32_10 : i32 to vector<1x256xi32>
      %40 = arith.cmpi slt, %36, %39 : vector<1x256xi32>
      %c0_i32_11 = arith.constant 0 : i32
      %41 = arith.cmpi slt, %34, %c0_i32_11 : i32
      %42 = vector.broadcast %41 : i1 to vector<1x256xi1>
      %43 = vector.broadcast %42 : vector<1x256xi1> to vector<1x256xi1>
      %44 = arith.xori %40, %43 : vector<1x256xi1>
      %45 = arith.andi %44, %38 : vector<1x256xi1>
      %46 = vector.broadcast %34 : i32 to vector<1x256xi32>
      %47 = arith.addi %36, %46 : vector<1x256xi32>
      %48 = arith.select %45, %47, %36 : vector<1x256xi1>, vector<1x256xi32>
      %c16_i32_12 = arith.constant 16 : i32
      %49 = vector.broadcast %c16_i32_12 : i32 to vector<1x256xi32>
      %50 = arith.cmpi sge, %32, %49 : vector<1x256xi32>
      %51 = arith.extui %50 : vector<1x256xi1> to vector<1x256xi32>
      %52 = arith.sitofp %51 : vector<1x256xi32> to vector<1x256xf32>
      %c240_i32 = arith.constant 240 : i32
      %53 = vector.broadcast %c240_i32 : i32 to vector<1x256xi32>
      %54 = arith.cmpi slt, %32, %53 : vector<1x256xi32>
      %55 = arith.extui %54 : vector<1x256xi1> to vector<1x256xi32>
      %56 = arith.sitofp %55 : vector<1x256xi32> to vector<1x256xf32>
      %c0_i32_13 = arith.constant 0 : i32
      %57 = vector.broadcast %c0_i32_13 : i32 to vector<1x256xi32>
      %58 = arith.cmpi sgt, %48, %57 : vector<1x256xi32>
      %59 = arith.extui %58 : vector<1x256xi1> to vector<1x256xi32>
      %60 = arith.sitofp %59 : vector<1x256xi32> to vector<1x256xf32>
      %c15_i32 = arith.constant 15 : i32
      %61 = vector.broadcast %c15_i32 : i32 to vector<1x256xi32>
      %62 = arith.cmpi slt, %48, %61 : vector<1x256xi32>
      %63 = arith.extui %62 : vector<1x256xi1> to vector<1x256xi32>
      %64 = arith.sitofp %63 : vector<1x256xi32> to vector<1x256xf32>
      %c0_14 = arith.constant 0 : index
      %c0_15 = arith.constant 0 : index
      %c0_16 = arith.constant 0 : index
      %65 = vector.load %arg13[%c0_14, %c0_15, %c0_16] : memref<1x32x256xf32, #tpu.memory_space<vmem>>, vector<1x32x256xf32>
      %66 = vector.shape_cast %65 : vector<1x32x256xf32> to vector<32x256xf32>
      %cst = arith.constant dense<0.000000e+00> : vector<256xf32>
      %67 = vector.multi_reduction <add>, %66, %cst [0] : vector<32x256xf32> to vector<256xf32>
      %68 = vector.shape_cast %67 : vector<256xf32> to vector<1x256xf32>
      %cst_17 = arith.constant 3.200000e+01 : f32
      %69 = vector.broadcast %cst_17 : f32 to vector<1x256xf32>
      %70 = arith.divf %68, %69 : vector<1x256xf32>
      %71 = vector.broadcast %70 : vector<1x256xf32> to vector<32x256xf32>
      %72 = arith.subf %66, %71 : vector<32x256xf32>
      %73 = arith.mulf %72, %72 : vector<32x256xf32>
      %cst_18 = arith.constant dense<0.000000e+00> : vector<256xf32>
      %74 = vector.multi_reduction <add>, %73, %cst_18 [0] : vector<32x256xf32> to vector<256xf32>
      %75 = vector.shape_cast %74 : vector<256xf32> to vector<1x256xf32>
      %cst_19 = arith.constant 3.200000e+01 : f32
      %76 = vector.broadcast %cst_19 : f32 to vector<1x256xf32>
      %77 = arith.divf %75, %76 : vector<1x256xf32>
      %78 = vector.broadcast %70 : vector<1x256xf32> to vector<32x256xf32>
      %79 = arith.subf %66, %78 : vector<32x256xf32>
      %cst_20 = arith.constant 9.99999997E-7 : f32
      %80 = vector.broadcast %cst_20 : f32 to vector<1x256xf32>
      %81 = arith.addf %77, %80 : vector<1x256xf32>
      %82 = math.rsqrt %81 : vector<1x256xf32>
      %83 = vector.broadcast %82 : vector<1x256xf32> to vector<32x256xf32>
      %84 = arith.mulf %79, %83 : vector<32x256xf32>
      %85 = vector.broadcast %20 : vector<32x1xf32> to vector<32x256xf32>
      %86 = arith.mulf %84, %85 : vector<32x256xf32>
      %87 = vector.broadcast %21 : vector<32x1xf32> to vector<32x256xf32>
      %88 = arith.addf %86, %87 : vector<32x256xf32>
      %89 = arith.truncf %88 : vector<32x256xf32> to vector<32x256xbf16>
      %cst_21 = arith.constant dense<0.000000e+00> : vector<64x256xf32>
      %90 = tpu.matmul %14, %89, %cst_21 {dimension_numbers = #tpu.dot_dimension_numbers<[1], [0], [0], [1], [0, 0, 1, 1], [], []>} : vector<64x32xbf16>, vector<32x256xbf16>, vector<64x256xf32> -> vector<64x256xf32>
      %91 = vector.broadcast %22 : vector<64x1xf32> to vector<64x256xf32>
      %92 = arith.addf %90, %91 : vector<64x256xf32>
      %93 = vector.extract_strided_slice %23 {offsets = [0, 4], sizes = [64, 1], strides = [1, 1]} : vector<64x9xf32> to vector<64x1xf32>
      %94 = vector.broadcast %93 : vector<64x1xf32> to vector<64x256xf32>
      %95 = arith.mulf %94, %92 : vector<64x256xf32>
      %c17_i32 = arith.constant 17 : i32
      %96 = tpu.dynamic_rotate %92 by %c17_i32 dim 1 : vector<64x256xf32>, i32 -> vector<64x256xf32>
      %97 = arith.mulf %52, %60 : vector<1x256xf32>
      %98 = vector.extract_strided_slice %23 {offsets = [0, 0], sizes = [64, 1], strides = [1, 1]} : vector<64x9xf32> to vector<64x1xf32>
      %99 = vector.broadcast %97 : vector<1x256xf32> to vector<64x256xf32>
      %100 = arith.mulf %96, %99 : vector<64x256xf32>
      %101 = vector.broadcast %98 : vector<64x1xf32> to vector<64x256xf32>
      %102 = arith.mulf %101, %100 : vector<64x256xf32>
      %103 = arith.addf %95, %102 : vector<64x256xf32>
      %c16_i32_22 = arith.constant 16 : i32
      %104 = tpu.dynamic_rotate %92 by %c16_i32_22 dim 1 : vector<64x256xf32>, i32 -> vector<64x256xf32>
      %105 = vector.extract_strided_slice %23 {offsets = [0, 1], sizes = [64, 1], strides = [1, 1]} : vector<64x9xf32> to vector<64x1xf32>
      %106 = vector.broadcast %52 : vector<1x256xf32> to vector<64x256xf32>
      %107 = arith.mulf %104, %106 : vector<64x256xf32>
      %108 = vector.broadcast %105 : vector<64x1xf32> to vector<64x256xf32>
      %109 = arith.mulf %108, %107 : vector<64x256xf32>
      %110 = arith.addf %103, %109 : vector<64x256xf32>
      %c15_i32_23 = arith.constant 15 : i32
      %111 = tpu.dynamic_rotate %92 by %c15_i32_23 dim 1 : vector<64x256xf32>, i32 -> vector<64x256xf32>
      %112 = arith.mulf %52, %64 : vector<1x256xf32>
      %113 = vector.extract_strided_slice %23 {offsets = [0, 2], sizes = [64, 1], strides = [1, 1]} : vector<64x9xf32> to vector<64x1xf32>
      %114 = vector.broadcast %112 : vector<1x256xf32> to vector<64x256xf32>
      %115 = arith.mulf %111, %114 : vector<64x256xf32>
      %116 = vector.broadcast %113 : vector<64x1xf32> to vector<64x256xf32>
      %117 = arith.mulf %116, %115 : vector<64x256xf32>
      %118 = arith.addf %110, %117 : vector<64x256xf32>
      %c1_i32_24 = arith.constant 1 : i32
      %119 = tpu.dynamic_rotate %92 by %c1_i32_24 dim 1 : vector<64x256xf32>, i32 -> vector<64x256xf32>
      %120 = vector.extract_strided_slice %23 {offsets = [0, 3], sizes = [64, 1], strides = [1, 1]} : vector<64x9xf32> to vector<64x1xf32>
      %121 = vector.broadcast %60 : vector<1x256xf32> to vector<64x256xf32>
      %122 = arith.mulf %119, %121 : vector<64x256xf32>
      %123 = vector.broadcast %120 : vector<64x1xf32> to vector<64x256xf32>
      %124 = arith.mulf %123, %122 : vector<64x256xf32>
      %125 = arith.addf %118, %124 : vector<64x256xf32>
      %c255_i32 = arith.constant 255 : i32
      %126 = tpu.dynamic_rotate %92 by %c255_i32 dim 1 : vector<64x256xf32>, i32 -> vector<64x256xf32>
      %127 = vector.extract_strided_slice %23 {offsets = [0, 5], sizes = [64, 1], strides = [1, 1]} : vector<64x9xf32> to vector<64x1xf32>
      %128 = vector.broadcast %64 : vector<1x256xf32> to vector<64x256xf32>
      %129 = arith.mulf %126, %128 : vector<64x256xf32>
      %130 = vector.broadcast %127 : vector<64x1xf32> to vector<64x256xf32>
      %131 = arith.mulf %130, %129 : vector<64x256xf32>
      %132 = arith.addf %125, %131 : vector<64x256xf32>
      %c241_i32 = arith.constant 241 : i32
      %133 = tpu.dynamic_rotate %92 by %c241_i32 dim 1 : vector<64x256xf32>, i32 -> vector<64x256xf32>
      %134 = arith.mulf %56, %60 : vector<1x256xf32>
      %135 = vector.extract_strided_slice %23 {offsets = [0, 6], sizes = [64, 1], strides = [1, 1]} : vector<64x9xf32> to vector<64x1xf32>
      %136 = vector.broadcast %134 : vector<1x256xf32> to vector<64x256xf32>
      %137 = arith.mulf %133, %136 : vector<64x256xf32>
      %138 = vector.broadcast %135 : vector<64x1xf32> to vector<64x256xf32>
      %139 = arith.mulf %138, %137 : vector<64x256xf32>
      %140 = arith.addf %132, %139 : vector<64x256xf32>
      %c240_i32_25 = arith.constant 240 : i32
      %141 = tpu.dynamic_rotate %92 by %c240_i32_25 dim 1 : vector<64x256xf32>, i32 -> vector<64x256xf32>
      %142 = vector.extract_strided_slice %23 {offsets = [0, 7], sizes = [64, 1], strides = [1, 1]} : vector<64x9xf32> to vector<64x1xf32>
      %143 = vector.broadcast %56 : vector<1x256xf32> to vector<64x256xf32>
      %144 = arith.mulf %141, %143 : vector<64x256xf32>
      %145 = vector.broadcast %142 : vector<64x1xf32> to vector<64x256xf32>
      %146 = arith.mulf %145, %144 : vector<64x256xf32>
      %147 = arith.addf %140, %146 : vector<64x256xf32>
      %c239_i32 = arith.constant 239 : i32
      %148 = tpu.dynamic_rotate %92 by %c239_i32 dim 1 : vector<64x256xf32>, i32 -> vector<64x256xf32>
      %149 = arith.mulf %56, %64 : vector<1x256xf32>
      %150 = vector.extract_strided_slice %23 {offsets = [0, 8], sizes = [64, 1], strides = [1, 1]} : vector<64x9xf32> to vector<64x1xf32>
      %151 = vector.broadcast %149 : vector<1x256xf32> to vector<64x256xf32>
      %152 = arith.mulf %148, %151 : vector<64x256xf32>
      %153 = vector.broadcast %150 : vector<64x1xf32> to vector<64x256xf32>
      %154 = arith.mulf %153, %152 : vector<64x256xf32>
      %155 = arith.addf %147, %154 : vector<64x256xf32>
      %156 = vector.broadcast %24 : vector<64x1xf32> to vector<64x256xf32>
      %157 = arith.addf %155, %156 : vector<64x256xf32>
      %158 = vector.extract_strided_slice %157 {offsets = [0, 0], sizes = [32, 256], strides = [1, 1]} : vector<64x256xf32> to vector<32x256xf32>
      %159 = vector.extract_strided_slice %157 {offsets = [32, 0], sizes = [32, 256], strides = [1, 1]} : vector<64x256xf32> to vector<32x256xf32>
      %160 = arith.mulf %158, %159 : vector<32x256xf32>
      %cst_26 = arith.constant dense<0.000000e+00> : vector<32xf32>
      %161 = vector.multi_reduction <add>, %160, %cst_26 [1] : vector<32x256xf32> to vector<32xf32>
      %162 = vector.shape_cast %161 : vector<32xf32> to vector<32x1xf32>
      %cst_27 = arith.constant 2.560000e+02 : f32
      %163 = vector.broadcast %cst_27 : f32 to vector<32x1xf32>
      %164 = arith.divf %162, %163 : vector<32x1xf32>
      %165 = arith.extf %15 : vector<32x32xbf16> to vector<32x32xf32>
      %166 = vector.broadcast %164 : vector<32x1xf32> to vector<32x32xf32>
      %167 = arith.mulf %165, %166 : vector<32x32xf32>
      %cst_28 = arith.constant dense<0.000000e+00> : vector<32xf32>
      %168 = vector.multi_reduction <add>, %167, %cst_28 [0] : vector<32x32xf32> to vector<32xf32>
      %169 = vector.shape_cast %168 : vector<32xf32> to vector<1x32xf32>
      %170 = arith.extf %16 : vector<32x32xbf16> to vector<32x32xf32>
      %171 = vector.broadcast %169 : vector<1x32xf32> to vector<32x32xf32>
      %172 = arith.mulf %170, %171 : vector<32x32xf32>
      %173 = arith.extf %17 : vector<32x32xbf16> to vector<32x32xf32>
      %174 = arith.addf %172, %173 : vector<32x32xf32>
      %175 = arith.truncf %174 : vector<32x32xf32> to vector<32x32xbf16>
      %176 = arith.truncf %160 : vector<32x256xf32> to vector<32x256xbf16>
      %cst_29 = arith.constant dense<0.000000e+00> : vector<32x256xf32>
      %177 = tpu.matmul %175, %176, %cst_29 {dimension_numbers = #tpu.dot_dimension_numbers<[1], [0], [0], [1], [0, 0, 1, 1], [], []>} : vector<32x32xbf16>, vector<32x256xbf16>, vector<32x256xf32> -> vector<32x256xf32>
      %178 = vector.broadcast %25 : vector<32x1xf32> to vector<32x256xf32>
      %179 = arith.addf %177, %178 : vector<32x256xf32>
      %c0_30 = arith.constant 0 : index
      %c0_31 = arith.constant 0 : index
      %c0_32 = arith.constant 0 : index
      %180 = vector.load %arg13[%c0_30, %c0_31, %c0_32] : memref<1x32x256xf32, #tpu.memory_space<vmem>>, vector<1x32x256xf32>
      %181 = vector.shape_cast %180 : vector<1x32x256xf32> to vector<32x256xf32>
      %182 = vector.broadcast %26 : vector<32x1xf32> to vector<32x256xf32>
      %183 = arith.mulf %179, %182 : vector<32x256xf32>
      %184 = arith.addf %181, %183 : vector<32x256xf32>
      %c0_33 = arith.constant 0 : index
      %c0_34 = arith.constant 0 : index
      %c0_35 = arith.constant 0 : index
      %185 = vector.load %arg13[%c0_33, %c0_34, %c0_35] : memref<1x32x256xf32, #tpu.memory_space<vmem>>, vector<1x32x256xf32>
      %186 = vector.shape_cast %185 : vector<1x32x256xf32> to vector<32x256xf32>
      %187 = vector.shape_cast %184 : vector<32x256xf32> to vector<1x32x256xf32>
      tpu.vector_store %arg13[%c0_33, %c0_34, %c0_35], %187 {strides = array<i32>} : memref<1x32x256xf32, #tpu.memory_space<vmem>>, vector<1x32x256xf32>,
      %cst_36 = arith.constant dense<0.000000e+00> : vector<256xf32>
      %188 = vector.multi_reduction <add>, %184, %cst_36 [0] : vector<32x256xf32> to vector<256xf32>
      %189 = vector.shape_cast %188 : vector<256xf32> to vector<1x256xf32>
      %cst_37 = arith.constant 3.200000e+01 : f32
      %190 = vector.broadcast %cst_37 : f32 to vector<1x256xf32>
      %191 = arith.divf %189, %190 : vector<1x256xf32>
      %192 = vector.broadcast %191 : vector<1x256xf32> to vector<32x256xf32>
      %193 = arith.subf %184, %192 : vector<32x256xf32>
      %194 = arith.mulf %193, %193 : vector<32x256xf32>
      %cst_38 = arith.constant dense<0.000000e+00> : vector<256xf32>
      %195 = vector.multi_reduction <add>, %194, %cst_38 [0] : vector<32x256xf32> to vector<256xf32>
      %196 = vector.shape_cast %195 : vector<256xf32> to vector<1x256xf32>
      %cst_39 = arith.constant 3.200000e+01 : f32
      %197 = vector.broadcast %cst_39 : f32 to vector<1x256xf32>
      %198 = arith.divf %196, %197 : vector<1x256xf32>
      %199 = vector.broadcast %191 : vector<1x256xf32> to vector<32x256xf32>
      %200 = arith.subf %184, %199 : vector<32x256xf32>
      %cst_40 = arith.constant 9.99999997E-7 : f32
      %201 = vector.broadcast %cst_40 : f32 to vector<1x256xf32>
      %202 = arith.addf %198, %201 : vector<1x256xf32>
      %203 = math.rsqrt %202 : vector<1x256xf32>
      %204 = vector.broadcast %203 : vector<1x256xf32> to vector<32x256xf32>
      %205 = arith.mulf %200, %204 : vector<32x256xf32>
      %206 = vector.broadcast %27 : vector<32x1xf32> to vector<32x256xf32>
      %207 = arith.mulf %205, %206 : vector<32x256xf32>
      %208 = vector.broadcast %28 : vector<32x1xf32> to vector<32x256xf32>
      %209 = arith.addf %207, %208 : vector<32x256xf32>
      %210 = arith.truncf %209 : vector<32x256xf32> to vector<32x256xbf16>
      %cst_41 = arith.constant dense<0.000000e+00> : vector<64x256xf32>
      %211 = tpu.matmul %18, %210, %cst_41 {dimension_numbers = #tpu.dot_dimension_numbers<[1], [0], [0], [1], [0, 0, 1, 1], [], []>} : vector<64x32xbf16>, vector<32x256xbf16>, vector<64x256xf32> -> vector<64x256xf32>
      %212 = vector.broadcast %29 : vector<64x1xf32> to vector<64x256xf32>
      %213 = arith.addf %211, %212 : vector<64x256xf32>
      %214 = vector.extract_strided_slice %213 {offsets = [0, 0], sizes = [32, 256], strides = [1, 1]} : vector<64x256xf32> to vector<32x256xf32>
      %215 = vector.extract_strided_slice %213 {offsets = [32, 0], sizes = [32, 256], strides = [1, 1]} : vector<64x256xf32> to vector<32x256xf32>
      %216 = arith.mulf %214, %215 : vector<32x256xf32>
      %217 = arith.truncf %216 : vector<32x256xf32> to vector<32x256xbf16>
      %cst_42 = arith.constant dense<0.000000e+00> : vector<32x256xf32>
      %218 = tpu.matmul %19, %217, %cst_42 {dimension_numbers = #tpu.dot_dimension_numbers<[1], [0], [0], [1], [0, 0, 1, 1], [], []>} : vector<32x32xbf16>, vector<32x256xbf16>, vector<32x256xf32> -> vector<32x256xf32>
      %219 = vector.broadcast %30 : vector<32x1xf32> to vector<32x256xf32>
      %220 = arith.addf %218, %219 : vector<32x256xf32>
      %c0_43 = arith.constant 0 : index
      %c0_44 = arith.constant 0 : index
      %c0_45 = arith.constant 0 : index
      %221 = vector.load %arg13[%c0_43, %c0_44, %c0_45] : memref<1x32x256xf32, #tpu.memory_space<vmem>>, vector<1x32x256xf32>
      %222 = vector.shape_cast %221 : vector<1x32x256xf32> to vector<32x256xf32>
      %223 = vector.broadcast %31 : vector<32x1xf32> to vector<32x256xf32>
      %224 = arith.mulf %220, %223 : vector<32x256xf32>
      %225 = arith.addf %222, %224 : vector<32x256xf32>
      %c0_46 = arith.constant 0 : index
      %c0_47 = arith.constant 0 : index
      %c0_48 = arith.constant 0 : index
      %226 = vector.load %arg13[%c0_46, %c0_47, %c0_48] : memref<1x32x256xf32, #tpu.memory_space<vmem>>, vector<1x32x256xf32>
      %227 = vector.shape_cast %226 : vector<1x32x256xf32> to vector<32x256xf32>
      %228 = vector.shape_cast %225 : vector<32x256xf32> to vector<1x32x256xf32>
      tpu.vector_store %arg13[%c0_46, %c0_47, %c0_48], %228 {strides = array<i32>} : memref<1x32x256xf32, #tpu.memory_space<vmem>>, vector<1x32x256xf32>,
    } else {
    }
    return
  }
  func.func @transform_0(%arg0: i32, %arg1: i32) -> (i32, i32, i32) {
    %c0_i32 = arith.constant 0 : i32
    %c0_i32_0 = arith.constant 0 : i32
    %c0_i32_1 = arith.constant 0 : i32
    return %arg0, %c0_i32, %c0_i32_0 : i32, i32, i32
  }
  func.func @transform_1(%arg0: i32, %arg1: i32) -> (i32, i32, i32) {
    %c0_i32 = arith.constant 0 : i32
    %c0_i32_0 = arith.constant 0 : i32
    %c0_i32_1 = arith.constant 0 : i32
    return %arg0, %c0_i32, %c0_i32_0 : i32, i32, i32
  }
  func.func @transform_2(%arg0: i32, %arg1: i32) -> (i32, i32) {
    %c0_i32 = arith.constant 0 : i32
    %c0_i32_0 = arith.constant 0 : i32
    %c0_i32_1 = arith.constant 0 : i32
    return %c0_i32, %c0_i32_0 : i32, i32
  }
  func.func @transform_3(%arg0: i32, %arg1: i32) -> (i32, i32) {
    %c0_i32 = arith.constant 0 : i32
    %c0_i32_0 = arith.constant 0 : i32
    %c0_i32_1 = arith.constant 0 : i32
    return %c0_i32, %c0_i32_0 : i32, i32
  }
  func.func @transform_4(%arg0: i32, %arg1: i32) -> (i32, i32) {
    %c0_i32 = arith.constant 0 : i32
    %c0_i32_0 = arith.constant 0 : i32
    %c0_i32_1 = arith.constant 0 : i32
    return %c0_i32, %c0_i32_0 : i32, i32
  }
  func.func @transform_5(%arg0: i32, %arg1: i32) -> (i32, i32) {
    %c0_i32 = arith.constant 0 : i32
    %c0_i32_0 = arith.constant 0 : i32
    %c0_i32_1 = arith.constant 0 : i32
    return %c0_i32, %c0_i32_0 : i32, i32
  }
  func.func @transform_6(%arg0: i32, %arg1: i32) -> (i32, i32) {
    %c0_i32 = arith.constant 0 : i32
    %c0_i32_0 = arith.constant 0 : i32
    %c0_i32_1 = arith.constant 0 : i32
    return %c0_i32, %c0_i32_0 : i32, i32
  }
  func.func @transform_7(%arg0: i32, %arg1: i32) -> (i32, i32) {
    %c0_i32 = arith.constant 0 : i32
    %c0_i32_0 = arith.constant 0 : i32
    %c0_i32_1 = arith.constant 0 : i32
    return %c0_i32, %c0_i32_0 : i32, i32
  }
  func.func @transform_8(%arg0: i32, %arg1: i32) -> (i32, i32) {
    %c0_i32 = arith.constant 0 : i32
    %c0_i32_0 = arith.constant 0 : i32
    %c0_i32_1 = arith.constant 0 : i32
    return %c0_i32, %c0_i32_0 : i32, i32
  }
  func.func @transform_9(%arg0: i32, %arg1: i32) -> (i32, i32, i32) {
    %c0_i32 = arith.constant 0 : i32
    %c0_i32_0 = arith.constant 0 : i32
    %c0_i32_1 = arith.constant 0 : i32
    %c0_i32_2 = arith.constant 0 : i32
    return %c0_i32, %c0_i32_0, %c0_i32_1 : i32, i32, i32
  }
  func.func @transform_10(%arg0: i32, %arg1: i32) -> (i32, i32, i32) {
    %c0_i32 = arith.constant 0 : i32
    %c0_i32_0 = arith.constant 0 : i32
    %c0_i32_1 = arith.constant 0 : i32
    %c0_i32_2 = arith.constant 0 : i32
    return %c0_i32, %c0_i32_0, %c0_i32_1 : i32, i32, i32
  }
  func.func @transform_11(%arg0: i32, %arg1: i32) -> (i32, i32, i32) {
    %c0_i32 = arith.constant 0 : i32
    %c0_i32_0 = arith.constant 0 : i32
    %c0_i32_1 = arith.constant 0 : i32
    return %arg0, %c0_i32, %c0_i32_0 : i32, i32, i32
  }
}

</mosaic_0001>

<bundles_post_ra>
// kernel: custom_seq_enc_forward.1
= control target key start
LH: loop header
LB: loop body
LE: loop exit
PB: predicated region body
PF: predicated region fallthrough
CT: control target
= control target key end

     0   :  { %s4989_s17 = smov 0   ;;  %s4991_s18 = smov 0   ;;  %s7766_s0 = inlined_call_operand.vmem [shape: f32[2,32,256], index: 0, kind: input, shape index: {}]   ;;  %s7767_s1 = inlined_call_operand.vmem [shape: bf16[2,384,256], index: 1, kind: input, shape index: {}]   ;;  %s7768_s2 = inlined_call_operand.vmem [shape: bf16[128,384], index: 2, kind: input, shape index: {}]   ;;  %s7769_s3 = inlined_call_operand.vmem [shape: f32[128,1], index: 3, kind: input, shape index: {}]   ;;  %s7770_s4 = inlined_call_operand.vmem [shape: bf16[32,128], index: 4, kind: input, shape index: {}]   ;;  %s7771_s5 = inlined_call_operand.vmem [shape: f32[32,2], index: 5, kind: input, shape index: {}]   ;;  %s7772_s6 = inlined_call_operand.vmem [shape: f32[2,1], index: 6, kind: input, shape index: {}]   ;;  %s7773_s7 = inlined_call_operand.vmem [shape: f32[32,2], index: 7, kind: input, shape index: {}]   ;;  %s7774_s8 = inlined_call_operand.vmem [shape: f32[32,5], index: 8, kind: input, shape index: {}]   ;;  %s7775_s9 = inlined_call_operand.vmem [shape: bf16[2,256,32], index: 9, kind: input, shape index: {}]   ;;  %s7776_s10 = inlined_call_operand.vmem [shape: f32[2,64,20], index: 10, kind: input, shape index: {}]   ;;  %s7777_s11 = inlined_call_operand.vmem [shape: f32[2,32,256], index: 11, kind: output, shape index: {}]  }
   0x1   :  { %s4993_s19 = smov 0   ;;  %s4995_s20 = smov 0  }
   0x2   :  { %s4997_s21 = smov 0  }
   0x3 LB: > { %s30_s22 = sadd.s32 1, %s4885_s19  ;;  %s33_s23 = sadd.s32 1, %s4889_s20  ;;  %s4893_s21 = sphi %s4997_s21, %s21_s21   ;;  %s4889_s20 = sphi %s4995_s20, %s8243_s20   ;;  %s4885_s19 = sphi %s4993_s19, %s8242_s19   ;;  %s4881_s18 = sphi %s4991_s18, %s8241_s18   ;;  %s4877_s17 = sphi %s4989_s17, %s8240_s17  }
   0x4   : > { %p31_p0 = scmp.ge.s32.totalorder %s30_s22, 3  ;;  %p4221_p1 = scmp.ge.s32.totalorder %s4893_s21, 1 }
   0x5   : > { %p359_p2 = scmp.lt.s32.totalorder %s4893_s21, 7 }
   0x6   : > { %s8245_s22 = smov (%p31_p0, %s30_s22), 0  ;;  %s8247_s23 = smov (!%p31_p0, %s33_s23), %s4889_s20 }
   0x7   : > { %p360_p3 = pnand %p4221_p1, %p359_p2  ;;  %p35_p4 = scmp.ge.s32.totalorder %s8247_s23, 2 }
   0x8   : > { %p404_p5 = scmp.lt.s32.totalorder (!%p360_p3), %s4881_s18, 1  ;;  %p4227_p6 = scmp.ne.s32.totalorder (!%p360_p3), %s4877_s17, 0 }
   0x9   : > { %s8249_s23 = smov (%p35_p4, %s8247_s23), 0  ;;  %363 = sbr.rel (%p360_p3) target bundleno = 2462 (0x99e), region = 64 }
  0x10   : > { %s8251_s18 = smov (!%p404_p5, %s4881_s18), 1  ;;  %423 = sbr.rel (%p4227_p6) target bundleno = 707 (0x2c3), region = 68 }
  0x11   : > { %s4345_s24 = sshll.u32 %s8251_s18, 6  ;;  %s4442_s25 = smul.u32 384, %s8251_s18 }
  0x12   : > { %s5024_s28 = scalar_lea.vmem %s7766_s0, %s4345_s24  ;;  %s5029_s12 = scalar_lea.vmem %s7777_s11, %s4345_s24 }
  0x13   : > { %s5034_s15 = scalar_lea.vmem %s7767_s1, %s4442_s25 }
  0x17   : > { %v4536_v0 = vld [vmem:[%s5034_s15 + $0x4] ss:$8 sps:$4 sm:$0xff]   ;;  %v4538_v1 = vld [vmem:[%s5034_s15] ss:$8 sps:$4 sm:$0xff]   ;;  %v7780_v2 = vmov 0   ;;  %v643_v47 = vld [vmem:[%s7769_s3 + $0x30] sm:$0xff] }
  0x18   : > { %1246 = vmatprep.mubr.bf16.mxu1 %v7780_v2  ;;  %4517 = vset.pattern.permute.xlu0 %v7780_v2  ;;  %v4539_v3 = vld [vmem:[%s5034_s15 + $0x14] ss:$8 sps:$4 sm:$0xff]   ;;  %v4541_v4 = vld [vmem:[%s5034_s15 + $0x10] ss:$8 sps:$4 sm:$0xff]   ;;  %v4542_v5 = vld [vmem:[%s5034_s15 + $0x24] ss:$8 sps:$4 sm:$0xff]  }
  0x19   : > { %1101 = vmatprep.subr.bf16.mxu0 %v4536_v0  ;;  %4518 = vset.pattern.permute.xlu1 %v7780_v2  ;;  %v4544_v6 = vld [vmem:[%s5034_s15 + $0x20] ss:$8 sps:$4 sm:$0xff]   ;;  %v4545_v7 = vld [vmem:[%s5034_s15 + $0x34] ss:$8 sps:$4 sm:$0xff]   ;;  %v4547_v8 = vld [vmem:[%s5034_s15 + $0x30] ss:$8 sps:$4 sm:$0xff]  }
  0x1a   : > { %1102 = vmatpush1.bf16.msra.mxu0 %v4538_v1  ;;  %v4560_v9 = vld [vmem:[%s5034_s15 + $0x104] ss:$8 sps:$4 sm:$0xff]   ;;  %v4564_v11 = vld [vmem:[%s5034_s15 + $0x100] ss:$8 sps:$4 sm:$0xff]   ;;  %v4566_v12 = vld [vmem:[%s5034_s15 + $0x114] ss:$8 sps:$4 sm:$0xff]  }
  0x1b   : > { %1103 = vmatprep.subr.bf16.mxu0 %v4539_v3  ;;  %v4548_v10 = vld [vmem:[%s5034_s15 + $0x44] ss:$8 sps:$4 sm:$0xff]   ;;  %1214 = vmatprep.subr.bf16.mxu1 %v4560_v9  ;;  %v4550_v13 = vld [vmem:[%s5034_s15 + $0x40] ss:$8 sps:$4 sm:$0xff]   ;;  %v4551_v14 = vld [vmem:[%s5034_s15 + $0x54] ss:$8 sps:$4 sm:$0xff]  }
  0x1c   : > { %1215 = vmatpush1.bf16.msra.mxu1 %v4564_v11  ;;  %v4570_v15 = vld [vmem:[%s5034_s15 + $0x110] ss:$8 sps:$4 sm:$0xff]   ;;  %v4572_v16 = vld [vmem:[%s5034_s15 + $0x124] ss:$8 sps:$4 sm:$0xff]   ;;  %v4576_v18 = vld [vmem:[%s5034_s15 + $0x120] ss:$8 sps:$4 sm:$0xff]  }
  0x1d   : > { %1216 = vmatprep.subr.bf16.mxu1 %v4566_v12  ;;  %v4553_v17 = vld [vmem:[%s5034_s15 + $0x50] ss:$8 sps:$4 sm:$0xff]   ;;  %v4578_v19 = vld [vmem:[%s5034_s15 + $0x134] ss:$8 sps:$4 sm:$0xff]   ;;  %v4554_v20 = vld [vmem:[%s5034_s15 + $0x64] ss:$8 sps:$4 sm:$0xff]  }
  0x1e   : > { %1104 = vmatpush1.bf16.msra.mxu0 %v4541_v4  ;;  %v4582_v21 = vld [vmem:[%s5034_s15 + $0x130] ss:$8 sps:$4 sm:$0xff]   ;;  %v4556_v22 = vld [vmem:[%s5034_s15 + $0x60] ss:$8 sps:$4 sm:$0xff]   ;;  %v4584_v23 = vld [vmem:[%s5034_s15 + $0x144] ss:$8 sps:$4 sm:$0xff]  }
  0x1f   : > { %1105 = vmatprep.subr.bf16.mxu0 %v4542_v5  ;;  %v4557_v24 = vld [vmem:[%s5034_s15 + $0x74] ss:$8 sps:$4 sm:$0xff]   ;;  %v4559_v25 = vld [vmem:[%s5034_s15 + $0x70] ss:$8 sps:$4 sm:$0xff]   ;;  %v4588_v26 = vld [vmem:[%s5034_s15 + $0x140] ss:$8 sps:$4 sm:$0xff]  }
  0x20   : > { %1217 = vmatpush1.bf16.msra.mxu1 %v4570_v15  ;;  %v4590_v27 = vld [vmem:[%s5034_s15 + $0x154] ss:$8 sps:$4 sm:$0xff]   ;;  %v4562_v28 = vld [vmem:[%s5034_s15 + $0x84] ss:$8 sps:$4 sm:$0xff]   ;;  %v4594_v29 = vld [vmem:[%s5034_s15 + $0x150] ss:$8 sps:$4 sm:$0xff]  }
  0x21   : > { %1218 = vmatprep.subr.bf16.mxu1 %v4572_v16  ;;  %v4565_v30 = vld [vmem:[%s5034_s15 + $0x80] ss:$8 sps:$4 sm:$0xff]   ;;  %v4596_v31 = vld [vmem:[%s5034_s15 + $0x164] ss:$8 sps:$4 sm:$0xff]   ;;  %v4568_v32 = vld [vmem:[%s5034_s15 + $0x94] ss:$8 sps:$4 sm:$0xff]  }
  0x22   : > { %1106 = vmatpush1.bf16.msra.mxu0 %v4544_v6  ;;  %v4571_v33 = vld [vmem:[%s5034_s15 + $0x90] ss:$8 sps:$4 sm:$0xff]   ;;  %v4600_v35 = vld [vmem:[%s5034_s15 + $0x160] ss:$8 sps:$4 sm:$0xff]   ;;  %v4602_v37 = vld [vmem:[%s5034_s15 + $0x174] ss:$8 sps:$4 sm:$0xff]  }
  0x23   : > { %1107 = vmatprep.subr.bf16.mxu0 %v4545_v7  ;;  %v4610_v34 = vld [vmem:[%s7768_s2 + $0x4] ss:$12 sps:$4 sm:$0xff]   ;;  %v638_v40 = vld [vmem:[%s7769_s3 + $0x8] sm:$0xff]  ;;  %v4580_v42 = vld [vmem:[%s5034_s15 + $0xb4] ss:$8 sps:$4 sm:$0xff]   ;;  %v4896_v7 = vmov 2  }
  0x24   : > { %1219 = vmatpush1.bf16.msra.mxu1 %v4576_v18  ;;  %v637_v36 = vld [vmem:[%s7769_s3] sm:$0xff]  ;;  %1133 = vmatprep.mubr.bf16.mxu0 %v4610_v34  ;;  %v4606_v39 = vld [vmem:[%s5034_s15 + $0x170] ss:$8 sps:$4 sm:$0xff]   ;;  %v4611_v43 = vld [vmem:[%s7768_s2 + $0x8] ss:$12 sps:$4 sm:$0xff]  }
  0x25   : > { %1220 = vmatprep.subr.bf16.mxu1 %v4578_v19  ;;  %v4574_v38 = vld [vmem:[%s5034_s15 + $0xa4] ss:$8 sps:$4 sm:$0xff]   ;;  %655 = vperm.xlu0 %4517, %v637_v36   ;;  %v4577_v41 = vld [vmem:[%s5034_s15 + $0xa0] ss:$8 sps:$4 sm:$0xff]   ;;  %v4583_v45 = vld [vmem:[%s5034_s15 + $0xb0] ss:$8 sps:$4 sm:$0xff]  }
  0x26   : > { %1108 = vmatpush1.bf16.msra.mxu0 %v4547_v8  ;;  %v641_v44 = vld [vmem:[%s7769_s3 + $0x20] sm:$0xff]  ;;  %v4592_v49 = vld [vmem:[%s5034_s15 + $0xd4] ss:$8 sps:$4 sm:$0xff]   ;;  %v4595_v52 = vld [vmem:[%s5034_s15 + $0xd0] ss:$8 sps:$4 sm:$0xff]  }
  0x27   : > { %1109 = vmatprep.subr.bf16.mxu0 %v4548_v10  ;;  %v4586_v46 = vld [vmem:[%s5034_s15 + $0xc4] ss:$8 sps:$4 sm:$0xff]   ;;  %v4589_v48 = vld [vmem:[%s5034_s15 + $0xc0] ss:$8 sps:$4 sm:$0xff]   ;;  %v639_v54 = vld [vmem:[%s7769_s3 + $0x10] sm:$0xff] }
  0x28   : > { %1221 = vmatpush1.bf16.msra.mxu1 %v4582_v21  ;;  %v4614_v50 = vld [vmem:[%s7768_s2 + $0x20] ss:$12 sps:$4 sm:$0xff]   ;;  %v647_v55 = vld [vmem:[%s7769_s3 + $0x50] sm:$0xff]  ;;  %665 = vperm.xlu1 %4518, %v639_v54   ;;  %v640_v57 = vld [vmem:[%s7769_s3 + $0x18] sm:$0xff] }
  0x29   : > { %1222 = vmatprep.subr.bf16.mxu1 %v4584_v23  ;;  %660 = vperm.xlu0 %4517, %v638_v40   ;;  %v645_v51 = vld [vmem:[%s7769_s3 + $0x40] sm:$0xff]  ;;  %v4604_v58 = vld [vmem:[%s5034_s15 + $0xf4] ss:$8 sps:$4 sm:$0xff]   ;;  %v4607_v60 = vld [vmem:[%s5034_s15 + $0xf0] ss:$8 sps:$4 sm:$0xff]  }
  0x2a   : > { %1110 = vmatpush1.bf16.msra.mxu0 %v4550_v13  ;;  %v4598_v53 = vld [vmem:[%s5034_s15 + $0xe4] ss:$8 sps:$4 sm:$0xff]   ;;  %v4601_v56 = vld [vmem:[%s5034_s15 + $0xe0] ss:$8 sps:$4 sm:$0xff]   ;;  %v651_v0 = vld [vmem:[%s7769_s3 + $0x70] sm:$0xff] }
  0x2b   : > { %1111 = vmatprep.subr.bf16.mxu0 %v4551_v14  ;;  %v4618_v59 = vld [vmem:[%s7768_s2 + $0x38] ss:$12 sps:$4 sm:$0xff]   ;;  %v642_v62 = vld [vmem:[%s7769_s3 + $0x28] sm:$0xff]  ;;  %v4622_v4 = vld [vmem:[%s7768_s2 + $0x50] ss:$12 sps:$4 sm:$0xff]  }
  0x2c   : > { %1223 = vmatpush1.bf16.msra.mxu1 %v4588_v26  ;;  %v649_v61 = vld [vmem:[%s7769_s3 + $0x60] sm:$0xff]  ;;  %670 = vperm.xlu1 %4518, %v640_v57   ;;  %v4612_v1 = vld [vmem:[%s7768_s2 + $0x1c] ss:$12 sps:$4 sm:$0xff]   ;;  %v4620_v16 = vld [vmem:[%s7768_s2 + $0x4c] ss:$12 sps:$4 sm:$0xff]  }
  0x2d   : > { %1224 = vmatprep.subr.bf16.mxu1 %v4590_v27  ;;  %675 = vperm.xlu0 %4517, %v641_v44   ;;  %v4608_v63 = vld [vmem:[%s7768_s2] ss:$12 sps:$4 sm:$0xff]   ;;  %v644_v3 = vld [vmem:[%s7769_s3 + $0x38] sm:$0xff]  ;;  %v4626_v12 = vld [vmem:[%s7768_s2 + $0x68] ss:$12 sps:$4 sm:$0xff]  }
  0x2e   : > { %1112 = vmatpush1.bf16.msra.mxu0 %v4553_v17  ;;  %v5151_v5 = vld [vmem:[%s7774_s8 + $0x8] sm:$0xff]  ;;  %v4615_v8 = vld [vmem:[%s7768_s2 + $0x18] ss:$12 sps:$4 sm:$0xff]   ;;  %v4616_v9 = vld [vmem:[%s7768_s2 + $0x34] ss:$12 sps:$4 sm:$0xff]  }
  0x2f   : > { %1113 = vmatprep.subr.bf16.mxu0 %v4554_v20  ;;  %v646_v6 = vld [vmem:[%s7769_s3 + $0x48] sm:$0xff]  ;;  %v5167_v10 = vld [vmem:[%s7774_s8 + $0x18] sm:$0xff]  ;;  %v5179_v13 = vld [vmem:[%s7774_s8] sm:$0xff] }
  0x30   : > { %1225 = vmatpush1.bf16.msra.mxu1 %v4594_v29  ;;  %680 = vperm.xlu1 %4518, %v642_v62   ;;  %v648_v11 = vld [vmem:[%s7769_s3 + $0x58] sm:$0xff]  ;;  %v650_v14 = vld [vmem:[%s7769_s3 + $0x68] sm:$0xff]  ;;  %v5196_v17 = vld [vmem:[%s7774_s8 + $0x10] sm:$0xff]  ;;  %v7781_v29 = vmov 1  }
  0x31   : > { %1226 = vmatprep.subr.bf16.mxu1 %v4596_v31  ;;  %685 = vperm.xlu0 %4517, %v643_v47   ;;  %v4619_v15 = vld [vmem:[%s7768_s2 + $0x30] ss:$12 sps:$4 sm:$0xff]   ;;  %v4630_v18 = vld [vmem:[%s7768_s2 + $0x80] ss:$12 sps:$4 sm:$0xff]   ;;  %v4623_v21 = vld [vmem:[%s7768_s2 + $0x48] ss:$12 sps:$4 sm:$0xff]  }
  0x32   : > { %1114 = vmatpush1.bf16.msra.mxu0 %v4556_v22  ;;  %v652_v19 = vld [vmem:[%s7769_s3 + $0x78] sm:$0xff]  ;;  %v5208_v20 = vld [vmem:[%s7771_s5 + $0x8] sm:$0xff]  ;;  %v4624_v22 = vld [vmem:[%s7768_s2 + $0x64] ss:$12 sps:$4 sm:$0xff]  }
  0x33   : > { %1115 = vmatprep.subr.bf16.mxu0 %v4557_v24  ;;  %v5221_v23 = vld [vmem:[%s7771_s5 + $0x18] sm:$0xff]  ;;  %v4627_v26 = vld [vmem:[%s7768_s2 + $0x60] ss:$12 sps:$4 sm:$0xff]  }
  0x34   : > { %1227 = vmatpush1.bf16.msra.mxu1 %v4600_v35  ;;  %690 = vperm.xlu1 %4518, %v644_v3   ;;  %v4634_v24 = vld [vmem:[%s7768_s2 + $0x98] ss:$12 sps:$4 sm:$0xff]   ;;  %v4628_v27 = vld [vmem:[%s7768_s2 + $0x7c] ss:$12 sps:$4 sm:$0xff]   ;;  %v426_v35 = vld [vmem:[%s5024_s28 + $0x10] sm:$0xff] }
  0x35   : > { %1228 = vmatprep.subr.bf16.mxu1 %v4602_v37  ;;  %695 = vperm.xlu0 %4517, %v645_v51   ;;  %v5250_v31 = vld [vmem:[%s7773_s7 + $0x18] sm:$0xff]  ;;  %v424_v34 = vld [vmem:[%s5024_s28] sm:$0xff]  ;;  %v425_v36 = vld [vmem:[%s5024_s28 + $0x8] sm:$0xff] }
  0x36   : > { %1116 = vmatpush1.bf16.msra.mxu0 %v4559_v25  ;;  %v1866_v25 = vld [vmem:[%s7772_s6 + $0x1] sm:$0x1]  ;;  %v427_v37 = vld [vmem:[%s5024_s28 + $0x18] sm:$0xff]  ;;  %v484_v40 = vadd.f32 %v426_v35, %v424_v34 }
  0x37   : > { %1117 = vmatprep.subr.bf16.mxu0 %v4562_v28  ;;  %v1721_v28 = vld [vmem:[%s7773_s7 + $0x8] sm:$0xff] }
  0x38   : > { %1229 = vmatpush1.bf16.msra.mxu1 %v4606_v39  ;;  %700 = vperm.xlu1 %4518, %v646_v6   ;;  %v4636_v39 = vld [vmem:[%s7768_s2 + $0xac] ss:$12 sps:$4 sm:$0xff]  }
  0x39   : > { %705 = vperm.xlu0 %4517, %v647_v55  }
  0x3a   : > { %1118 = vmatpush1.bf16.msra.mxu0 %v4565_v30  ;;  %v4638_v30 = vld [vmem:[%s7768_s2 + $0xb0] ss:$12 sps:$4 sm:$0xff]  }
  0x3b   : > { %1119 = vmatprep.subr.bf16.mxu0 %v4568_v32  ;;  %1247 = vmatmul.mubr.bf16.vlgmr.msra.gmra.mrb[0].mxu1 %v4611_v43  ;;  %v4631_v32 = vld [vmem:[%s7768_s2 + $0x78] ss:$12 sps:$4 sm:$0xff]   ;;  %v429_v43 = vld [vmem:[%s5024_s28 + $0x28] sm:$0xff] }
  0x3c   : > { %1256 = vmatprep.mubr.bf16.mxu1 %v7780_v2  ;;  %710 = vperm.xlu1 %4518, %v648_v11  }
  0x3d   : > { %715 = vperm.xlu0 %4517, %v649_v61  }
  0x3e   : > { %1120 = vmatpush1.bf16.msra.mxu0 %v4571_v33  ;;  %v4632_v33 = vld [vmem:[%s7768_s2 + $0x94] ss:$12 sps:$4 sm:$0xff]  }
  0x3f   : > { %1121 = vmatprep.subr.bf16.mxu0 %v4574_v38  ;;  %v4635_v38 = vld [vmem:[%s7768_s2 + $0x90] ss:$12 sps:$4 sm:$0xff]  }
  0x40   : > { %720 = vperm.xlu1 %4518, %v650_v14  }
  0x41   : > { %725 = vperm.xlu0 %4517, %v651_v0  }
  0x42   : > { %1122 = vmatpush1.bf16.msra.mxu0 %v4577_v41  ;;  %v428_v41 = vld [vmem:[%s5024_s28 + $0x20] sm:$0xff] }
  0x43   : > { %1123 = vmatprep.subr.bf16.mxu0 %v4580_v42  ;;  %1257 = vmatmul.mubr.bf16.gmra.mrb[4].mxu1 %v4614_v50  ;;  %v493_v42 = vadd.f32 %v427_v37, %v425_v36  ;;  %v485_v44 = vadd.f32 %v484_v40, %v428_v41 }
  0x44   : > { %1266 = vmatprep.mubr.bf16.mxu1 %v7780_v2  ;;  %730 = vperm.xlu1 %4518, %v652_v19  }
  0x45   : > { %4521 = vset.pattern.permute.xlu0 %v4896_v7  ;;  %v494_v47 = vadd.f32 %v493_v42, %v429_v43 }
  0x46   : > { %1124 = vmatpush1.bf16.msra.mxu0 %v4583_v45  ;;  %1640 = vperm.xlu0 %4521, %v5151_v5   ;;  %v7779_v45 = vmov 3  }
  0x47   : > { %1125 = vmatprep.subr.bf16.mxu0 %v4586_v46  ;;  %v430_v46 = vld [vmem:[%s5024_s28 + $0x30] sm:$0xff] }
  0x48   : > { %560 = vperm.xlu1 %4518, %v5151_v5   ;;  %v486_v50 = vadd.f32 %v485_v44, %v430_v46 }
  0x4a   : > { %1126 = vmatpush1.bf16.msra.mxu0 %v4589_v48  ;;  %1648 = vperm.xlu0 %4521, %v5167_v10   ;;  %v431_v48 = vld [vmem:[%s5024_s28 + $0x38] sm:$0xff] }
  0x4b   : > { %1127 = vmatprep.subr.bf16.mxu0 %v4592_v49  ;;  %1267 = vmatmul.mubr.bf16.gmra.mrb[8].mxu1 %v4618_v59  ;;  %v4639_v49 = vld [vmem:[%s7768_s2 + $0xa8] ss:$12 sps:$4 sm:$0xff]   ;;  %v495_v51 = vadd.f32 %v494_v47, %v431_v48 }
  0x4c   : > { %1276 = vmatprep.mubr.bf16.mxu1 %v7780_v2  ;;  %570 = vperm.xlu1 %4518, %v5167_v10  }
  0x4e   : > { %1128 = vmatpush1.bf16.msra.mxu0 %v4595_v52  ;;  %4524 = vset.pattern.permute.xlu0 %v7780_v2  ;;  %v487_v52 = vrot.slane %v486_v50, 4 }
  0x4f   : > { %1129 = vmatprep.subr.bf16.mxu0 %v4598_v53  ;;  %555 = vperm.xlu0 %4524, %v5179_v13   ;;  %v496_v53 = vrot.slane %v495_v51, 4 }
  0x50   : > { %4519 = vset.pattern.permute.xlu1 %v7781_v29  ;;  %v488_v54 = vadd.f32 %v487_v52, %v486_v50 }
  0x51   : > { %586 = vperm.xlu1 %4519, %v5151_v5   ;;  %v497_v55 = vadd.f32 %v496_v53, %v495_v51 }
  0x52   : > { %1130 = vmatpush1.bf16.msra.mxu0 %v4601_v56  ;;  %v489_v56 = vrot.slane %v488_v54, 2 }
  0x53   : > { %1131 = vmatprep.subr.bf16.mxu0 %v4604_v58  ;;  %1277 = vmatmul.mubr.bf16.gmra.mrb[12].mxu1 %v4622_v4  ;;  %v498_v57 = vrot.slane %v497_v55, 2 }
  0x54   : > { %1286 = vmatprep.mubr.bf16.mxu1 %v7780_v2  ;;  %565 = vperm.xlu0 %4524, %v5196_v17   ;;  %v490_v58 = vadd.f32 %v489_v56, %v488_v54 }
  0x55   : > { %4520 = vset.pattern.permute.xlu1 %v4896_v7  ;;  %v499_v59 = vadd.f32 %v498_v57, %v497_v55 }
  0x56   : > { %1132 = vmatpush1.bf16.msra.mxu0 %v4607_v60  ;;  %1636 = vperm.xlu1 %4520, %v5179_v13   ;;  %v491_v60 = vrot.slane %v490_v58, 1 }
  0x57   : > { %v500_v61 = vrot.slane %v499_v59, 1 }
  0x58   : > { %1731 = vperm.xlu0 %4524, %v5208_v20   ;;  %v492_v62 = vadd.f32 %v491_v60, %v490_v58 }
  0x59   : > { %1134 = vmatmul.mubr.bf16.vlgmr.msra.gmra.mrb[0].mxu0 %v4608_v63  ;;  %v501_v63 = vadd.f32 %v500_v61, %v499_v59 }
  0x5a   : > { %1143 = vmatprep.mubr.bf16.mxu0 %v4612_v1  ;;  %1644 = vperm.xlu1 %4520, %v5196_v17   ;;  %v503_v0 = vmul.f32 0.03125, %v492_v62 }
  0x5b   : > { %1287 = vmatmul.mubr.bf16.gmra.mrb[16].mxu1 %v4626_v12  ;;  %v504_v1 = vmul.f32 0.03125, %v501_v63 }
  0x5c   : > { %1296 = vmatprep.mubr.bf16.mxu1 %v7780_v2  ;;  %1741 = vperm.xlu0 %4524, %v5221_v23   ;;  %v5287_v3 = vsub.f32 %v424_v34, %v503_v0  ;;  %v507_v4 = vsub.f32 %v426_v35, %v503_v0 }
  0x5d   : > { %v5289_v6 = vsub.f32 %v425_v36, %v504_v1  ;;  %v508_v7 = vsub.f32 %v427_v37, %v504_v1  ;;  %v5295_v11 = vsub.f32 %v429_v43, %v504_v1  ;;  %v5303_v19 = vsub.f32 %v431_v48, %v504_v1 }
  0x5e   : > { %4522 = vset.pattern.permute.xlu1 %v7780_v2  ;;  %7931 = vst [vmem:[#allocation2_spill] sm:$0xff] %v5287_v3 }
  0x5f   : > { %7932 = vst [vmem:[#allocation3_spill] sm:$0xff] %v5289_v6  ;;  %7934 = vst [vmem:[#allocation5_spill] sm:$0xff] %v5295_v11  ;;  %v514_v12 = vmul.f32 %v5289_v6, %v5289_v6  ;;  %v516_v14 = vmul.f32 %v508_v7, %v508_v7 }
  0x60   : > { %1869 = vperm.xlu0 %4524, %v1866_v25   ;;  %7936 = vst [vmem:[#allocation7_spill] sm:$0xff] %v5303_v19 }
  0x61   : > { %1144 = vmatmul.mubr.bf16.gmra.mrb[4].mxu0 %v4615_v8  ;;  %v5291_v8 = vsub.f32 %v428_v41, %v503_v0 }
  0x62   : > { %1153 = vmatprep.mubr.bf16.mxu0 %v4616_v9  ;;  %v513_v9 = vmul.f32 %v5287_v3, %v5287_v3 }
  0x63   : > { %1297 = vmatmul.mubr.bf16.gmra.mrb[20].mxu1 %v4630_v18  ;;  %7933 = vst [vmem:[#allocation4_spill] sm:$0xff] %v5291_v8 }
  0x64   : > { %1306 = vmatprep.mubr.bf16.mxu1 %v7780_v2  ;;  %1787 = vperm.xlu0 %4524, %v1721_v28  }
  0x68   : > { %1797 = vperm.xlu0 %4524, %v5250_v31  }
  0x69   : > { %1154 = vmatmul.mubr.bf16.gmra.mrb[8].mxu0 %v4619_v15  ;;  %v5299_v15 = vsub.f32 %v430_v46, %v503_v0 }
  0x6a   : > { %1163 = vmatprep.mubr.bf16.mxu0 %v4620_v16  ;;  %v517_v16 = vmul.f32 %v5291_v8, %v5291_v8 }
  0x6b   : > { %1307 = vmatmul.mubr.bf16.gmra.mrb[24].mxu1 %v4634_v24  ;;  %7935 = vst [vmem:[#allocation6_spill] sm:$0xff] %v5299_v15  ;;  %v519_v24 = vmul.f32 %v5299_v15, %v5299_v15 }
  0x6c   : > { %1316 = vmatprep.mubr.bf16.mxu1 %v7780_v2  ;;  %4528 = vset.pattern.permute.xlu0 %v7781_v29 }
  0x6d   : > { %582 = vperm.xlu0 %4528, %v5179_v13  }
  0x71   : > { %1164 = vmatmul.mubr.bf16.gmra.mrb[12].mxu0 %v4623_v21  ;;  %1881 = vperm.xlu0 %4528, %v1721_v28   ;;  %v518_v21 = vmul.f32 %v5295_v11, %v5295_v11 }
  0x72   : > { %1173 = vmatprep.mubr.bf16.mxu0 %v4624_v22  ;;  %v530_v22 = vadd.f32 %v516_v14, %v514_v12 }
  0x73   : > { %1317 = vmatmul.mubr.bf16.gmra.mrb[28].mxu1 %v4638_v30 }
  0x74   : > { %1695 = vmatprep.mubr.bf16.mxu1 %v7780_v2 }
  0x75   : > { %4530 = vset.pattern.permute.xlu0 %v7779_v45 }
  0x76   : > { %1917 = vperm.xlu0 %4530, %v5179_v13  }
  0x79   : > { %1174 = vmatmul.mubr.bf16.gmra.mrb[16].mxu0 %v4627_v26  ;;  %v520_v26 = vmul.f32 %v5303_v19, %v5303_v19 }
  0x7a   : > { %1183 = vmatprep.mubr.bf16.mxu0 %v4628_v27  ;;  %1929 = vperm.xlu0 %4530, %v5167_v10   ;;  %v531_v27 = vadd.f32 %v530_v22, %v518_v21 }
  0x7c   : > { %v532_v30 = vadd.f32 %v531_v27, %v520_v26  ;;  %v7778_v26 = vmov 4  }
  0x7e   : > { %4533 = vset.pattern.permute.xlu0 %v7781_v29 }
  0x7f   : > { %594 = vperm.xlu0 %4533, %v5167_v10   ;;  %v515_v10 = vmul.f32 %v507_v4, %v507_v4 }
  0x81   : > { %1184 = vmatmul.mubr.bf16.gmra.mrb[20].mxu0 %v4631_v32  ;;  %v521_v18 = vadd.f32 %v515_v10, %v513_v9 }
  0x82   : > { %1193 = vmatprep.mubr.bf16.mxu0 %v4632_v33  ;;  %v533_v33 = vrot.slane %v532_v30, 4 }
  0x83   : > { %v522_v25 = vadd.f32 %v521_v18, %v517_v16  ;;  %4535 = vset.pattern.permute.xlu0 %v7778_v26 }
  0x84   : > { %v534_v35 = vadd.f32 %v533_v33, %v532_v30  ;;  %2005 = vperm.xlu0 %4535, %v5196_v17  }
  0x85   : > { %v523_v28 = vadd.f32 %v522_v25, %v519_v24 }
  0x86   : > { %v535_v37 = vrot.slane %v534_v35, 2 }
  0x87   : > { %v524_v32 = vrot.slane %v523_v28, 4 }
  0x88   : > { %v536_v40 = vadd.f32 %v535_v37, %v534_v35 }
  0x89   : > { %1194 = vmatmul.mubr.bf16.gmra.mrb[24].mxu0 %v4635_v38  ;;  %v525_v34 = vadd.f32 %v524_v32, %v523_v28 }
  0x8a   : > { %1203 = vmatprep.mubr.bf16.mxu0 %v4636_v39  ;;  %v537_v43 = vrot.slane %v536_v40, 1 }
  0x8b   : > { %v526_v36 = vrot.slane %v525_v34, 2 }
  0x8c   : > { %v538_v47 = vadd.f32 %v537_v43, %v536_v40 }
  0x8d   : > { %v527_v39 = vadd.f32 %v526_v36, %v525_v34 }
  0x8e   : > { %v540_v50 = vmul.f32 0.03125, %v538_v47 }
  0x8f   : > { %v528_v42 = vrot.slane %v527_v39, 1 }
  0x90   : > { %v542_v53 = vadd.f32 1e-06, %v540_v50 }
  0x91   : > { %1204 = vmatmul.mubr.bf16.gmra.mrb[28].mxu0 %v4639_v49  ;;  %v529_v46 = vadd.f32 %v528_v42, %v527_v39 }
  0x93   : > { %v539_v49 = vmul.f32 0.03125, %v529_v46 }
  0x95   : > { %v541_v52 = vadd.f32 1e-06, %v539_v49 }
  0x97   : > { %4642 = vrsqrt.f32 %v541_v52 }
  0x98   : > { %4644 = vrsqrt.f32 %v542_v53 }
  0xa1   : > { %v5327_v57 = vpop.eup %4642 }
  0xa2   : > { %7938 = vst [vmem:[#allocation9_spill] sm:$0xff] %v5327_v57  ;;  %v5329_v58 = vpop.eup %4644  ;;  %v547_v60 = vmul.f32 %v5327_v57, %v507_v4 }
  0xa3   : > { %7939 = vst [vmem:[#allocation10_spill] sm:$0xff] %v5329_v58  ;;  %v548_v61 = vmul.f32 %v5329_v58, %v508_v7  ;;  %v1716_v7 = vld [vmem:[%s7771_s5] sm:$0xff] }
  0xa4   : > { %1726 = vperm.xlu1 %4522, %v1716_v7   ;;  %v656_v27 = vpop.permute.xlu0 %655 }
  0xa7   : > { %v5311_v38 = vpop.permute.xlu1 %665 }
  0xa8   : > { %4523 = vset.pattern.permute.xlu1 %v7781_v29  ;;  %v661_v36 = vpop.permute.xlu0 %660 }
  0xa9   : > { %1825 = vperm.xlu1 %4523, %v1716_v7  }
  0xab   : > { %v5313_v41 = vpop.permute.xlu1 %670 }
  0xad   : > { %1829 = vperm.xlu1 %4523, %v5208_v20  }
  0xaf   : > { %v5315_v44 = vpop.permute.xlu1 %680 }
  0xb1   : > { %4525 = vset.pattern.permute.xlu1 %v7780_v2 }
  0xb3   : > { %v5317_v48 = vpop.permute.xlu1 %690 }
  0xb7   : > { %v5319_v51 = vpop.permute.xlu1 %700 }
  0xbb   : > { %v5321_v54 = vpop.permute.xlu1 %710 }
  0xbf   : > { %v5323_v55 = vpop.permute.xlu1 %720 }
  0xc3   : > { %v5325_v56 = vpop.permute.xlu1 %730 }
  0xc4   : > { %7937 = vst [vmem:[#allocation8_spill] sm:$0xff] %v5325_v56  ;;  %v7949_v56 = vmov 1  }
  0xc7   : > { %v561_v59 = vpop.permute.xlu1 %560 }
  0xc8   : > { %v575_v63 = vmul.f32 %v561_v59, %v547_v60  ;;  %v576_v0 = vmul.f32 %v561_v59, %v548_v61 }
  0xcb   : > { %v5333_v62 = vpop.permute.xlu1 %570 }
  0xcc   : > { %7940 = vst [vmem:[#allocation11_spill] sm:$0xff] %v5333_v62 }
  0xd0   : > { %v587_v1 = vpop.permute.xlu1 %586 }
  0xd1   : > { %v5335_v9 = vadd.f32 %v587_v1, %v575_v63  ;;  %v5337_v10 = vadd.f32 %v587_v1, %v576_v0  ;;  %v1718_v0 = vld [vmem:[%s7771_s5 + $0x10] sm:$0xff] }
  0xd2   : > { %1736 = vperm.xlu1 %4525, %v1718_v0  }
  0xd3   : > { %7941 = vst [vmem:[#allocation12_spill] sm:$0xff] %v5335_v9  ;;  %7942 = vst [vmem:[#allocation13_spill] sm:$0xff] %v5337_v10 }
  0xd6   : > { %4526 = vset.pattern.permute.xlu1 %v7781_v29 }
  0xd7   : > { %1833 = vperm.xlu1 %4526, %v1718_v0  }
  0xdb   : > { %1837 = vperm.xlu1 %4526, %v5221_v23  }
  0xdf   : > { %4527 = vset.pattern.permute.xlu1 %v7780_v2 }
 0x10e   : > { %v1248_v12 = vpop.f32.mrb[0].mxu1 }
 0x10f   : > { %v1250_v14 = vpop.f32.mrb[1].mxu1 }
 0x110   : > { %v1252_v16 = vpop.f32.mrb[2].mxu1 }
 0x111   : > { %v1254_v18 = vpop.f32.mrb[3].mxu1 }
 0x116   : > { %v1258_v21 = vpop.f32.mrb[4].mxu1 }
 0x117   : > { %v1260_v22 = vpop.f32.mrb[5].mxu1 }
 0x118   : > { %v5339_v24 = vpop.f32.mrb[6].mxu1 }
 0x119   : > { %v5341_v4 = vpop.f32.mrb[7].mxu1 }
 0x11e   : > { %v5346_v25 = vpop.f32.mrb[8].mxu1 }
 0x11f   : > { %v5349_v28 = vpop.f32.mrb[9].mxu1 }
 0x120   : > { %v5352_v30 = vpop.f32.mrb[10].mxu1 }
 0x121   : > { %v5354_v32 = vpop.f32.mrb[11].mxu1 }
 0x126   : > { %v5359_v46 = vpop.f32.mrb[12].mxu1 }
 0x127   : > { %v5363_v50 = vpop.f32.mrb[13].mxu1 }
 0x128   : > { %v5370_v59 = vpop.f32.mrb[14].mxu1 }
 0x129   : > { %v5376_v63 = vpop.f32.mrb[15].mxu1 }
 0x12c   : > { %v1135_v33 = vpop.f32.mrb[0].mxu0 }
 0x12d   : > { %v1136_v34 = vadd.f32 %v1135_v33, %v656_v27  ;;  %v1137_v35 = vpop.f32.mrb[1].mxu0 }
 0x12e   : > { %v1138_v37 = vadd.f32 %v1137_v35, %v656_v27  ;;  %v1139_v39 = vpop.f32.mrb[2].mxu0 }
 0x12f   : > { %v5357_v40 = vadd.f32 %v1248_v12, %v1136_v34  ;;  %v1140_v42 = vadd.f32 %v1139_v39, %v661_v36  ;;  %v1141_v43 = vpop.f32.mrb[3].mxu0 }
 0x130   : > { %v5361_v47 = vadd.f32 %v1250_v14, %v1138_v37  ;;  %v1142_v49 = vadd.f32 %v1141_v43, %v661_v36 }
 0x131   : > { %v1327_v52 = vmul.f32 %v5357_v40, %v5357_v40  ;;  %v5368_v53 = vadd.f32 %v1252_v16, %v1140_v42 }
 0x132   : > { %v1328_v60 = vmul.f32 %v5361_v47, %v5361_v47  ;;  %v5374_v61 = vadd.f32 %v1254_v18, %v1142_v49 }
 0x133   : > { %v1359_v20 = vmul.f32 %v1327_v52, %v5357_v40  ;;  %v1329_v1 = vmul.f32 %v5368_v53, %v5368_v53 }
 0x134   : > { %v1360_v12 = vmul.f32 %v1328_v60, %v5361_v47  ;;  %v1330_v14 = vmul.f32 %v5374_v61, %v5374_v61  ;;  %v1145_v16 = vpop.f32.mrb[4].mxu0  ;;  %v5396_v60 = vpop.f32.mrb[16].mxu1 }
 0x135   : > { %v1391_v18 = vmul.f32 0.044715, %v1359_v20  ;;  %v1361_v7 = vmul.f32 %v1329_v1, %v5368_v53  ;;  %v1146_v27 = vadd.f32 %v1145_v16, %v5311_v38  ;;  %v1147_v33 = vpop.f32.mrb[5].mxu0 }
 0x136   : > { %v1392_v34 = vmul.f32 0.044715, %v1360_v12  ;;  %v1362_v35 = vmul.f32 %v1330_v14, %v5374_v61  ;;  %v1148_v36 = vadd.f32 %v1147_v33, %v5311_v38  ;;  %v1149_v37 = vpop.f32.mrb[6].mxu0  ;;  %v5402_v14 = vpop.f32.mrb[17].mxu1 }
 0x137   : > { %v1423_v39 = vadd.f32 %v1391_v18, %v5357_v40  ;;  %v1393_v42 = vmul.f32 0.044715, %v1361_v7  ;;  %v5393_v43 = vadd.f32 %v1258_v21, %v1146_v27  ;;  %v1150_v49 = vadd.f32 %v1149_v37, %v5313_v41  ;;  %v1151_v52 = vpop.f32.mrb[7].mxu0  ;;  %v5410_v27 = vpop.f32.mrb[18].mxu1 }
 0x138   : > { %v1424_v20 = vadd.f32 %v1392_v34, %v5361_v47  ;;  %v1394_v1 = vmul.f32 0.044715, %v1362_v35  ;;  %v5399_v16 = vadd.f32 %v1260_v22, %v1148_v36  ;;  %v1152_v12 = vadd.f32 %v1151_v52, %v5313_v41  ;;  %v5419_v35 = vpop.f32.mrb[19].mxu1  ;;  %v676_v37 = vpop.permute.xlu0 %675 }
 0x139   : > { %v1455_v38 = vmul.f32 0.7978846, %v1423_v39  ;;  %v1425_v18 = vadd.f32 %v1393_v42, %v5368_v53  ;;  %v1331_v21 = vmul.f32 %v5393_v43, %v5393_v43  ;;  %v5408_v7 = vadd.f32 %v5339_v24, %v1150_v49 }
 0x13a   : > { %v1456_v33 = vmul.f32 0.7978846, %v1424_v20  ;;  %v1426_v22 = vadd.f32 %v1394_v1, %v5374_v61  ;;  %v1332_v41 = vmul.f32 %v5399_v16, %v5399_v16  ;;  %v5417_v34 = vadd.f32 %v5341_v4, %v1152_v12 }
 0x13b   : > { %4646 = vtanh.f32 %v1455_v38  ;;  %v1363_v24 = vmul.f32 %v1331_v21, %v5393_v43  ;;  %v1333_v36 = vmul.f32 %v5408_v7, %v5408_v7  ;;  %v1457_v39 = vmul.f32 0.7978846, %v1425_v18 }
 0x13c   : > { %v1458_v42 = vmul.f32 0.7978846, %v1426_v22  ;;  %v1364_v49 = vmul.f32 %v1332_v41, %v5399_v16  ;;  %v1334_v52 = vmul.f32 %v5417_v34, %v5417_v34  ;;  %v1155_v20 = vpop.f32.mrb[8].mxu0  ;;  %4648 = vtanh.f32 %v1456_v33 }
 0x13d   : > { %v1395_v4 = vmul.f32 0.044715, %v1363_v24  ;;  %v1365_v1 = vmul.f32 %v1333_v36, %v5408_v7  ;;  %v1156_v12 = vadd.f32 %v1155_v20, %v676_v37  ;;  %v1157_v0 = vpop.f32.mrb[9].mxu0  ;;  %v5435_v20 = vpop.f32.mrb[20].mxu1 }
 0x13e   : > { %v1396_v38 = vmul.f32 0.044715, %v1364_v49  ;;  %v1366_v21 = vmul.f32 %v1334_v52, %v5417_v34  ;;  %v1158_v26 = vadd.f32 %v1157_v0, %v676_v37  ;;  %v1159_v45 = vpop.f32.mrb[10].mxu0  ;;  %4650 = vtanh.f32 %v1458_v42  ;;  %v5442_v23 = vpop.f32.mrb[21].mxu1 }
 0x13f   : > { %v1427_v18 = vadd.f32 %v1395_v4, %v5393_v43  ;;  %v1397_v22 = vmul.f32 0.044715, %v1365_v1  ;;  %v5432_v41 = vadd.f32 %v5346_v25, %v1156_v12  ;;  %v1160_v24 = vadd.f32 %v1159_v45, %v5315_v44  ;;  %v1161_v36 = vpop.f32.mrb[11].mxu0  ;;  %v1770_v25 = vld [vmem:[%s7772_s6] sm:$0x1]  ;;  %v5453_v12 = vpop.f32.mrb[22].mxu1 }
 0x140   : > { %v1428_v33 = vadd.f32 %v1396_v38, %v5399_v16  ;;  %v1398_v49 = vmul.f32 0.044715, %v1366_v21  ;;  %v5439_v37 = vadd.f32 %v5349_v28, %v1158_v26  ;;  %v1162_v42 = vadd.f32 %v1161_v36, %v5315_v44  ;;  %v5461_v38 = vpop.f32.mrb[23].mxu1  ;;  %1773 = vperm.xlu1 %4527, %v1770_v25  }
 0x141   : > { %v1459_v52 = vmul.f32 0.7978846, %v1427_v18  ;;  %v1429_v45 = vadd.f32 %v1397_v22, %v5408_v7  ;;  %v1335_v4 = vmul.f32 %v5432_v41, %v5432_v41  ;;  %v5451_v1 = vadd.f32 %v5352_v30, %v1160_v24  ;;  %v686_v22 = vpop.permute.xlu0 %685 }
 0x142   : > { %7943 = vst [vmem:[#allocation14_spill] sm:$0xff] %v5439_v37  ;;  %v1460_v26 = vmul.f32 0.7978846, %v1428_v33  ;;  %v1430_v44 = vadd.f32 %v1398_v49, %v5417_v34  ;;  %v1336_v28 = vmul.f32 %v5439_v37, %v5439_v37  ;;  %v5459_v0 = vadd.f32 %v5354_v32, %v1162_v42 }
 0x143   : > { %4652 = vtanh.f32 %v1457_v39  ;;  %v1461_v21 = vmul.f32 0.7978846, %v1429_v45  ;;  %v1367_v30 = vmul.f32 %v1335_v4, %v5432_v41  ;;  %v1337_v18 = vmul.f32 %v5451_v1, %v5451_v1  ;;  %v5475_v39 = vld [vmem:[%s7773_s7] sm:$0xff] }
 0x144   : > { %7944 = vst [vmem:[#allocation15_spill] sm:$0xff] %v5459_v0  ;;  %4654 = vtanh.f32 %v1459_v52  ;;  %v5467_v24 = vmul.f32 0.7978846, %v1430_v44  ;;  %v1368_v36 = vmul.f32 %v1336_v28, %v5439_v37  ;;  %v1338_v32 = vmul.f32 %v5459_v0, %v5459_v0  ;;  %v1165_v33 = vpop.f32.mrb[12].mxu0  ;;  %1782 = vperm.xlu1 %4527, %v5475_v39  }
 0x145   : > { %v4647_v49 = vpop.eup %4646  ;;  %v1399_v42 = vmul.f32 0.044715, %v1367_v30  ;;  %v1369_v45 = vmul.f32 %v1337_v18, %v5451_v1  ;;  %v1166_v25 = vadd.f32 %v1165_v33, %v686_v22  ;;  %v1167_v4 = vpop.f32.mrb[13].mxu0  ;;  %4656 = vtanh.f32 %v1460_v26 }
 0x146   : > { %4658 = vtanh.f32 %v1461_v21  ;;  %v1400_v52 = vmul.f32 0.044715, %v1368_v36  ;;  %v1370_v44 = vmul.f32 %v1338_v32, %v5459_v0  ;;  %v1168_v28 = vadd.f32 %v1167_v4, %v686_v22  ;;  %v1169_v2 = vpop.f32.mrb[14].mxu0  ;;  %v4649_v29 = vpop.eup %4648 }
 0x147   : > { %v1431_v10 = vadd.f32 %v1399_v42, %v5432_v41  ;;  %v1401_v9 = vmul.f32 0.044715, %v1369_v45  ;;  %v5481_v62 = vadd.f32 %v5359_v46, %v1166_v25  ;;  %v1170_v30 = vadd.f32 %v1169_v2, %v5317_v48  ;;  %v1171_v11 = vpop.f32.mrb[15].mxu0  ;;  %v5484_v18 = vpop.f32.mrb[24].mxu1  ;;  %v5497_v2 = vld [vmem:[%s7773_s7 + $0x10] sm:$0xff] }
 0x148   : > { %v4651_v26 = vpop.eup %4650  ;;  %v1432_v21 = vadd.f32 %v1400_v52, %v5439_v37  ;;  %v1402_v36 = vmul.f32 0.044715, %v1370_v44  ;;  %v5489_v22 = vadd.f32 %v5363_v50, %v1168_v28  ;;  %v1172_v32 = vadd.f32 %v1171_v11, %v5317_v48  ;;  %v5492_v33 = vpop.f32.mrb[25].mxu1  ;;  %1792 = vperm.xlu1 %4527, %v5497_v2  }
 0x149   : > { %7945 = vst [vmem:[#allocation16_spill] sm:$0xff] %v5481_v62  ;;  %v1463_v46 = vmul.f32 0.7978846, %v1431_v10  ;;  %v1433_v42 = vadd.f32 %v1401_v9, %v5451_v1  ;;  %v1339_v45 = vmul.f32 %v5481_v62, %v5481_v62  ;;  %v5503_v25 = vadd.f32 %v5370_v59, %v1170_v30  ;;  %v5505_v50 = vpop.f32.mrb[26].mxu1  ;;  %v696_v28 = vpop.permute.xlu0 %695 }
 0x14a   : > { %7946 = vst [vmem:[#allocation17_spill] sm:$0xff] %v5489_v22  ;;  %v1434_v11 = vadd.f32 %v1402_v36, %v5459_v0  ;;  %v1340_v48 = vmul.f32 %v5489_v22, %v5489_v22  ;;  %v5511_v4 = vadd.f32 %v5376_v63, %v1172_v32  ;;  %v5513_v52 = vadd.f32 1.0, %v4647_v49  ;;  %v5515_v10 = vpop.f32.mrb[27].mxu1 }
 0x14b   : > { %7947 = vst [vmem:[#allocation18_spill] sm:$0xff] %v5503_v25  ;;  %4660 = vtanh.f32 %v1463_v46  ;;  %v5517_v9 = vmul.f32 0.7978846, %v1432_v21  ;;  %v1371_v59 = vmul.f32 %v1339_v45, %v5481_v62  ;;  %v1341_v44 = vmul.f32 %v5503_v25, %v5503_v25 }
 0x14c   : > { %7948 = vst [vmem:[#allocation19_spill] sm:$0xff] %v5511_v4  ;;  %v1465_v30 = vmul.f32 0.7978846, %v1433_v42  ;;  %v5523_v36 = vmul.f32 0.7978846, %v1434_v11  ;;  %v1372_v63 = vmul.f32 %v1340_v48, %v5489_v22  ;;  %v1342_v49 = vmul.f32 %v5511_v4, %v5511_v4  ;;  %v1175_v32 = vpop.f32.mrb[16].mxu0  ;;  %4529 = vset.pattern.permute.xlu1 %v7949_v56 }
 0x14d   : > { %v4653_v46 = vpop.eup %4652  ;;  %v1403_v21 = vmul.f32 0.044715, %v1371_v59  ;;  %v1373_v8 = vmul.f32 %v1341_v44, %v5503_v25  ;;  %v1176_v45 = vadd.f32 %v1175_v32, %v696_v28  ;;  %v1177_v19 = vpop.f32.mrb[17].mxu0  ;;  %v1520_v15 = vadd.f32 1.0, %v4649_v29  ;;  %1877 = vperm.xlu1 %4529, %v5475_v39  }
 0x14e   : > { %v5529_v58 = vpop.eup %4654  ;;  %v1404_v6 = vmul.f32 0.044715, %v1372_v63  ;;  %v1374_v42 = vmul.f32 %v1342_v49, %v5511_v4  ;;  %v1178_v11 = vadd.f32 %v1177_v19, %v696_v28  ;;  %v1179_v57 = vpop.f32.mrb[18].mxu0  ;;  %v1522_v3 = vadd.f32 1.0, %v4651_v26 }
 0x14f   : > { %v5532_v48 = vpop.eup %4656  ;;  %v1435_v0 = vadd.f32 %v1403_v21, %v5481_v62  ;;  %v1405_v37 = vmul.f32 0.044715, %v1373_v8  ;;  %v5536_v59 = vadd.f32 %v5396_v60, %v1176_v45  ;;  %v1180_v44 = vadd.f32 %v1179_v57, %v5319_v51  ;;  %v1181_v32 = vpop.f32.mrb[19].mxu0 }
 0x150   : > { %v5539_v29 = vpop.f32.mrb[28].mxu1  ;;  %v5542_v63 = vpop.eup %4658  ;;  %v1436_v19 = vadd.f32 %v1404_v6, %v5489_v22  ;;  %v1406_v26 = vmul.f32 0.044715, %v1374_v42  ;;  %v5546_v28 = vadd.f32 %v5402_v14, %v1178_v11  ;;  %v1182_v8 = vadd.f32 %v1181_v32, %v5319_v51 }
 0x151   : > { %v5549_v49 = vpop.f32.mrb[29].mxu1  ;;  %v1467_v57 = vmul.f32 0.7978846, %v1435_v0  ;;  %v1437_v60 = vadd.f32 %v1405_v37, %v5503_v25  ;;  %v1343_v21 = vmul.f32 %v5536_v59, %v5536_v59  ;;  %v5556_v45 = vadd.f32 %v5410_v27, %v1180_v44  ;;  %1885 = vperm.xlu1 %4529, %v5497_v2  }
 0x152   : > { %v5558_v6 = vpop.f32.mrb[30].mxu1  ;;  %4662 = vtanh.f32 %v1465_v30  ;;  %v1438_v14 = vadd.f32 %v1406_v26, %v5511_v4  ;;  %v1344_v51 = vmul.f32 %v5546_v28, %v5546_v28  ;;  %v5564_v42 = vadd.f32 %v5419_v35, %v1182_v8 }
 0x153   : > { %7950 = vst [vmem:[#allocation20_spill] sm:$0xff] %v5558_v6  ;;  %v5566_v0 = vpop.f32.mrb[31].mxu1  ;;  %4664 = vtanh.f32 %v1467_v57  ;;  %v5568_v37 = vmul.f32 0.7978846, %v1436_v19  ;;  %v1375_v39 = vmul.f32 %v1343_v21, %v5536_v59  ;;  %v1345_v27 = vmul.f32 %v5556_v45, %v5556_v45 }
 0x154   : > { %7951 = vst [vmem:[#allocation21_spill] sm:$0xff] %v5566_v0  ;;  %v1469_v11 = vmul.f32 0.7978846, %v1437_v60  ;;  %v1376_v30 = vmul.f32 %v1344_v51, %v5546_v28  ;;  %v1346_v44 = vmul.f32 %v5564_v42, %v5564_v42  ;;  %v1552_v32 = vmul.f32 0.5, %v1520_v15  ;;  %v1185_v26 = vpop.f32.mrb[20].mxu0  ;;  %v706_v15 = vpop.permute.xlu0 %705 }
 0x155   : > { %v5577_v35 = vpop.eup %4660  ;;  %v5579_v8 = vmul.f32 0.7978846, %v1438_v14  ;;  %v1407_v19 = vmul.f32 0.044715, %v1375_v39  ;;  %v1377_v57 = vmul.f32 %v1345_v27, %v5556_v45  ;;  %v1554_v21 = vmul.f32 0.5, %v1522_v3  ;;  %v1187_v4 = vpop.f32.mrb[21].mxu0  ;;  %1889 = vperm.xlu1 %4529, %v5250_v31  }
 0x156   : > { %v1408_v22 = vmul.f32 0.044715, %v1376_v30  ;;  %v1378_v60 = vmul.f32 %v1346_v44, %v5564_v42  ;;  %v1584_v51 = vmul.f32 %v1552_v32, %v5361_v47  ;;  %v1521_v25 = vadd.f32 1.0, %v4653_v46  ;;  %v1189_v62 = vpop.f32.mrb[22].mxu0 }
 0x157   : > { %7952 = vst [vmem:[#allocation22_spill] sm:$0xff] %v5579_v8  ;;  %v1439_v0 = vadd.f32 %v1407_v19, %v5536_v59  ;;  %v1409_v2 = vmul.f32 0.044715, %v1377_v57  ;;  %v1586_v6 = vmul.f32 %v1554_v21, %v5374_v61  ;;  %v1551_v14 = vmul.f32 0.5, %v5513_v52  ;;  %v1191_v39 = vpop.f32.mrb[23].mxu0 }
 0x158   : > { %v1440_v27 = vadd.f32 %v1408_v22, %v5546_v28  ;;  %v1410_v3 = vmul.f32 0.044715, %v1378_v60  ;;  %v1553_v8 = vmul.f32 0.5, %v1521_v25  ;;  %v1186_v30 = vadd.f32 %v1185_v26, %v706_v15 }
 0x159   : > { %4666 = vtanh.f32 %v1469_v11  ;;  %v1471_v47 = vmul.f32 0.7978846, %v1439_v0  ;;  %v1441_v46 = vadd.f32 %v1409_v2, %v5556_v45  ;;  %v1620_v44 = vpack.c.bf16 %v1586_v6, %v1584_v51  ;;  %v716_v2 = vpop.permute.xlu0 %715 }
 0x15a   : > { %v1442_v32 = vadd.f32 %v1410_v3, %v5564_v42  ;;  %v1583_v19 = vmul.f32 %v1551_v14, %v5357_v40  ;;  %v1585_v61 = vmul.f32 %v1553_v8, %v5368_v53  ;;  %v5594_v52 = vadd.f32 %v5435_v20, %v1186_v30 }
 0x15b   : > { %v5596_v22 = vmul.f32 0.7978846, %v1440_v27  ;;  %v1473_v25 = vmul.f32 0.7978846, %v1441_v46  ;;  %1663 = vmatprep.subr.bf16.mxu1 %v1620_v44  ;;  %v1188_v26 = vadd.f32 %v1187_v4, %v706_v15  ;;  %v1190_v31 = vadd.f32 %v1189_v62, %v5321_v54 }
 0x15c   : > { %v5599_v0 = vpop.eup %4662  ;;  %4668 = vtanh.f32 %v1471_v47  ;;  %v1619_v6 = vpack.c.bf16 %v1585_v61, %v1583_v19  ;;  %v1347_v11 = vmul.f32 %v5594_v52, %v5594_v52  ;;  %v1192_v40 = vadd.f32 %v1191_v39, %v5321_v54  ;;  %v1195_v53 = vpop.f32.mrb[24].mxu0 }
 0x15d   : > { %v7953_v8 = vmov 3   ;;  %v5605_v20 = vpop.eup %4664  ;;  %v5607_v57 = vmul.f32 0.7978846, %v1442_v32  ;;  %v5610_v4 = vadd.f32 %v5442_v23, %v1188_v26  ;;  %v5613_v62 = vadd.f32 %v5453_v12, %v1190_v31  ;;  %v1197_v60 = vpop.f32.mrb[25].mxu0 }
 0x15e   : > { %4531 = vset.pattern.permute.xlu1 %v7953_v8  ;;  %v1524_v21 = vadd.f32 1.0, %v5532_v48  ;;  %1664 = vmatpush1.bf16.msra.mxu1 %v1619_v6  ;;  %v1379_v54 = vmul.f32 %v1347_v11, %v5594_v52  ;;  %v5619_v51 = vadd.f32 %v5461_v38, %v1192_v40  ;;  %4670 = vtanh.f32 %v5467_v24  ;;  %v1199_v23 = vpop.f32.mrb[26].mxu0 }
 0x15f   : > { %1921 = vperm.xlu1 %4531, %v5151_v5   ;;  %v1523_v15 = vadd.f32 1.0, %v5529_v58  ;;  %4672 = vtanh.f32 %v1473_v25  ;;  %v1348_v12 = vmul.f32 %v5610_v4, %v5610_v4  ;;  %v1349_v48 = vmul.f32 %v5613_v62, %v5613_v62  ;;  %v1201_v14 = vpop.f32.mrb[27].mxu0 }
 0x160   : > { %v1525_v5 = vadd.f32 1.0, %v5542_v63  ;;  %v1411_v39 = vmul.f32 0.044715, %v1379_v54  ;;  %v1350_v38 = vmul.f32 %v5619_v51, %v5619_v51  ;;  %v1196_v24 = vadd.f32 %v1195_v53, %v716_v2 }
 0x161   : > { %v1555_v27 = vmul.f32 0.5, %v1523_v15  ;;  %v1380_v58 = vmul.f32 %v1348_v12, %v5610_v4  ;;  %v1381_v3 = vmul.f32 %v1349_v48, %v5613_v62  ;;  %v1556_v30 = vmul.f32 0.5, %v1524_v21 }
 0x162   : > { %v1557_v47 = vmul.f32 0.5, %v1525_v5  ;;  %v1443_v46 = vadd.f32 %v1411_v39, %v5594_v52  ;;  %v1382_v44 = vmul.f32 %v1350_v38, %v5619_v51  ;;  %v5639_v32 = vadd.f32 %v5484_v18, %v1196_v24 }
 0x163   : > { %1925 = vperm.xlu1 %4531, %v5196_v17   ;;  %v5636_v63 = vmul.f32 %v1555_v27, %v5393_v43  ;;  %v5641_v19 = vpop.eup %4666  ;;  %v1412_v61 = vmul.f32 0.044715, %v1380_v58  ;;  %v1413_v25 = vmul.f32 0.044715, %v1381_v3  ;;  %v1198_v31 = vadd.f32 %v1197_v60, %v716_v2 }
 0x164   : > { %v5644_v26 = vmul.f32 %v1557_v47, %v5408_v7  ;;  %v1475_v6 = vmul.f32 0.7978846, %v1443_v46  ;;  %v1414_v11 = vmul.f32 0.044715, %v1382_v44  ;;  %v1351_v40 = vmul.f32 %v5639_v32, %v5639_v32  ;;  %v1205_v43 = vpop.f32.mrb[28].mxu0 }
 0x165   : > { %v1200_v53 = vadd.f32 %v1199_v23, %v5323_v55  ;;  %v1444_v8 = vadd.f32 %v1412_v61, %v5610_v4  ;;  %v1445_v18 = vadd.f32 %v1413_v25, %v5613_v62  ;;  %v5654_v54 = vadd.f32 %v5492_v33, %v1198_v31  ;;  %v1207_v7 = vpop.f32.mrb[29].mxu0 }
 0x166   : > { %v1621_v21 = vpack.c.bf16 %v5644_v26, %v5636_v63  ;;  %v5657_v60 = vpop.eup %4668  ;;  %4674 = vtanh.f32 %v1475_v6  ;;  %v1588_v15 = vmul.f32 %v1556_v30, %v5399_v16  ;;  %v1383_v23 = vmul.f32 %v1351_v40, %v5639_v32  ;;  %v1209_v12 = vpop.f32.mrb[30].mxu0  ;;  %v4743_v63 = vld [vmem:[%s7774_s8 + $0x18] sm:$0xff] }
 0x167   : > { %4532 = vset.pattern.permute.xlu1 %v7949_v56  ;;  %v5662_v2 = vadd.f32 %v5505_v50, %v1200_v53  ;;  %v1477_v48 = vmul.f32 0.7978846, %v1445_v18  ;;  %v1446_v33 = vadd.f32 %v1414_v11, %v5619_v51  ;;  %v1352_v5 = vmul.f32 %v5654_v54, %v5654_v54  ;;  %v1211_v39 = vpop.f32.mrb[31].mxu0 }
 0x168   : > { %590 = vperm.xlu1 %4532, %v5196_v17   ;;  %v1202_v56 = vadd.f32 %v1201_v14, %v5323_v55  ;;  %v4671_v38 = vpop.eup %4670  ;;  %v5669_v27 = vmul.f32 0.7978846, %v1444_v8  ;;  %v1415_v16 = vmul.f32 0.044715, %v1383_v23  ;;  %4676 = vtanh.f32 %v5517_v9  ;;  %v726_v9 = vpop.permute.xlu0 %725 }
 0x169   : > { %v1353_v50 = vmul.f32 %v5662_v2, %v5662_v2  ;;  %v5674_v24 = vpop.eup %4672  ;;  %4678 = vtanh.f32 %v1477_v48  ;;  %v1526_v17 = vadd.f32 1.0, %v4671_v38  ;;  %v1384_v58 = vmul.f32 %v1352_v5, %v5654_v54 }
 0x16a   : > { %v5678_v3 = vadd.f32 %v5515_v10, %v1202_v56  ;;  %v1447_v55 = vadd.f32 %v1415_v16, %v5639_v32  ;;  %4680 = vtanh.f32 %v5523_v36  ;;  %v1527_v30 = vadd.f32 1.0, %v5577_v35 }
 0x16b   : > { %v1385_v14 = vmul.f32 %v1353_v50, %v5662_v2  ;;  %v7954_v47 = vmov 4   ;;  %v1558_v46 = vmul.f32 0.5, %v1526_v17  ;;  %v1416_v44 = vmul.f32 0.044715, %v1384_v58  ;;  %v7956_v17 = vld [vmem:[#allocation20_spill] sm:$0xff] }
 0x16c   : > { %4534 = vset.pattern.permute.xlu1 %v7954_v47  ;;  %v1354_v61 = vmul.f32 %v5678_v3, %v5678_v3  ;;  %v1529_v25 = vadd.f32 1.0, %v5599_v0  ;;  %v1479_v10 = vmul.f32 0.7978846, %v1447_v55  ;;  %v1559_v6 = vmul.f32 0.5, %v1527_v30  ;;  %v7957_v30 = vld [vmem:[#allocation21_spill] sm:$0xff]  ;;  %v7958_v47 = vld [vmem:[#allocation22_spill] sm:$0xff] }
 0x16d   : > { %1997 = vperm.xlu1 %4534, %v5179_v13   ;;  %v1417_v31 = vmul.f32 0.044715, %v1385_v14  ;;  %v1206_v11 = vadd.f32 %v1205_v43, %v726_v9  ;;  %v1590_v36 = vmul.f32 %v1558_v46, %v5417_v34  ;;  %v1448_v35 = vadd.f32 %v1416_v44, %v5654_v54  ;;  %v4742_v43 = vld [vmem:[%s7774_s8 + $0x8] sm:$0xff] }
 0x16e   : > { %v1386_v40 = vmul.f32 %v1354_v61, %v5678_v3  ;;  %v1561_v53 = vmul.f32 0.5, %v1529_v25  ;;  %v5692_v8 = vmul.f32 0.7978846, %v1446_v33  ;;  %4682 = vtanh.f32 %v1479_v10 }
 0x16f   : > { %v1449_v18 = vadd.f32 %v1417_v31, %v5662_v2  ;;  %v5696_v0 = vadd.f32 %v5539_v29, %v1206_v11  ;;  %v1622_v13 = vpack.c.bf16 %v1590_v36, %v1588_v15  ;;  %v5699_v48 = vmul.f32 %v1559_v6, %v5432_v41  ;;  %v7955_v15 = vld [vmem:[#allocation8_spill] sm:$0xff] }
 0x170   : > { %v1418_v23 = vmul.f32 0.044715, %v1386_v40  ;;  %v5702_v34 = vmul.f32 %v1561_v53, %v5451_v1  ;;  %v5707_v33 = vpop.eup %4674  ;;  %v1208_v56 = vadd.f32 %v1207_v7, %v726_v9  ;;  %v1210_v38 = vadd.f32 %v1209_v12, %v7955_v15  ;;  %v7959_v40 = vld [vmem:[#allocation14_spill] sm:$0xff] }
 0x171   : > { %2001 = vperm.xlu1 %4534, %v4742_v43   ;;  %v1481_v5 = vmul.f32 0.7978846, %v1449_v18  ;;  %v1355_v29 = vmul.f32 %v5696_v0, %v5696_v0  ;;  %1665 = vmatprep.subr.bf16.mxu1 %v1622_v13  ;;  %v5712_v41 = vmul.f32 0.7978846, %v1448_v35  ;;  %v1212_v16 = vadd.f32 %v1211_v39, %v7955_v15  ;;  %v7960_v43 = vld [vmem:[#allocation16_spill] sm:$0xff]  ;;  %v7962_v15 = vld [vmem:[#allocation18_spill] sm:$0xff] }
 0x172   : > { %v1623_v1 = vpack.c.bf16 %v5702_v34, %v5699_v48  ;;  %4684 = vtanh.f32 %v5568_v37  ;;  %v4677_v50 = vpop.eup %4676  ;;  %1666 = vmatpush1.bf16.msra.mxu1 %v1621_v21  ;;  %v5723_v12 = vadd.f32 %v5549_v49, %v1208_v56  ;;  %v5726_v58 = vadd.f32 %v7956_v17, %v1210_v38 }
 0x173   : > { %4686 = vtanh.f32 %v1481_v5  ;;  %v1387_v7 = vmul.f32 %v1355_v29, %v5696_v0  ;;  %v4679_v55 = vpop.eup %4678  ;;  %v1450_v14 = vadd.f32 %v1418_v23, %v5678_v3  ;;  %v1528_v39 = vadd.f32 1.0, %v4677_v50 }
 0x174   : > { %v5730_v37 = vadd.f32 %v7957_v30, %v1212_v16  ;;  %4688 = vtanh.f32 %v7958_v47  ;;  %v4681_v26 = vpop.eup %4680  ;;  %v1356_v21 = vmul.f32 %v5723_v12, %v5723_v12  ;;  %v1357_v9 = vmul.f32 %v5726_v58, %v5726_v58 }
 0x175   : > { %2009 = vperm.xlu1 %4534, %v4743_v63   ;;  %v1419_v49 = vmul.f32 0.044715, %v1387_v7  ;;  %v1531_v46 = vadd.f32 1.0, %v5605_v20  ;;  %v1530_v44 = vadd.f32 1.0, %v4681_v26  ;;  %v1560_v61 = vmul.f32 0.5, %v1528_v39 }
 0x176   : > { %v1358_v25 = vmul.f32 %v5730_v37, %v5730_v37  ;;  %v1533_v10 = vadd.f32 1.0, %v5641_v19  ;;  %v1388_v6 = vmul.f32 %v1356_v21, %v5723_v12  ;;  %v1389_v11 = vmul.f32 %v1357_v9, %v5726_v58  ;;  %v7961_v19 = vld [vmem:[#allocation15_spill] sm:$0xff] }
 0x177   : > { %v1451_v31 = vadd.f32 %v1419_v49, %v5696_v0  ;;  %v1563_v36 = vmul.f32 0.5, %v1531_v46  ;;  %v1562_v35 = vmul.f32 0.5, %v1530_v44  ;;  %v1592_v53 = vmul.f32 %v1560_v61, %v7959_v40 }
 0x178   : > { %v1390_v18 = vmul.f32 %v1358_v25, %v5730_v37  ;;  %v1565_v20 = vmul.f32 0.5, %v1533_v10  ;;  %v4683_v13 = vpop.eup %4682  ;;  %v1420_v48 = vmul.f32 0.044715, %v1388_v6  ;;  %v1421_v34 = vmul.f32 0.044715, %v1389_v11 }
 0x179   : > { %v1483_v23 = vmul.f32 0.7978846, %v1451_v31  ;;  %v5750_v5 = vmul.f32 %v1563_v36, %v7960_v43  ;;  %v1594_v29 = vmul.f32 %v1562_v35, %v7961_v19  ;;  %4690 = vtanh.f32 %v5596_v22  ;;  %v7964_v35 = vld [vmem:[#allocation19_spill] sm:$0xff] }
 0x17a   : > { %v1422_v56 = vmul.f32 0.044715, %v1390_v18  ;;  %v1597_v38 = vmul.f32 %v1565_v20, %v7962_v15  ;;  %v1452_v16 = vadd.f32 %v1420_v48, %v5723_v12  ;;  %v1453_v50 = vadd.f32 %v1421_v34, %v5726_v58 }
 0x17b   : > { %4692 = vtanh.f32 %v1483_v23  ;;  %v1535_v7 = vadd.f32 1.0, %v5657_v60  ;;  %v1624_v39 = vpack.c.bf16 %v1594_v29, %v1592_v53  ;;  %v1482_v26 = vmul.f32 0.7978846, %v1450_v14 }
 0x17c   : > { %v4685_v17 = vpop.eup %4684  ;;  %v1454_v30 = vadd.f32 %v1422_v56, %v5730_v37  ;;  %v1625_v47 = vpack.c.bf16 %v1597_v38, %v5750_v5  ;;  %4694 = vtanh.f32 %v5607_v57  ;;  %v1485_v49 = vmul.f32 0.7978846, %v1453_v50 }
 0x17d   : > { %v4687_v63 = vpop.eup %4686  ;;  %v1532_v21 = vadd.f32 1.0, %v4685_v17  ;;  %v1537_v22 = vadd.f32 1.0, %v5674_v24  ;;  %1667 = vmatprep.subr.bf16.mxu1 %v1624_v39  ;;  %v1484_v46 = vmul.f32 0.7978846, %v1452_v16  ;;  %v1567_v44 = vmul.f32 0.5, %v1535_v7 }
 0x17e   : > { %v4689_v9 = vpop.eup %4688  ;;  %4696 = vtanh.f32 %v5669_v27  ;;  %v1539_v60 = vadd.f32 1.0, %v5707_v33  ;;  %1668 = vmatpush1.bf16.msra.mxu1 %v1623_v1  ;;  %v1486_v57 = vmul.f32 0.7978846, %v1454_v30  ;;  %v1541_v14 = vadd.f32 1.0, %v4679_v55  ;;  %v7963_v27 = vld [vmem:[#allocation17_spill] sm:$0xff] }
 0x17f   : > { %4698 = vtanh.f32 %v1485_v49  ;;  %v1534_v61 = vadd.f32 1.0, %v4689_v9  ;;  %v1564_v25 = vmul.f32 0.5, %v1532_v21  ;;  %v1569_v10 = vmul.f32 0.5, %v1537_v22 }
 0x180   : > { %4700 = vtanh.f32 %v5692_v8  ;;  %v1571_v31 = vmul.f32 0.5, %v1539_v60  ;;  %v1599_v24 = vmul.f32 %v1567_v44, %v5536_v59  ;;  %v1573_v33 = vmul.f32 0.5, %v1541_v14 }
 0x181   : > { %v1566_v6 = vmul.f32 0.5, %v1534_v61  ;;  %v1601_v11 = vmul.f32 %v1569_v10, %v5556_v45  ;;  %4702 = vtanh.f32 %v5712_v41  ;;  %v1596_v36 = vmul.f32 %v1564_v25, %v7963_v27 }
 0x182   : > { %4704 = vtanh.f32 %v1482_v26  ;;  %v1543_v1 = vadd.f32 1.0, %v4683_v13  ;;  %v1545_v18 = vadd.f32 1.0, %v4687_v63  ;;  %v1603_v55 = vmul.f32 %v1571_v31, %v5594_v52 }
 0x183   : > { %v1598_v40 = vmul.f32 %v1566_v6, %v7964_v35  ;;  %v1627_v53 = vpack.c.bf16 %v1601_v11, %v1599_v24  ;;  %4706 = vtanh.f32 %v1484_v46  ;;  %v4691_v8 = vpop.eup %4690  ;;  %v1605_v20 = vmul.f32 %v1573_v33, %v5613_v62  ;;  %v1641_v35 = vpop.permute.xlu0 %1640 }
 0x184   : > { %v1575_v59 = vmul.f32 0.5, %v1543_v1  ;;  %4708 = vtanh.f32 %v1486_v57  ;;  %v1536_v41 = vadd.f32 1.0, %v4691_v8  ;;  %v1577_v48 = vmul.f32 0.5, %v1545_v18 }
 0x185   : > { %v4693_v45 = vpop.eup %4692  ;;  %v1626_v23 = vpack.c.bf16 %v1598_v40, %v1596_v36  ;;  %v1629_v43 = vpack.c.bf16 %v1605_v20, %v1603_v55 }
 0x186   : > { %v4695_v34 = vpop.eup %4694  ;;  %v1547_v5 = vadd.f32 1.0, %v4693_v45  ;;  %v1568_v19 = vmul.f32 0.5, %v1536_v41  ;;  %v1607_v29 = vmul.f32 %v1575_v59, %v5639_v32  ;;  %v1609_v56 = vmul.f32 %v1577_v48, %v5662_v2 }
 0x187   : > { %1669 = vmatprep.subr.bf16.mxu1 %v1626_v23  ;;  %v1538_v13 = vadd.f32 1.0, %v4695_v34 }
 0x188   : > { %v4697_v15 = vpop.eup %4696  ;;  %1670 = vmatpush1.bf16.msra.mxu1 %v1625_v47  ;;  %v1631_v16 = vpack.c.bf16 %v1609_v56, %v1607_v29  ;;  %v1579_v17 = vmul.f32 0.5, %v1547_v5  ;;  %v1600_v30 = vmul.f32 %v1568_v19, %v5546_v28 }
 0x189   : > { %v4699_v52 = vpop.eup %4698  ;;  %v1570_v62 = vmul.f32 0.5, %v1538_v13  ;;  %v1540_v38 = vadd.f32 1.0, %v4697_v15 }
 0x18a   : > { %v4701_v50 = vpop.eup %4700  ;;  %v1549_v7 = vadd.f32 1.0, %v4699_v52  ;;  %v1611_v25 = vmul.f32 %v1579_v17, %v5696_v0 }
 0x18b   : > { %v4703_v39 = vpop.eup %4702  ;;  %v1602_v63 = vmul.f32 %v1570_v62, %v5564_v42  ;;  %v1542_v26 = vadd.f32 1.0, %v4701_v50  ;;  %v1572_v49 = vmul.f32 0.5, %v1540_v38 }
 0x18c   : > { %v4705_v21 = vpop.eup %4704  ;;  %v1544_v32 = vadd.f32 1.0, %v4703_v39  ;;  %v1581_v22 = vmul.f32 0.5, %v1549_v7 }
 0x18d   : > { %v4707_v2 = vpop.eup %4706  ;;  %v1628_v9 = vpack.c.bf16 %v1602_v63, %v1600_v30  ;;  %v1574_v47 = vmul.f32 0.5, %v1542_v26  ;;  %v1546_v46 = vadd.f32 1.0, %v4705_v21  ;;  %v1604_v28 = vmul.f32 %v1572_v49, %v5610_v4 }
 0x18e   : > { %v4709_v44 = vpop.eup %4708  ;;  %v1576_v60 = vmul.f32 0.5, %v1544_v32  ;;  %v1548_v61 = vadd.f32 1.0, %v4707_v2  ;;  %v1613_v10 = vmul.f32 %v1581_v22, %v5726_v58 }
 0x18f   : > { %1671 = vmatprep.subr.bf16.mxu1 %v1628_v9  ;;  %v1606_v42 = vmul.f32 %v1574_v47, %v5619_v51  ;;  %v1578_v57 = vmul.f32 0.5, %v1546_v46  ;;  %v1550_v14 = vadd.f32 1.0, %v4709_v44  ;;  %v4640_v51 = vld [vmem:[%s7770_s4] sm:$0xff]  }
 0x190   : > { %1672 = vmatpush1.bf16.msra.mxu1 %v1627_v53  ;;  %v1580_v31 = vmul.f32 0.5, %v1548_v61  ;;  %v1633_v6 = vpack.c.bf16 %v1613_v10, %v1611_v25  ;;  %v1608_v11 = vmul.f32 %v1576_v60, %v5654_v54  ;;  %v7965_v54 = vmov 0   ;;  %v1649_v53 = vpop.permute.xlu0 %1648 }
 0x191   : > { %v1630_v24 = vpack.c.bf16 %v1606_v42, %v1604_v28  ;;  %v1610_v27 = vmul.f32 %v1578_v57, %v5678_v3  ;;  %v1582_v36 = vmul.f32 0.5, %v1550_v14  ;;  %v4641_v3 = vld [vmem:[%s7770_s4 + $0x8] sm:$0xff]  }
 0x192   : > { %v1612_v58 = vmul.f32 %v1580_v31, %v5723_v12  ;;  %v1637_v12 = vpop.permute.xlu1 %1636 }
 0x193   : > { %1673 = vmatprep.subr.bf16.mxu1 %v1630_v24  ;;  %v1632_v0 = vpack.c.bf16 %v1610_v27, %v1608_v11  ;;  %v1614_v33 = vmul.f32 %v1582_v36, %v5730_v37 }
 0x194   : > { %1674 = vmatpush1.bf16.msra.mxu1 %v1629_v43  ;;  %v5791_v8 = vpop.permute.xlu0 %555 }
 0x195   : > { %1675 = vmatprep.subr.bf16.mxu1 %v1632_v0  ;;  %v1634_v4 = vpack.c.bf16 %v1614_v33, %v1612_v58 }
 0x196   : > { %v1645_v37 = vpop.permute.xlu1 %1644 }
 0x198   : > { %1676 = vmatpush1.bf16.msra.mxu1 %v1631_v16  ;;  %v5793_v20 = vpop.permute.xlu0 %565 }
 0x199   : > { %1677 = vmatprep.subr.bf16.mxu1 %v1634_v4 }
 0x19a   : > { %v1727_v1 = vpop.permute.xlu1 %1726 }
 0x19c   : > { %1678 = vmatpush1.bf16.msra.mxu1 %v1633_v6  ;;  %v1732_v45 = vpop.permute.xlu0 %1731 }
 0x19e   : > { %v1826_v40 = vpop.permute.xlu1 %1825 }
 0x19f   : > { %1696 = vmatmul.mubr.bf16.vlgmr.msra.gmra.mrb[32].mxu1 %v4640_v51 }
 0x1a0   : > { %1705 = vmatprep.mubr.bf16.mxu1 %v7965_v54  ;;  %v1742_v41 = vpop.permute.xlu0 %1741 }
 0x1a2   : > { %v1830_v18 = vpop.permute.xlu1 %1829 }
 0x1a4   : > { %v5797_v52 = vpop.permute.xlu0 %1869 }
 0x1a6   : > { %v1737_v55 = vpop.permute.xlu1 %1736 }
 0x1a7   : > { %1706 = vmatmul.mubr.bf16.gmra.mrb[36].mxu1 %v4641_v3 }
 0x1a8   : > { %v5801_v44 = vpop.permute.xlu0 %1787 }
 0x1aa   : > { %v1834_v59 = vpop.permute.xlu1 %1833 }
 0x1ac   : > { %v1798_v3 = vpop.permute.xlu0 %1797 }
 0x1ae   : > { %v1838_v23 = vpop.permute.xlu1 %1837 }
 0x1bf   : > { %v5795_v5 = vpop.permute.xlu1 %1773 }
 0x1c3   : > { %v5799_v49 = vpop.permute.xlu1 %1782 }
 0x1c7   : > { %v5803_v11 = vpop.permute.xlu1 %1792 }
 0x272   : > { %v1697_v48 = vpop.f32.mrb[32].mxu1 }
 0x273   : > { %v1698_v34 = vadd.f32 %v1697_v48, %v1637_v12  ;;  %v1699_v43 = vpop.f32.mrb[33].mxu1  ;;  %v1800_v48 = vlaneseq }
 0x274   : > { %v1700_v13 = vadd.f32 %v1699_v43, %v1637_v12  ;;  %v1701_v19 = vpop.f32.mrb[34].mxu1 }
 0x275   : > { %v1702_v29 = vadd.f32 %v1701_v19, %v1641_v35  ;;  %v1703_v56 = vpop.f32.mrb[35].mxu1  ;;  %v1744_v62 = vmul.f32 %v1727_v1, %v1698_v34  ;;  %v1840_v38 = vmul.f32 %v1826_v40, %v1698_v34 }
 0x276   : > { %v1704_v15 = vadd.f32 %v1703_v56, %v1641_v35  ;;  %v1745_v7 = vmul.f32 %v1727_v1, %v1700_v13  ;;  %v1841_v17 = vmul.f32 %v1826_v40, %v1700_v13 }
 0x277   : > { %v1746_v16 = vmul.f32 %v1732_v45, %v1702_v29  ;;  %v1842_v50 = vmul.f32 %v1830_v18, %v1702_v29 }
 0x278   : > { %v1747_v39 = vmul.f32 %v1732_v45, %v1704_v15  ;;  %v1843_v30 = vmul.f32 %v1830_v18, %v1704_v15  ;;  %v1878_v18 = vpop.permute.xlu1 %1877 }
 0x279   : > { %v1752_v63 = vadd.f32 %v1746_v16, %v1744_v62  ;;  %v1848_v26 = vadd.f32 %v1842_v50, %v1840_v38  ;;  %v1801_v62 = vshrl.u32 %v1800_v48, 7 }
 0x27a   : > { %v1761_v21 = vadd.f32 %v1747_v39, %v1745_v7  ;;  %v1857_v32 = vadd.f32 %v1843_v30, %v1841_v17  ;;  %v1707_v22 = vpop.f32.mrb[36].mxu1 }
 0x27b   : > { %v1708_v2 = vadd.f32 %v1707_v22, %v1645_v37  ;;  %v1709_v9 = vpop.f32.mrb[37].mxu1 }
 0x27c   : > { %v1710_v47 = vadd.f32 %v1709_v9, %v1645_v37  ;;  %v1711_v46 = vpop.f32.mrb[38].mxu1  ;;  %v1886_v16 = vpop.permute.xlu1 %1885 }
 0x27d   : > { %v1748_v60 = vmul.f32 %v1737_v55, %v1708_v2  ;;  %v1844_v61 = vmul.f32 %v1834_v59, %v1708_v2  ;;  %v1712_v25 = vadd.f32 %v1711_v46, %v1649_v53  ;;  %v1713_v10 = vpop.f32.mrb[39].mxu1 }
 0x27e   : > { %v1749_v28 = vmul.f32 %v1737_v55, %v1710_v47  ;;  %v1845_v42 = vmul.f32 %v1834_v59, %v1710_v47  ;;  %v1714_v57 = vadd.f32 %v1713_v10, %v1649_v53 }
 0x27f   : > { %v1753_v14 = vadd.f32 %v1752_v63, %v1748_v60  ;;  %v1849_v31 = vadd.f32 %v1848_v26, %v1844_v61  ;;  %v1750_v6 = vmul.f32 %v1742_v41, %v1712_v25  ;;  %v1846_v24 = vmul.f32 %v1838_v23, %v1712_v25 }
 0x280   : > { %v1762_v27 = vadd.f32 %v1761_v21, %v1749_v28  ;;  %v1858_v36 = vadd.f32 %v1857_v32, %v1845_v42  ;;  %v1751_v0 = vmul.f32 %v1742_v41, %v1714_v57  ;;  %v1847_v58 = vmul.f32 %v1838_v23, %v1714_v57  ;;  %v5805_v23 = vpop.permute.xlu0 %582  ;;  %v1890_v60 = vpop.permute.xlu1 %1889 }
 0x281   : > { %v1754_v33 = vadd.f32 %v1753_v14, %v1750_v6  ;;  %v1850_v4 = vadd.f32 %v1849_v31, %v1846_v24  ;;  %v1802_v32 = vsub.s32 0, %v1801_v62 }
 0x282   : > { %v1763_v51 = vadd.f32 %v1762_v27, %v1751_v0  ;;  %v1859_v54 = vadd.f32 %v1858_v36, %v1847_v58 }
 0x283   : > { %v1755_v12 = vrot.slane %v1754_v33, 4  ;;  %v1851_v37 = vrot.slane %v1850_v4, 4 }
 0x284   : > { %v1764_v1 = vrot.slane %v1763_v51, 4  ;;  %v1860_v35 = vrot.slane %v1859_v54, 4  ;;  %v1882_v26 = vpop.permute.xlu0 %1881 }
 0x285   : > { %v1756_v40 = vadd.f32 %v1755_v12, %v1754_v33  ;;  %v1852_v53 = vadd.f32 %v1851_v37, %v1850_v4 }
 0x286   : > { %v1765_v55 = vadd.f32 %v1764_v1, %v1763_v51  ;;  %v1861_v59 = vadd.f32 %v1860_v35, %v1859_v54  ;;  %v1922_v54 = vpop.permute.xlu1 %1921 }
 0x287   : > { %v1757_v45 = vrot.slane %v1756_v40, 2  ;;  %v1853_v34 = vrot.slane %v1852_v53, 2 }
 0x288   : > { %v1766_v43 = vrot.slane %v1765_v55, 2  ;;  %v1862_v41 = vrot.slane %v1861_v59, 2  ;;  %v1918_v14 = vpop.permute.xlu0 %1917 }
 0x289   : > { %v1758_v13 = vadd.f32 %v1757_v45, %v1756_v40  ;;  %v1854_v19 = vadd.f32 %v1853_v34, %v1852_v53 }
 0x28a   : > { %v1767_v29 = vadd.f32 %v1766_v43, %v1765_v55  ;;  %v1863_v56 = vadd.f32 %v1862_v41, %v1861_v59 }
 0x28b   : > { %v1759_v15 = vrot.slane %v1758_v13, 1  ;;  %v1855_v38 = vrot.slane %v1854_v19, 1 }
 0x28c   : > { %v1768_v50 = vrot.slane %v1767_v29, 1  ;;  %v1864_v7 = vrot.slane %v1863_v56, 1  ;;  %v1930_v48 = vpop.permute.xlu0 %1929 }
 0x28d   : > { %v1760_v17 = vadd.f32 %v1759_v15, %v1758_v13  ;;  %v1856_v39 = vadd.f32 %v1855_v38, %v1854_v19  ;;  %v1926_v38 = vpop.permute.xlu1 %1925 }
 0x28e   : > { %v1769_v30 = vadd.f32 %v1768_v50, %v1767_v29  ;;  %v1865_v63 = vadd.f32 %v1864_v7, %v1863_v56 }
 0x28f   : > { %v1776_v21 = vadd.f32 %v5795_v5, %v1760_v17  ;;  %v1872_v22 = vadd.f32 %v5797_v52, %v1856_v39 }
 0x290   : > { %v1777_v2 = vadd.f32 %v5795_v5, %v1769_v30  ;;  %v1873_v9 = vadd.f32 %v5797_v52, %v1865_v63 }
 0x291   : > { %v1778_v47 = vmax.f32 %v1776_v21, 0.0  ;;  %v1874_v46 = vmax.f32 %v1872_v22, 0.0 }
 0x292   : > { %v1779_v61 = vmax.f32 %v1777_v2, 0.0  ;;  %v1875_v25 = vmax.f32 %v1873_v9, 0.0  ;;  %v591_v2 = vpop.permute.xlu1 %590 }
 0x293   : > { %v1803_v10 = vrot.slane %v1778_v47, %v1802_v32  ;;  %v1895_v28 = vrot.slane %v1874_v46, %v1802_v32  ;;  %v7966_v46 = vld [vmem:[#allocation2_spill] sm:$0xff] }
 0x294   : > { %v1807_v42 = vrot.slane %v1779_v61, %v1802_v32  ;;  %v1899_v57 = vrot.slane %v1875_v25, %v1802_v32 }
 0x295   : > { %v1808_v31 = vmul.f32 %v1803_v10, %v5799_v49  ;;  %v1900_v6 = vmul.f32 %v1895_v28, %v1878_v18  ;;  %v1810_v24 = vmul.f32 %v1803_v10, %v5801_v44  ;;  %v1902_v27 = vmul.f32 %v1895_v28, %v1882_v26 }
 0x296   : > { %v1809_v5 = vmul.f32 %v1807_v42, %v5799_v49  ;;  %v1901_v36 = vmul.f32 %v1899_v57, %v1878_v18  ;;  %v1811_v52 = vmul.f32 %v1807_v42, %v5801_v44  ;;  %v1903_v0 = vmul.f32 %v1899_v57, %v1882_v26 }
 0x297   : > { %v1908_v58 = vadd.f32 %v1900_v6, %v1808_v31  ;;  %v1910_v33 = vadd.f32 %v1902_v27, %v1810_v24  ;;  %v1814_v4 = vmul.f32 %v1803_v10, %v1798_v3  ;;  %v1815_v51 = vmul.f32 %v1807_v42, %v1798_v3  ;;  %v1998_v27 = vpop.permute.xlu1 %1997 }
 0x298   : > { %v1909_v12 = vadd.f32 %v1901_v36, %v1809_v5  ;;  %v1911_v37 = vadd.f32 %v1903_v0, %v1811_v52  ;;  %v1906_v1 = vmul.f32 %v1895_v28, %v1890_v60  ;;  %v1907_v35 = vmul.f32 %v1899_v57, %v1890_v60  ;;  %v7967_v60 = vld [vmem:[#allocation9_spill] sm:$0xff]  ;;  %v7970_v52 = vld [vmem:[#allocation6_spill] sm:$0xff] }
 0x299   : > { %v1932_v40 = vadd.f32 %v1918_v14, %v1908_v58  ;;  %v1934_v53 = vadd.f32 %v1922_v54, %v1910_v33  ;;  %v1812_v55 = vmul.f32 %v1803_v10, %v5803_v11  ;;  %v1813_v59 = vmul.f32 %v1807_v42, %v5803_v11  ;;  %v7969_v42 = vld [vmem:[#allocation10_spill] sm:$0xff] }
 0x29a   : > { %v1933_v49 = vadd.f32 %v1918_v14, %v1909_v12  ;;  %v1935_v18 = vadd.f32 %v1922_v54, %v1911_v37  ;;  %v1914_v45 = vadd.f32 %v1906_v1, %v1814_v4  ;;  %v1915_v44 = vadd.f32 %v1907_v35, %v1815_v51  ;;  %v7971_v4 = vld [vmem:[#allocation7_spill] sm:$0xff]  ;;  %v7972_v54 = vld [vmem:[#allocation4_spill] sm:$0xff]  ;;  %v7973_v37 = vld [vmem:[#allocation5_spill] sm:$0xff] }
 0x29b   : > { %v4302_v34 = vmul.f32 -1.442695, %v1932_v40  ;;  %v4304_v43 = vmul.f32 -1.442695, %v1934_v53  ;;  %v1904_v41 = vmul.f32 %v1895_v28, %v1886_v16  ;;  %v1905_v3 = vmul.f32 %v1899_v57, %v1886_v16  ;;  %v7968_v28 = vld [vmem:[#allocation3_spill] sm:$0xff] }
 0x29c   : > { %v4303_v13 = vmul.f32 -1.442695, %v1933_v49  ;;  %v4305_v19 = vmul.f32 -1.442695, %v1935_v18  ;;  %v1938_v29 = vadd.f32 %v1930_v48, %v1914_v45  ;;  %v1939_v56 = vadd.f32 %v1930_v48, %v1915_v44  ;;  %v7974_v40 = vld [vmem:[#allocation11_spill] sm:$0xff]  ;;  %v595_v49 = vpop.permute.xlu0 %594  ;;  %v2002_v18 = vpop.permute.xlu1 %2001 }
 0x29d   : > { %4710 = vpow2.f32 %v4302_v34  ;;  %v1912_v15 = vadd.f32 %v1904_v41, %v1812_v55  ;;  %v1913_v62 = vadd.f32 %v1905_v3, %v1813_v59  ;;  %v545_v61 = vmul.f32 %v7967_v60, %v7966_v46 }
 0x29e   : > { %4712 = vpow2.f32 %v4303_v13  ;;  %v4308_v50 = vmul.f32 -1.442695, %v1938_v29  ;;  %v4309_v11 = vmul.f32 -1.442695, %v1939_v56  ;;  %v546_v57 = vmul.f32 %v7969_v42, %v7968_v28  ;;  %v7975_v29 = vld [vmem:[#allocation12_spill] sm:$0xff] }
 0x29f   : > { %4714 = vpow2.f32 %v4304_v43  ;;  %v1936_v7 = vadd.f32 %v1926_v38, %v1912_v15  ;;  %v1937_v17 = vadd.f32 %v1926_v38, %v1913_v62  ;;  %v573_v36 = vmul.f32 %v5791_v8, %v545_v61  ;;  %v7976_v38 = vld [vmem:[#allocation13_spill] sm:$0xff] }
 0x2a0   : > { %4716 = vpow2.f32 %v4305_v19  ;;  %v551_v0 = vmul.f32 %v7967_v60, %v7970_v52  ;;  %v574_v33 = vmul.f32 %v5791_v8, %v546_v57  ;;  %v552_v51 = vmul.f32 %v7969_v42, %v7971_v4 }
 0x2a1   : > { %4718 = vpow2.f32 %v4308_v50  ;;  %v4306_v39 = vmul.f32 -1.442695, %v1936_v7  ;;  %v4307_v30 = vmul.f32 -1.442695, %v1937_v17  ;;  %v549_v12 = vmul.f32 %v7967_v60, %v7972_v54  ;;  %v4744_v17 = vld [vmem:[%s5024_s28] sm:$0xff]  ;;  %v4746_v60 = vld [vmem:[%s5024_s28 + $0x10] sm:$0xff] }
 0x2a2   : > { %4720 = vpow2.f32 %v4309_v11  ;;  %v550_v1 = vmul.f32 %v7969_v42, %v7973_v37  ;;  %v597_v35 = vadd.f32 %v5805_v23, %v573_v36  ;;  %v579_v53 = vmul.f32 %v7974_v40, %v551_v0  ;;  %v4750_v36 = vld [vmem:[%s5024_s28 + $0x20] sm:$0xff]  ;;  %v4751_v0 = vld [vmem:[%s5024_s28 + $0x28] sm:$0xff] }
 0x2a3   : > { %4722 = vpow2.f32 %v4306_v39  ;;  %v598_v59 = vadd.f32 %v5805_v23, %v574_v33  ;;  %v580_v8 = vmul.f32 %v7974_v40, %v552_v51  ;;  %v577_v44 = vmul.f32 %v5793_v20, %v549_v12 }
 0x2a4   : > { %4724 = vpow2.f32 %v4307_v30  ;;  %v578_v43 = vmul.f32 %v5793_v20, %v550_v1  ;;  %v603_v13 = vadd.f32 %v595_v49, %v579_v53 }
 0x2a5   : > { %v604_v15 = vadd.f32 %v595_v49, %v580_v8  ;;  %v601_v7 = vadd.f32 %v591_v2, %v577_v44 }
 0x2a7   : > { %v4711_v16 = vpop.eup %4710 }
 0x2a8   : > { %v4713_v63 = vpop.eup %4712  ;;  %v1964_v26 = vadd.f32 1.0, %v4711_v16 }
 0x2a9   : > { %v4715_v21 = vpop.eup %4714  ;;  %v1965_v32 = vadd.f32 1.0, %v4713_v63  ;;  %v602_v63 = vadd.f32 %v591_v2, %v578_v43  ;;  %v4747_v2 = vld [vmem:[%s5024_s28 + $0x18] sm:$0xff] }
 0x2aa   : > { %v4717_v22 = vpop.eup %4716  ;;  %4726 = vrcp.f32 %v1964_v26  ;;  %v1966_v9 = vadd.f32 1.0, %v4715_v21  ;;  %v4745_v26 = vld [vmem:[%s5024_s28 + $0x8] sm:$0xff] }
 0x2ab   : > { %v4719_v47 = vpop.eup %4718  ;;  %4728 = vrcp.f32 %v1965_v32  ;;  %v1967_v25 = vadd.f32 1.0, %v4717_v22  ;;  %v2010_v22 = vpop.permute.xlu1 %2009 }
 0x2ac   : > { %v4721_v10 = vpop.eup %4720  ;;  %4730 = vrcp.f32 %v1966_v9  ;;  %v1970_v14 = vadd.f32 1.0, %v4719_v47  ;;  %v2006_v47 = vpop.permute.xlu0 %2005 }
 0x2ad   : > { %v4723_v31 = vpop.eup %4722  ;;  %4732 = vrcp.f32 %v1967_v25  ;;  %v1971_v6 = vadd.f32 1.0, %v4721_v10 }
 0x2ae   : > { %v4725_v24 = vpop.eup %4724  ;;  %4734 = vrcp.f32 %v1970_v14  ;;  %v1968_v5 = vadd.f32 1.0, %v4723_v31  ;;  %v4748_v14 = vld [vmem:[%s5024_s28 + $0x30] sm:$0xff] }
 0x2af   : > { %4736 = vrcp.f32 %v1971_v6  ;;  %v1969_v58 = vadd.f32 1.0, %v4725_v24  ;;  %v4749_v24 = vld [vmem:[%s5024_s28 + $0x38] sm:$0xff] }
 0x2b0   : > { %4738 = vrcp.f32 %v1968_v5 }
 0x2b1   : > { %4740 = vrcp.f32 %v1969_v58 }
 0x2b4   : > { %v4727_v55 = vpop.eup %4726 }
 0x2b5   : > { %v4729_v45 = vpop.eup %4728  ;;  %v1988_v48 = vmul.f32 %v4727_v55, %v597_v35 }
 0x2b6   : > { %v4731_v34 = vpop.eup %4730  ;;  %v1989_v41 = vmul.f32 %v4729_v45, %v598_v59 }
 0x2b7   : > { %v4733_v3 = vpop.eup %4732  ;;  %v2012_v19 = vmul.f32 %v1998_v27, %v1988_v48  ;;  %v1990_v56 = vmul.f32 %v4731_v34, %v7975_v29 }
 0x2b8   : > { %v4735_v23 = vpop.eup %4734  ;;  %v2013_v62 = vmul.f32 %v1998_v27, %v1989_v41  ;;  %v1991_v50 = vmul.f32 %v4733_v3, %v7976_v38 }
 0x2b9   : > { %v4737_v11 = vpop.eup %4736  ;;  %v2020_v39 = vadd.f32 %v4744_v17, %v2012_v19  ;;  %v2014_v30 = vmul.f32 %v2002_v18, %v1990_v56  ;;  %v1994_v20 = vmul.f32 %v4735_v23, %v603_v13 }
 0x2ba   : > { %v4739_v16 = vpop.eup %4738  ;;  %v2021_v21 = vadd.f32 %v4745_v26, %v2013_v62  ;;  %v2015_v32 = vmul.f32 %v2002_v18, %v1991_v50  ;;  %v1995_v9 = vmul.f32 %v4737_v11, %v604_v15 }
 0x2bb   : > { %v4741_v46 = vpop.eup %4740  ;;  %2028 = vst [vmem:[%s5029_s12] sm:$0xff] %v2020_v39  ;;  %v2022_v61 = vadd.f32 %v4746_v60, %v2014_v30  ;;  %v2018_v25 = vmul.f32 %v2010_v22, %v1994_v20  ;;  %v1992_v10 = vmul.f32 %v4739_v16, %v601_v7 }
 0x2bc   : > { %2029 = vst [vmem:[%s5029_s12 + $0x8] sm:$0xff] %v2021_v21  ;;  %v2023_v28 = vadd.f32 %v4747_v2, %v2015_v32  ;;  %v2019_v42 = vmul.f32 %v2010_v22, %v1995_v9  ;;  %v1993_v57 = vmul.f32 %v4741_v46, %v602_v63 }
 0x2bd   : > { %2030 = vst [vmem:[%s5029_s12 + $0x10] sm:$0xff] %v2022_v61  ;;  %v2026_v31 = vadd.f32 %v4748_v14, %v2018_v25  ;;  %v2016_v6 = vmul.f32 %v2006_v47, %v1992_v10 }
 0x2be   : > { %2031 = vst [vmem:[%s5029_s12 + $0x18] sm:$0xff] %v2023_v28  ;;  %v2027_v27 = vadd.f32 %v4749_v24, %v2019_v42  ;;  %v2017_v5 = vmul.f32 %v2006_v47, %v1993_v57 }
 0x2bf   : > { %2034 = vst [vmem:[%s5029_s12 + $0x30] sm:$0xff] %v2026_v31  ;;  %v2024_v52 = vadd.f32 %v4750_v36, %v2016_v6 }
 0x2c0   : > { %2035 = vst [vmem:[%s5029_s12 + $0x38] sm:$0xff] %v2027_v27  ;;  %v2025_v58 = vadd.f32 %v4751_v0, %v2017_v5 }
 0x2c1   : > { %2032 = vst [vmem:[%s5029_s12 + $0x20] sm:$0xff] %v2024_v52 }
 0x2c2   : > { %2033 = vst [vmem:[%s5029_s12 + $0x28] sm:$0xff] %v2025_v58 }
 0x2c3 PF: > { %p4310_p7 = scmp.le.s32.totalorder %s4877_s17, 0 }
 0x2c5   : > { %2039 = sbr.rel (%p4310_p7) target bundleno = 2462 (0x99e), region = 72 }
 0x2cc   : > { %s4311_s13 = sadd.s32 4294967295, %s4877_s17  ;;  %v4900_v33 = vmov 1   ;;  %v7801_v4 = vmov 0   ;;  %v2139_v1 = vld [vmem:[%s5029_s12] sm:$0xff]  ;;  %v2141_v35 = vld [vmem:[%s5029_s12 + $0x10] sm:$0xff]  ;;  %v4902_v40 = vmov 2  }
 0x2cd   : > { %4753 = vset.pattern.permute.xlu1 %v4900_v33  ;;  %4752 = vset.pattern.permute.xlu0 %v7801_v4  ;;  %p2041_p8 = scmp.gt.s32.totalorder %s4311_s13, 0  ;;  %v2140_v53 = vld [vmem:[%s5029_s12 + $0x8] sm:$0xff]  ;;  %v2142_v55 = vld [vmem:[%s5029_s12 + $0x18] sm:$0xff]  ;;  %v2147_v59 = vadd.f32 %v2141_v35, %v2139_v1  ;;  %v2143_v49 = vld [vmem:[%s5029_s12 + $0x20] sm:$0xff]  ;;  %v4903_v29 = vmov 7   ;;  %v4904_v30 = vmov 3  }
 0x2ce   : > { %2373 = vmatprep.mubr.bf16.mxu0 %v7801_v4  ;;  %3672 = vmatprep.mubr.bf16.mxu1 %v7801_v4  ;;  %v2156_v18 = vadd.f32 %v2142_v55, %v2140_v53  ;;  %v2144_v45 = vld [vmem:[%s5029_s12 + $0x28] sm:$0xff]  ;;  %v2145_v34 = vld [vmem:[%s5029_s12 + $0x30] sm:$0xff]  ;;  %v2146_v41 = vld [vmem:[%s5029_s12 + $0x38] sm:$0xff]  ;;  %v4905_v46 = vmov 4   ;;  %v4906_v0 = vmov 5   ;;  %vm2328_vm0 = vcmask 261120  }
 0x2cf   : > { %s8253_s13 = smov (!%p2041_p8, %s4311_s13), 0  ;;  %v2148_v44 = vadd.f32 %v2147_v59, %v2143_v49  ;;  %s4912_s26 = smov 17  }
 0x2d0   : > { %s4314_s28 = sshll.u32 %s8253_s13, 6  ;;  %s4347_s14 = sshll.u32 %s8253_s13, 7  ;;  %v2157_v43 = vadd.f32 %v2156_v18, %v2144_v45 }
 0x2d1   : > { %s5863_s18 = scalar_lea.vmem %s7776_s10, %s4314_s28  ;;  %s5871_s25 = scalar_lea.vmem %s7775_s9, %s4347_s14  ;;  %v2149_v3 = vadd.f32 %v2148_v44, %v2145_v34 }
 0x2d2   : > { %v5866_v51 = vld [vmem:[%s5863_s18] sm:$0xff]  ;;  %v5876_v54 = vld [vmem:[%s5863_s18 + $0x8] sm:$0xff]  ;;  %v5879_v12 = vld [vmem:[%s5863_s18 + $0x10] sm:$0xff]  ;;  %v2158_v19 = vadd.f32 %v2157_v43, %v2146_v41  ;;  %s4913_s27 = smov 16   ;;  %s4914_s29 = smov 15  }
 0x2d3   : > { %2245 = vperm.xlu1 %4753, %v5866_v51   ;;  %2218 = vperm.xlu0 %4752, %v5866_v51   ;;  %v5884_v37 = vld [vmem:[%s5863_s18 + $0x18] sm:$0xff]  ;;  %v5898_v8 = vld [vmem:[%s5863_s18 + $0x20] sm:$0xff]  ;;  %v5905_v48 = vld [vmem:[%s5863_s18 + $0x28] sm:$0xff]  ;;  %v2150_v56 = vrot.slane %v2149_v3, 4  ;;  %s4915_s30 = smov 1   ;;  %s4916_s13 = smov 127  }
 0x2d4   : > { %v5912_v13 = vld [vmem:[%s5863_s18 + $0x30] sm:$0xff]  ;;  %v5917_v23 = vld [vmem:[%s5863_s18 + $0x38] sm:$0xff]  ;;  %v2159_v15 = vrot.slane %v2158_v19, 4  ;;  %s4917_s28 = smov 113   ;;  %s4918_s14 = smov 112  }
 0x2d5   : > { %v2151_v62 = vadd.f32 %v2150_v56, %v2149_v3  ;;  %s4919_s15 = smov 111  }
 0x2d6   : > { %v2160_v38 = vadd.f32 %v2159_v15, %v2158_v19 }
 0x2d7   : > { %2249 = vperm.xlu1 %4753, %v5876_v54   ;;  %2223 = vperm.xlu0 %4752, %v5876_v54   ;;  %v2152_v50 = vrot.slane %v2151_v62, 2 }
 0x2d8   : > { %v2161_v11 = vrot.slane %v2160_v38, 2 }
 0x2d9   : > { %v2153_v7 = vadd.f32 %v2152_v50, %v2151_v62  ;;  %v4909_v62 = vmov 9   ;;  %v4910_v50 = vmov 10  }
 0x2da   : > { %v2162_v17 = vadd.f32 %v2161_v11, %v2160_v38 }
 0x2db   : > { %4754 = vset.pattern.permute.xlu1 %v7801_v4  ;;  %2228 = vperm.xlu0 %4752, %v5879_v12   ;;  %v2154_v39 = vrot.slane %v2153_v7, 1 }
 0x2dc   : > { %2233 = vperm.xlu1 %4754, %v5884_v37   ;;  %v2163_v20 = vrot.slane %v2162_v17, 1 }
 0x2dd   : > { %v2155_v16 = vadd.f32 %v2154_v39, %v2153_v7 }
 0x2de   : > { %v2164_v63 = vadd.f32 %v2163_v20, %v2162_v17 }
 0x2df   : > { %4755 = vset.pattern.permute.xlu0 %v4900_v33  ;;  %v2166_v26 = vmul.f32 0.03125, %v2155_v16 }
 0x2e0   : > { %4756 = vset.pattern.permute.xlu1 %v4900_v33  ;;  %2253 = vperm.xlu0 %4755, %v5879_v12   ;;  %v2167_v21 = vmul.f32 0.03125, %v2164_v63 }
 0x2e1   : > { %2257 = vperm.xlu1 %4756, %v5884_v37   ;;  %v5935_v32 = vsub.f32 %v2139_v1, %v2166_v26  ;;  %v5937_v22 = vsub.f32 %v2141_v35, %v2166_v26  ;;  %v5947_v60 = vsub.f32 %v2143_v49, %v2166_v26  ;;  %v5962_v42 = vsub.f32 %v2145_v34, %v2166_v26 }
 0x2e2   : > { %v5939_v9 = vsub.f32 %v2140_v53, %v2167_v21  ;;  %v5941_v47 = vsub.f32 %v2142_v55, %v2167_v21  ;;  %v5953_v10 = vsub.f32 %v2144_v45, %v2167_v21  ;;  %v5966_v31 = vsub.f32 %v2146_v41, %v2167_v21 }
 0x2e3   : > { %v2176_v61 = vmul.f32 %v5935_v32, %v5935_v32  ;;  %v2178_v25 = vmul.f32 %v5937_v22, %v5937_v22  ;;  %v2180_v57 = vmul.f32 %v5947_v60, %v5947_v60  ;;  %v2182_v27 = vmul.f32 %v5962_v42, %v5962_v42 }
 0x2e4   : > { %4758 = vset.pattern.permute.xlu0 %v4902_v40  ;;  %v2177_v2 = vmul.f32 %v5939_v9, %v5939_v9  ;;  %v2179_v28 = vmul.f32 %v5941_v47, %v5941_v47  ;;  %v2181_v6 = vmul.f32 %v5953_v10, %v5953_v10  ;;  %v2183_v36 = vmul.f32 %v5966_v31, %v5966_v31 }
 0x2e5   : > { %4757 = vset.pattern.permute.xlu1 %v4902_v40  ;;  %2277 = vperm.xlu0 %4758, %v5876_v54   ;;  %v2184_v14 = vadd.f32 %v2178_v25, %v2176_v61  ;;  %v4907_v40 = vmov 6   ;;  %v4908_v34 = vmov 8  }
 0x2e6   : > { %2273 = vperm.xlu1 %4757, %v5866_v51   ;;  %v2193_v24 = vadd.f32 %v2179_v28, %v2177_v2 }
 0x2e7   : > { %v2185_v5 = vadd.f32 %v2184_v14, %v2180_v57 }
 0x2e8   : > { %v2194_v52 = vadd.f32 %v2193_v24, %v2181_v6 }
 0x2e9   : > { %2281 = vperm.xlu0 %4758, %v5879_v12   ;;  %v2186_v58 = vadd.f32 %v2185_v5, %v2182_v27 }
 0x2ea   : > { %2290 = vperm.xlu1 %4757, %v5898_v8   ;;  %v2195_v33 = vadd.f32 %v2194_v52, %v2183_v36 }
 0x2eb   : > { %v2187_v1 = vrot.slane %v2186_v58, 4 }
 0x2ec   : > { %v2196_v35 = vrot.slane %v2195_v33, 4 }
 0x2ed   : > { %2285 = vperm.xlu0 %4758, %v5884_v37   ;;  %v2188_v53 = vadd.f32 %v2187_v1, %v2186_v58 }
 0x2ee   : > { %2295 = vperm.xlu1 %4757, %v5905_v48   ;;  %v2197_v55 = vadd.f32 %v2196_v35, %v2195_v33 }
 0x2ef   : > { %v2189_v59 = vrot.slane %v2188_v53, 2 }
 0x2f0   : > { %v2198_v49 = vrot.slane %v2197_v55, 2 }
 0x2f1   : > { %4759 = vset.pattern.permute.xlu0 %v4903_v29  ;;  %v2190_v18 = vadd.f32 %v2189_v59, %v2188_v53  ;;  %v4813_v53 = vld [vmem:[%s5871_s25] sm:$0xff]   ;;  %v4815_v59 = vld [vmem:[%s5871_s25 + $0x10] sm:$0xff]  }
 0x2f2   : > { %2300 = vperm.xlu1 %4757, %v5912_v13   ;;  %2415 = vperm.xlu0 %4759, %v5866_v51   ;;  %v2199_v45 = vadd.f32 %v2198_v49, %v2197_v55  ;;  %v4814_v55 = vld [vmem:[%s5871_s25 + $0x8] sm:$0xff]   ;;  %v4816_v49 = vld [vmem:[%s5871_s25 + $0x18] sm:$0xff]  }
 0x2f3   : > { %v2191_v44 = vrot.slane %v2190_v18, 1 }
 0x2f4   : > { %v2200_v43 = vrot.slane %v2199_v45, 1 }
 0x2f5   : > { %v2192_v41 = vadd.f32 %v2191_v44, %v2190_v18 }
 0x2f6   : > { %2305 = vperm.xlu1 %4757, %v5917_v23   ;;  %2435 = vperm.xlu0 %4759, %v5905_v48   ;;  %v2201_v3 = vadd.f32 %v2200_v43, %v2199_v45  ;;  %v7803_v45 = vmov 11  }
 0x2f7   : > { %v2202_v19 = vmul.f32 0.03125, %v2192_v41 }
 0x2f9   : > { %v2204_v56 = vadd.f32 1e-06, %v2202_v19 }
 0x2fa   : > { %4760 = vset.pattern.permute.xlu1 %v4903_v29  ;;  %2423 = vperm.xlu0 %4759, %v5879_v12  }
 0x2fb   : > { %2419 = vperm.xlu1 %4760, %v5876_v54   ;;  %4823 = vrsqrt.f32 %v2204_v56 }
 0x2fe   : > { %2443 = vperm.xlu0 %4759, %v5917_v23  }
 0x2ff   : > { %2431 = vperm.xlu1 %4760, %v5898_v8  }
 0x302   : > { %4766 = vset.pattern.permute.xlu0 %v4904_v30 }
 0x303   : > { %4761 = vset.pattern.permute.xlu1 %v4904_v30  ;;  %2534 = vperm.xlu0 %4766, %v5876_v54  }
 0x304   : > { %2530 = vperm.xlu1 %4761, %v5866_v51  }
 0x305   : > { %v4824_v38 = vpop.eup %4823 }
 0x306   : > { %v2208_v7 = vmul.f32 %v4824_v38, %v5935_v32  ;;  %v2210_v20 = vmul.f32 %v4824_v38, %v5937_v22  ;;  %v2212_v28 = vmul.f32 %v4824_v38, %v5947_v60  ;;  %v2214_v22 = vmul.f32 %v4824_v38, %v5962_v42 }
 0x307   : > { %2554 = vperm.xlu0 %4766, %v5912_v13  }
 0x308   : > { %2546 = vperm.xlu1 %4761, %v5898_v8  }
 0x30b   : > { %2542 = vperm.xlu0 %4766, %v5884_v37  }
 0x30c   : > { %2550 = vperm.xlu1 %4761, %v5905_v48  }
 0x30f   : > { %4767 = vset.pattern.permute.xlu0 %v4905_v46 }
 0x310   : > { %4762 = vset.pattern.permute.xlu1 %v4903_v29  ;;  %2675 = vperm.xlu0 %4767, %v5898_v8  }
 0x311   : > { %2439 = vperm.xlu1 %4762, %v5912_v13  }
 0x314   : > { %2683 = vperm.xlu0 %4767, %v5912_v13  }
 0x315   : > { %4763 = vset.pattern.permute.xlu1 %v4904_v30 }
 0x316   : > { %2538 = vperm.xlu1 %4763, %v5879_v12  }
 0x318   : > { %2687 = vperm.xlu0 %4767, %v5917_v23  }
 0x31a   : > { %4764 = vset.pattern.permute.xlu1 %v4905_v46 }
 0x31b   : > { %2659 = vperm.xlu1 %4764, %v5866_v51  }
 0x31c   : > { %4772 = vset.pattern.permute.xlu0 %v4906_v0 }
 0x31d   : > { %2806 = vperm.xlu0 %4772, %v5898_v8  }
 0x31f   : > { %2663 = vperm.xlu1 %4764, %v5876_v54  }
 0x321   : > { %2818 = vperm.xlu0 %4772, %v5917_v23  }
 0x323   : > { %2679 = vperm.xlu1 %4764, %v5905_v48  }
 0x325   : > { %4776 = vset.pattern.permute.xlu0 %v4907_v40 }
 0x326   : > { %2919 = vperm.xlu0 %4776, %v5866_v51  }
 0x327   : > { %4765 = vset.pattern.permute.xlu1 %v4903_v29  ;;  %v2203_v29 = vmul.f32 0.03125, %v2201_v3 }
 0x328   : > { %2427 = vperm.xlu1 %4765, %v5884_v37  }
 0x329   : > { %v2205_v15 = vadd.f32 1e-06, %v2203_v29 }
 0x32a   : > { %2939 = vperm.xlu0 %4776, %v5905_v48  }
 0x32b   : > { %4825 = vrsqrt.f32 %v2205_v15 }
 0x32c   : > { %4768 = vset.pattern.permute.xlu1 %v4904_v30 }
 0x32d   : > { %2558 = vperm.xlu1 %4768, %v5917_v23  }
 0x32e   : > { %2947 = vperm.xlu0 %4776, %v5917_v23  }
 0x331   : > { %4769 = vset.pattern.permute.xlu1 %v4905_v46 }
 0x332   : > { %2667 = vperm.xlu1 %4769, %v5879_v12   ;;  %4780 = vset.pattern.permute.xlu0 %v4908_v34 }
 0x333   : > { %3048 = vperm.xlu0 %4780, %v5866_v51  }
 0x335   : > { %v4826_v11 = vpop.eup %4825 }
 0x336   : > { %4770 = vset.pattern.permute.xlu1 %v4906_v0  ;;  %v2209_v17 = vmul.f32 %v4826_v11, %v5939_v9  ;;  %v2211_v16 = vmul.f32 %v4826_v11, %v5941_v47  ;;  %v2213_v57 = vmul.f32 %v4826_v11, %v5953_v10  ;;  %v2215_v47 = vmul.f32 %v4826_v11, %v5966_v31 }
 0x337   : > { %2790 = vperm.xlu1 %4770, %v5866_v51   ;;  %3068 = vperm.xlu0 %4780, %v5905_v48  }
 0x33b   : > { %2794 = vperm.xlu1 %4770, %v5876_v54   ;;  %3076 = vperm.xlu0 %4780, %v5917_v23  }
 0x33f   : > { %2810 = vperm.xlu1 %4770, %v5905_v48   ;;  %4784 = vset.pattern.permute.xlu0 %v4909_v62 }
 0x340   : > { %3179 = vperm.xlu0 %4784, %v5866_v51  }
 0x343   : > { %4771 = vset.pattern.permute.xlu1 %v4905_v46 }
 0x344   : > { %2671 = vperm.xlu1 %4771, %v5884_v37   ;;  %3199 = vperm.xlu0 %4784, %v5905_v48  }
 0x348   : > { %4773 = vset.pattern.permute.xlu1 %v4906_v0  ;;  %3207 = vperm.xlu0 %4784, %v5917_v23  }
 0x349   : > { %2798 = vperm.xlu1 %4773, %v5879_v12  }
 0x34c   : > { %4788 = vset.pattern.permute.xlu0 %v4910_v50 }
 0x34d   : > { %2814 = vperm.xlu1 %4773, %v5912_v13   ;;  %3308 = vperm.xlu0 %4788, %v5866_v51  }
 0x351   : > { %4774 = vset.pattern.permute.xlu1 %v4907_v40  ;;  %3328 = vperm.xlu0 %4788, %v5905_v48  }
 0x352   : > { %v2246_v39 = vpop.permute.xlu1 %2245  ;;  %v2219_v30 = vpop.permute.xlu0 %2218  ;;  %2923 = vperm.xlu1 %4774, %v5876_v54  }
 0x353   : > { %v2236_v63 = vmul.f32 %v2219_v30, %v2208_v7  ;;  %v2237_v26 = vmul.f32 %v2219_v30, %v2209_v17 }
 0x355   : > { %v2261_v46 = vadd.f32 %v2246_v39, %v2237_v26  ;;  %v2260_v25 = vadd.f32 %v2246_v39, %v2236_v63 }
 0x356   : > { %v2250_v21 = vpop.permute.xlu1 %2249  ;;  %v2224_v51 = vpop.permute.xlu0 %2223  ;;  %2935 = vperm.xlu1 %4774, %v5898_v8  }
 0x357   : > { %v2238_v32 = vmul.f32 %v2224_v51, %v2210_v20  ;;  %v2239_v9 = vmul.f32 %v2224_v51, %v2211_v16 }
 0x359   : > { %v2263_v61 = vadd.f32 %v2250_v21, %v2239_v9  ;;  %v2262_v2 = vadd.f32 %v2250_v21, %v2238_v32 }
 0x35a   : > { %v2229_v14 = vpop.permute.xlu0 %2228  ;;  %4775 = vset.pattern.permute.xlu1 %v4906_v0 }
 0x35b   : > { %v2234_v6 = vpop.permute.xlu1 %2233  ;;  %v2269_v24 = vpack.c.bf16 %v2263_v61, %v2261_v46  ;;  %v2268_v27 = vpack.c.bf16 %v2262_v2, %v2260_v25  ;;  %2802 = vperm.xlu1 %4775, %v5884_v37   ;;  %v2240_v5 = vmul.f32 %v2229_v14, %v2212_v28  ;;  %v2241_v36 = vmul.f32 %v2229_v14, %v2213_v57 }
 0x35c   : > { %v2242_v60 = vmul.f32 %v2234_v6, %v2214_v22  ;;  %v2243_v52 = vmul.f32 %v2234_v6, %v2215_v47 }
 0x35d   : > { %2341 = vmatprep.subr.bf16.mxu0 %v2269_v24 }
 0x35e   : > { %2342 = vmatpush1.bf16.msra.mxu0 %v2268_v27 }
 0x35f   : > { %v2254_v10 = vpop.permute.xlu0 %2253  ;;  %4777 = vset.pattern.permute.xlu1 %v4907_v40 }
 0x360   : > { %v2264_v0 = vadd.f32 %v2254_v10, %v2240_v5  ;;  %v2265_v58 = vadd.f32 %v2254_v10, %v2241_v36  ;;  %v2258_v42 = vpop.permute.xlu1 %2257  ;;  %2927 = vperm.xlu1 %4777, %v5879_v12  }
 0x361   : > { %v2266_v31 = vadd.f32 %v2258_v42, %v2242_v60  ;;  %v2267_v33 = vadd.f32 %v2258_v42, %v2243_v52 }
 0x363   : > { %v2271_v1 = vpack.c.bf16 %v2267_v33, %v2265_v58  ;;  %v2270_v35 = vpack.c.bf16 %v2266_v31, %v2264_v0 }
 0x364   : > { %2943 = vperm.xlu1 %4777, %v5912_v13   ;;  %v2278_v39 = vpop.permute.xlu0 %2277 }
 0x365   : > { %2343 = vmatprep.subr.bf16.mxu0 %v2271_v1 }
 0x366   : > { %2344 = vmatpush1.bf16.msra.mxu0 %v2270_v35 }
 0x368   : > { %4778 = vset.pattern.permute.xlu1 %v4908_v34  ;;  %v6110_v20 = vpop.permute.xlu0 %2281 }
 0x369   : > { %4325 = vmatmul.mubr.msk.bf16.vlgmr.msra.gmra.mrb[0].mxu0 %vm2328_vm0, %v4813_v53  ;;  %3052 = vperm.xlu1 %4778, %v5876_v54  }
 0x36a   : > { %2383 = vmatprep.mubr.bf16.mxu0 %v7801_v4 }
 0x36c   : > { %v6114_v63 = vpop.permute.xlu0 %2285 }
 0x36d   : > { %3064 = vperm.xlu1 %4778, %v5898_v8  }
 0x371   : > { %4326 = vmatmul.mubr.msk.bf16.gmra.mrb[4].mxu0 %vm2328_vm0, %v4814_v55  ;;  %4779 = vset.pattern.permute.xlu1 %v4907_v40  ;;  %v2274_v40 = vpop.permute.xlu1 %2273  ;;  %v6118_v21 = vpop.permute.xlu0 %2415 }
 0x372   : > { %2393 = vmatprep.mubr.bf16.mxu0 %v7801_v4  ;;  %2931 = vperm.xlu1 %4779, %v5884_v37  }
 0x375   : > { %v6064_v18 = vpop.permute.xlu1 %2290  ;;  %v6122_v32 = vpop.permute.xlu0 %2435 }
 0x376   : > { %4781 = vset.pattern.permute.xlu1 %v4908_v34  ;;  %7993 = vst [vmem:[#allocation39_spill] sm:$0xff] %v6122_v32 }
 0x377   : > { %3056 = vperm.xlu1 %4781, %v5879_v12  }
 0x379   : > { %4327 = vmatmul.mubr.msk.bf16.gmra.mrb[8].mxu0 %vm2328_vm0, %v4815_v59  ;;  %v6069_v44 = vpop.permute.xlu1 %2295  ;;  %v6126_v46 = vpop.permute.xlu0 %2423 }
 0x37a   : > { %2403 = vmatprep.mubr.bf16.mxu0 %v7801_v4 }
 0x37b   : > { %3072 = vperm.xlu1 %4781, %v5912_v13  }
 0x37d   : > { %v6130_v2 = vpop.permute.xlu0 %2443 }
 0x37f   : > { %4782 = vset.pattern.permute.xlu1 %v4909_v62 }
 0x380   : > { %3183 = vperm.xlu1 %4782, %v5876_v54  }
 0x381   : > { %4328 = vmatmul.mubr.msk.bf16.gmra.mrb[12].mxu0 %vm2328_vm0, %v4816_v49 }
 0x382   : > { %4066 = vmatprep.mubr.bf16.mxu0 %v7801_v4  ;;  %v6142_v24 = vpop.permute.xlu0 %2534 }
 0x383   : > { %7997 = vst [vmem:[#allocation43_spill] sm:$0xff] %v6142_v24 }
 0x384   : > { %3195 = vperm.xlu1 %4782, %v5898_v8  }
 0x386   : > { %v6156_v10 = vpop.permute.xlu0 %2554 }
 0x388   : > { %4783 = vset.pattern.permute.xlu1 %v4908_v34 }
 0x389   : > { %3060 = vperm.xlu1 %4783, %v5884_v37  }
 0x38a   : > { %v6171_v33 = vpop.permute.xlu0 %2542 }
 0x38b   : > { %7999 = vst [vmem:[#allocation45_spill] sm:$0xff] %v6171_v33 }
 0x38d   : > { %4785 = vset.pattern.permute.xlu1 %v4909_v62 }
 0x38e   : > { %3187 = vperm.xlu1 %4785, %v5879_v12  }
 0x38f   : > { %v6181_v59 = vpop.permute.xlu0 %2675 }
 0x390   : > { %8001 = vst [vmem:[#allocation47_spill] sm:$0xff] %v6181_v59 }
 0x392   : > { %3203 = vperm.xlu1 %4785, %v5912_v13  }
 0x393   : > { %v6203_v4 = vpop.permute.xlu0 %2683 }
 0x396   : > { %4786 = vset.pattern.permute.xlu1 %v4910_v50 }
 0x397   : > { %3312 = vperm.xlu1 %4786, %v5876_v54  }
 0x39b   : > { %3324 = vperm.xlu1 %4786, %v5898_v8  }
 0x39f   : > { %4787 = vset.pattern.permute.xlu1 %v4909_v62 }
 0x3a0   : > { %3191 = vperm.xlu1 %4787, %v5884_v37   ;;  %v6072_v37 = vpop.permute.xlu1 %2300 }
 0x3a4   : > { %4789 = vset.pattern.permute.xlu1 %v4910_v50  ;;  %v6074_v34 = vpop.permute.xlu1 %2305 }
 0x3a5   : > { %3316 = vperm.xlu1 %4789, %v5879_v12  }
 0x3a8   : > { %v6076_v12 = vpop.permute.xlu1 %2419 }
 0x3a9   : > { %3332 = vperm.xlu1 %4789, %v5912_v13  }
 0x3ac   : > { %v6078_v43 = vpop.permute.xlu1 %2431 }
 0x3ad   : > { %4790 = vset.pattern.permute.xlu1 %v7803_v45  ;;  %7977 = vst [vmem:[#allocation23_spill] sm:$0xff] %v6078_v43 }
 0x3ae   : > { %3443 = vperm.xlu1 %4790, %v5876_v54  }
 0x3b0   : > { %v6080_v41 = vpop.permute.xlu1 %2530 }
 0x3b1   : > { %7978 = vst [vmem:[#allocation24_spill] sm:$0xff] %v6080_v41  ;;  %v8086_v41 = vmov 0.0  }
 0x3b2   : > { %3455 = vperm.xlu1 %4790, %v5898_v8  }
 0x3b4   : > { %v6082_v3 = vpop.permute.xlu1 %2546 }
 0x3b5   : > { %7979 = vst [vmem:[#allocation25_spill] sm:$0xff] %v6082_v3 }
 0x3b6   : > { %4791 = vset.pattern.permute.xlu1 %v4910_v50 }
 0x3b8   : > { %v6084_v19 = vpop.permute.xlu1 %2550 }
 0x3b9   : > { %7980 = vst [vmem:[#allocation26_spill] sm:$0xff] %v6084_v19 }
 0x3bc   : > { %v6086_v54 = vpop.permute.xlu1 %2439 }
 0x3c0   : > { %v6088_v8 = vpop.permute.xlu1 %2538 }
 0x3c1   : > { %7981 = vst [vmem:[#allocation27_spill] sm:$0xff] %v6088_v8 }
 0x3c4   : > { %v6090_v29 = vpop.permute.xlu1 %2659 }
 0x3c5   : > { %7982 = vst [vmem:[#allocation28_spill] sm:$0xff] %v6090_v29 }
 0x3c8   : > { %v6092_v56 = vpop.permute.xlu1 %2663 }
 0x3c9   : > { %7983 = vst [vmem:[#allocation29_spill] sm:$0xff] %v6092_v56 }
 0x3cc   : > { %v6094_v15 = vpop.permute.xlu1 %2679 }
 0x3cd   : > { %7984 = vst [vmem:[#allocation30_spill] sm:$0xff] %v6094_v15 }
 0x3d0   : > { %v6096_v62 = vpop.permute.xlu1 %2427 }
 0x3d1   : > { %7985 = vst [vmem:[#allocation31_spill] sm:$0xff] %v6096_v62 }
 0x3d4   : > { %v6098_v38 = vpop.permute.xlu1 %2558 }
 0x3d8   : > { %v6100_v50 = vpop.permute.xlu1 %2667 }
 0x3d9   : > { %7986 = vst [vmem:[#allocation32_spill] sm:$0xff] %v6100_v50 }
 0x3dc   : > { %v6102_v11 = vpop.permute.xlu1 %2790 }
 0x3dd   : > { %7987 = vst [vmem:[#allocation33_spill] sm:$0xff] %v6102_v11 }
 0x3e0   : > { %v6104_v7 = vpop.permute.xlu1 %2794 }
 0x3e1   : > { %7988 = vst [vmem:[#allocation34_spill] sm:$0xff] %v6104_v7 }
 0x3e4   : > { %v6106_v17 = vpop.permute.xlu1 %2810 }
 0x3e5   : > { %7989 = vst [vmem:[#allocation35_spill] sm:$0xff] %v6106_v17 }
 0x3e8   : > { %v6108_v30 = vpop.permute.xlu1 %2671 }
 0x3e9   : > { %7990 = vst [vmem:[#allocation36_spill] sm:$0xff] %v6108_v30 }
 0x3ec   : > { %v6112_v16 = vpop.permute.xlu1 %2798 }
 0x3ed   : > { %7991 = vst [vmem:[#allocation37_spill] sm:$0xff] %v6112_v16 }
 0x3f0   : > { %v6116_v26 = vpop.permute.xlu1 %2814 }
 0x3f4   : > { %v6120_v51 = vpop.permute.xlu1 %2923 }
 0x3f5   : > { %7992 = vst [vmem:[#allocation38_spill] sm:$0xff] %v6120_v51 }
 0x3f8   : > { %v6124_v9 = vpop.permute.xlu1 %2935 }
 0x3f9   : > { %7994 = vst [vmem:[#allocation40_spill] sm:$0xff] %v6124_v9 }
 0x3fc   : > { %v6128_v61 = vpop.permute.xlu1 %2802 }
 0x3fd   : > { %7995 = vst [vmem:[#allocation41_spill] sm:$0xff] %v6128_v61 }
 0x400   : > { %v6138_v6 = vpop.permute.xlu1 %2927 }
 0x401   : > { %7996 = vst [vmem:[#allocation42_spill] sm:$0xff] %v6138_v6 }
 0x404   : > { %v6152_v60 = vpop.permute.xlu1 %2943 }
 0x408   : > { %v6167_v42 = vpop.permute.xlu1 %3052 }
 0x409   : > { %7998 = vst [vmem:[#allocation44_spill] sm:$0xff] %v6167_v42 }
 0x40c   : > { %v6179_v55 = vpop.permute.xlu1 %3064 }
 0x40d   : > { %8000 = vst [vmem:[#allocation46_spill] sm:$0xff] %v6179_v55 }
 0x43c   : > { %v2375_v25 = vpop.f32.mrb[0].mxu0 }
 0x43d   : > { %v6132_v28 = vadd.f32 %v2375_v25, %v2274_v40  ;;  %v2377_v57 = vpop.f32.mrb[1].mxu0 }
 0x43e   : > { %v6134_v14 = vadd.f32 %v2377_v57, %v2274_v40  ;;  %v2379_v22 = vpop.f32.mrb[2].mxu0 }
 0x43f   : > { %v2381_v47 = vpop.f32.mrb[3].mxu0  ;;  %2462 = vrot.lane.b32.xlu1 %v6132_v28, %s4912_s26  ;;  %v6144_v27 = vadd.f32 %v2379_v22, %v2278_v39 }
 0x440   : > { %2478 = vrot.lane.b32.xlu0 %v6134_v14, %s4912_s26  ;;  %v6191_v25 = vadd.f32 %v2381_v47, %v2278_v39  ;;  %v6211_v47 = vpop.permute.xlu0 %2687 }
 0x442   : > { %8002 = vst [vmem:[#allocation48_spill] sm:$0xff] %v6191_v25 }
 0x443   : > { %2593 = vrot.lane.b32.xlu1 %v6132_v28, %s4913_s27 }
 0x444   : > { %v2385_v5 = vpop.f32.mrb[4].mxu0  ;;  %2595 = vrot.lane.b32.xlu0 %v6144_v27, %s4913_s27 }
 0x445   : > { %v6150_v36 = vpop.f32.mrb[5].mxu0  ;;  %v6252_v9 = vadd.f32 %v2385_v5, %v6110_v20 }
 0x446   : > { %v6154_v52 = vpop.f32.mrb[6].mxu0  ;;  %v6299_v59 = vadd.f32 %v6150_v36, %v6110_v20 }
 0x447   : > { %v2391_v0 = vpop.f32.mrb[7].mxu0  ;;  %2722 = vrot.lane.b32.xlu1 %v6132_v28, %s4914_s29 }
 0x448   : > { %v6161_v58 = vadd.f32 %v2391_v0, %v6114_v63  ;;  %2724 = vrot.lane.b32.xlu0 %v6144_v27, %s4914_s29  ;;  %v6199_v0 = vpop.permute.xlu1 %2931 }
 0x449   : > { %8003 = vst [vmem:[#allocation49_spill] sm:$0xff] %v6199_v0  ;;  %v6223_v0 = vpop.permute.xlu0 %2806 }
 0x44a   : > { %8005 = vst [vmem:[#allocation51_spill] sm:$0xff] %v6223_v0 }
 0x44b   : > { %2853 = vrot.lane.b32.xlu1 %v6132_v28, %s4915_s30 }
 0x44c   : > { %v2395_v31 = vpop.f32.mrb[8].mxu0  ;;  %2855 = vrot.lane.b32.xlu0 %v6144_v27, %s4915_s30  ;;  %v6209_v39 = vpop.permute.xlu1 %3056 }
 0x44d   : > { %v2397_v1 = vpop.f32.mrb[9].mxu0  ;;  %8004 = vst [vmem:[#allocation50_spill] sm:$0xff] %v6209_v39  ;;  %v6232_v30 = vadd.f32 %v2395_v31, %v6064_v18  ;;  %v6234_v33 = vpop.permute.xlu0 %2818 }
 0x44e   : > { %v2399_v35 = vpop.f32.mrb[10].mxu0  ;;  %v6241_v39 = vadd.f32 %v2397_v1, %v6064_v18 }
 0x44f   : > { %v6173_v53 = vpop.f32.mrb[11].mxu0  ;;  %2982 = vrot.lane.b32.xlu1 %v6132_v28, %s4916_s13  ;;  %8007 = vst [vmem:[#allocation53_spill] sm:$0xff] %v6232_v30  ;;  %v6255_v0 = vadd.f32 %v2399_v35, %v6069_v44 }
 0x450   : > { %2984 = vrot.lane.b32.xlu0 %v6144_v27, %s4916_s13  ;;  %v6219_v45 = vpop.permute.xlu1 %3072  ;;  %8008 = vst [vmem:[#allocation54_spill] sm:$0xff] %v6241_v39  ;;  %v6315_v20 = vadd.f32 %v6173_v53, %v6069_v44  ;;  %v6339_v53 = vadd.f32 %v6154_v52, %v6114_v63 }
 0x451   : > { %v6249_v31 = vpop.permute.xlu0 %2919  ;;  %8011 = vst [vmem:[#allocation57_spill] sm:$0xff] %v6255_v0 }
 0x452   : > { %8010 = vst [vmem:[#allocation56_spill] sm:$0xff] %v6249_v31  ;;  %8019 = vst [vmem:[#allocation65_spill] sm:$0xff] %v6315_v20 }
 0x453   : > { %3111 = vrot.lane.b32.xlu1 %v6132_v28, %s4917_s28 }
 0x454   : > { %v6185_v49 = vpop.f32.mrb[12].mxu0  ;;  %3113 = vrot.lane.b32.xlu0 %v6144_v27, %s4917_s28  ;;  %v6229_v61 = vpop.permute.xlu1 %3183 }
 0x455   : > { %v6189_v40 = vpop.f32.mrb[13].mxu0  ;;  %8006 = vst [vmem:[#allocation52_spill] sm:$0xff] %v6229_v61  ;;  %v6263_v1 = vpop.permute.xlu0 %2939  ;;  %v6357_v63 = vadd.f32 %v6185_v49, %v6072_v37 }
 0x456   : > { %v6193_v57 = vpop.f32.mrb[14].mxu0  ;;  %8013 = vst [vmem:[#allocation59_spill] sm:$0xff] %v6263_v1  ;;  %v6405_v16 = vadd.f32 %v6189_v40, %v6072_v37 }
 0x457   : > { %v6195_v22 = vpop.f32.mrb[15].mxu0  ;;  %2609 = vrot.lane.b32.xlu1 %v6134_v14, %s4913_s27 }
 0x458   : > { %2611 = vrot.lane.b32.xlu0 %v6191_v25, %s4913_s27  ;;  %v6245_v55 = vpop.permute.xlu1 %3195 }
 0x459   : > { %8009 = vst [vmem:[#allocation55_spill] sm:$0xff] %v6245_v55  ;;  %v6275_v35 = vpop.permute.xlu0 %2947 }
 0x45b   : > { %2738 = vrot.lane.b32.xlu1 %v6134_v14, %s4914_s29 }
 0x45c   : > { %2740 = vrot.lane.b32.xlu0 %v6191_v25, %s4914_s29  ;;  %v6261_v18 = vpop.permute.xlu1 %3060 }
 0x45d   : > { %8012 = vst [vmem:[#allocation58_spill] sm:$0xff] %v6261_v18  ;;  %v6283_v55 = vpop.permute.xlu0 %3048 }
 0x45e   : > { %8015 = vst [vmem:[#allocation61_spill] sm:$0xff] %v6283_v55 }
 0x45f   : > { %2869 = vrot.lane.b32.xlu1 %v6134_v14, %s4915_s30 }
 0x460   : > { %2871 = vrot.lane.b32.xlu0 %v6191_v25, %s4915_s30  ;;  %v6271_v5 = vpop.permute.xlu1 %3187 }
 0x461   : > { %8014 = vst [vmem:[#allocation60_spill] sm:$0xff] %v6271_v5  ;;  %v6295_v1 = vpop.permute.xlu0 %3068 }
 0x462   : > { %8017 = vst [vmem:[#allocation63_spill] sm:$0xff] %v6295_v1 }
 0x463   : > { %2998 = vrot.lane.b32.xlu1 %v6134_v14, %s4916_s13 }
 0x464   : > { %3000 = vrot.lane.b32.xlu0 %v6191_v25, %s4916_s13  ;;  %v6281_v18 = vpop.permute.xlu1 %3203 }
 0x465   : > { %v6307_v17 = vpop.permute.xlu0 %3076 }
 0x467   : > { %3127 = vrot.lane.b32.xlu1 %v6134_v14, %s4917_s28 }
 0x468   : > { %3129 = vrot.lane.b32.xlu0 %v6191_v25, %s4917_s28  ;;  %v6291_v5 = vpop.permute.xlu1 %3312 }
 0x469   : > { %8016 = vst [vmem:[#allocation62_spill] sm:$0xff] %v6291_v5 }
 0x46b   : > { %2464 = vrot.lane.b32.xlu1 %v6144_v27, %s4912_s26 }
 0x46c   : > { %2470 = vrot.lane.b32.xlu0 %v6232_v30, %s4912_s26  ;;  %v6305_v19 = vpop.permute.xlu1 %3324 }
 0x46d   : > { %8018 = vst [vmem:[#allocation64_spill] sm:$0xff] %v6305_v19  ;;  %v6323_v19 = vpop.permute.xlu0 %3179 }
 0x46e   : > { %8021 = vst [vmem:[#allocation67_spill] sm:$0xff] %v6323_v19 }
 0x46f   : > { %2480 = vrot.lane.b32.xlu1 %v6191_v25, %s4912_s26 }
 0x470   : > { %2486 = vrot.lane.b32.xlu0 %v6241_v39, %s4912_s26  ;;  %v6319_v36 = vpop.permute.xlu1 %3191 }
 0x471   : > { %8020 = vst [vmem:[#allocation66_spill] sm:$0xff] %v6319_v36  ;;  %v6331_v44 = vpop.permute.xlu0 %3199 }
 0x472   : > { %8023 = vst [vmem:[#allocation69_spill] sm:$0xff] %v6331_v44 }
 0x473   : > { %2466 = vrot.lane.b32.xlu1 %v6252_v9, %s4912_s26 }
 0x474   : > { %2603 = vrot.lane.b32.xlu0 %v6255_v0, %s4913_s27  ;;  %v6329_v1 = vpop.permute.xlu1 %3316 }
 0x475   : > { %8022 = vst [vmem:[#allocation68_spill] sm:$0xff] %v6329_v1  ;;  %v6347_v1 = vpop.permute.xlu0 %3207 }
 0x476   : > { %8025 = vst [vmem:[#allocation71_spill] sm:$0xff] %v6347_v1 }
 0x477   : > { %2597 = vrot.lane.b32.xlu1 %v6252_v9, %s4913_s27 }
 0x478   : > { %2732 = vrot.lane.b32.xlu0 %v6255_v0, %s4914_s29  ;;  %v6343_v36 = vpop.permute.xlu1 %3332 }
 0x479   : > { %8024 = vst [vmem:[#allocation70_spill] sm:$0xff] %v6343_v36  ;;  %v6359_v52 = vpop.permute.xlu0 %3308 }
 0x47a   : > { %8027 = vst [vmem:[#allocation73_spill] sm:$0xff] %v6359_v52 }
 0x47b   : > { %2726 = vrot.lane.b32.xlu1 %v6252_v9, %s4914_s29 }
 0x47c   : > { %2863 = vrot.lane.b32.xlu0 %v6255_v0, %s4915_s30  ;;  %v6353_v44 = vpop.permute.xlu1 %3443 }
 0x47d   : > { %8026 = vst [vmem:[#allocation72_spill] sm:$0xff] %v6353_v44  ;;  %v6371_v44 = vpop.permute.xlu0 %3328 }
 0x47e   : > { %8029 = vst [vmem:[#allocation75_spill] sm:$0xff] %v6371_v44 }
 0x47f   : > { %2857 = vrot.lane.b32.xlu1 %v6252_v9, %s4915_s30 }
 0x480   : > { %2992 = vrot.lane.b32.xlu0 %v6255_v0, %s4916_s13  ;;  %v6367_v36 = vpop.permute.xlu1 %3455 }
 0x481   : > { %8028 = vst [vmem:[#allocation74_spill] sm:$0xff] %v6367_v36 }
 0x483   : > { %2986 = vrot.lane.b32.xlu1 %v6252_v9, %s4916_s13 }
 0x484   : > { %3121 = vrot.lane.b32.xlu0 %v6255_v0, %s4917_s28 }
 0x487   : > { %3115 = vrot.lane.b32.xlu1 %v6252_v9, %s4917_s28 }
 0x488   : > { %3244 = vrot.lane.b32.xlu0 %v6144_v27, %s4918_s14 }
 0x48b   : > { %2482 = vrot.lane.b32.xlu1 %v6299_v59, %s4912_s26 }
 0x48c   : > { %3252 = vrot.lane.b32.xlu0 %v6255_v0, %s4918_s14 }
 0x48f   : > { %2613 = vrot.lane.b32.xlu1 %v6299_v59, %s4913_s27 }
 0x490   : > { %3260 = vrot.lane.b32.xlu0 %v6191_v25, %s4918_s14 }
 0x493   : > { %2742 = vrot.lane.b32.xlu1 %v6299_v59, %s4914_s29 }
 0x494   : > { %2619 = vrot.lane.b32.xlu0 %v6315_v20, %s4913_s27 }
 0x497   : > { %2873 = vrot.lane.b32.xlu1 %v6299_v59, %s4915_s30 }
 0x498   : > { %2748 = vrot.lane.b32.xlu0 %v6315_v20, %s4914_s29 }
 0x49b   : > { %3002 = vrot.lane.b32.xlu1 %v6299_v59, %s4916_s13 }
 0x49c   : > { %2879 = vrot.lane.b32.xlu0 %v6315_v20, %s4915_s30 }
 0x49f   : > { %2468 = vrot.lane.b32.xlu1 %v6339_v53, %s4912_s26 }
 0x4a0   : > { %3008 = vrot.lane.b32.xlu0 %v6315_v20, %s4916_s13 }
 0x4a3   : > { %2599 = vrot.lane.b32.xlu1 %v6339_v53, %s4913_s27 }
 0x4a4   : > { %3137 = vrot.lane.b32.xlu0 %v6315_v20, %s4917_s28 }
 0x4a7   : > { %2728 = vrot.lane.b32.xlu1 %v6339_v53, %s4914_s29 }
 0x4a8   : > { %2474 = vrot.lane.b32.xlu0 %v6357_v63, %s4912_s26 }
 0x4ab   : > { %2859 = vrot.lane.b32.xlu1 %v6339_v53, %s4915_s30 }
 0x4ac   : > { %2605 = vrot.lane.b32.xlu0 %v6357_v63, %s4913_s27 }
 0x4af   : > { %2988 = vrot.lane.b32.xlu1 %v6339_v53, %s4916_s13 }
 0x4b0   : > { %2734 = vrot.lane.b32.xlu0 %v6357_v63, %s4914_s29 }
 0x4b1   : > { %v6377_v49 = vpop.permute.xlu1 %2462 }
 0x4b2   : > { %v6379_v52 = vpop.permute.xlu0 %2478 }
 0x4b3   : > { %2484 = vrot.lane.b32.xlu1 %v6161_v58, %s4912_s26 }
 0x4b4   : > { %2865 = vrot.lane.b32.xlu0 %v6357_v63, %s4915_s30 }
 0x4b5   : > { %v6385_v36 = vpop.permute.xlu1 %2593 }
 0x4b6   : > { %v6387_v1 = vpop.permute.xlu0 %2595 }
 0x4b7   : > { %8030 = vst [vmem:[#allocation76_spill] sm:$0xff] %v6387_v1  ;;  %2615 = vrot.lane.b32.xlu1 %v6161_v58, %s4913_s27 }
 0x4b8   : > { %2994 = vrot.lane.b32.xlu0 %v6357_v63, %s4916_s13 }
 0x4b9   : > { %v6393_v44 = vpop.permute.xlu1 %2722 }
 0x4ba   : > { %8031 = vst [vmem:[#allocation77_spill] sm:$0xff] %v6393_v44  ;;  %v6395_v6 = vpop.permute.xlu0 %2724 }
 0x4bb   : > { %8032 = vst [vmem:[#allocation78_spill] sm:$0xff] %v6395_v6  ;;  %2744 = vrot.lane.b32.xlu1 %v6161_v58, %s4914_s29 }
 0x4bc   : > { %3123 = vrot.lane.b32.xlu0 %v6357_v63, %s4917_s28 }
 0x4bd   : > { %v6401_v15 = vpop.permute.xlu1 %2853 }
 0x4be   : > { %8033 = vst [vmem:[#allocation79_spill] sm:$0xff] %v6401_v15  ;;  %v6407_v5 = vpop.permute.xlu0 %2855  ;;  %v7904_v15 = vmov 0.0  }
 0x4bf   : > { %8034 = vst [vmem:[#allocation80_spill] sm:$0xff] %v6407_v5  ;;  %2875 = vrot.lane.b32.xlu1 %v6161_v58, %s4915_s30 }
 0x4c0   : > { %2490 = vrot.lane.b32.xlu0 %v6405_v16, %s4912_s26 }
 0x4c1   : > { %v6413_v50 = vpop.permute.xlu1 %2982 }
 0x4c2   : > { %8035 = vst [vmem:[#allocation81_spill] sm:$0xff] %v6413_v50  ;;  %v6415_v8 = vpop.permute.xlu0 %2984 }
 0x4c3   : > { %8036 = vst [vmem:[#allocation82_spill] sm:$0xff] %v6415_v8  ;;  %3004 = vrot.lane.b32.xlu1 %v6161_v58, %s4916_s13 }
 0x4c4   : > { %2621 = vrot.lane.b32.xlu0 %v6405_v16, %s4913_s27 }
 0x4c5   : > { %v6421_v37 = vpop.permute.xlu1 %3111 }
 0x4c6   : > { %8037 = vst [vmem:[#allocation83_spill] sm:$0xff] %v6421_v37  ;;  %v6423_v40 = vpop.permute.xlu0 %3113  ;;  %v6457_v37 = vadd.f32 %v6193_v57, %v6074_v34 }
 0x4c7   : > { %8038 = vst [vmem:[#allocation84_spill] sm:$0xff] %v6423_v40  ;;  %2601 = vrot.lane.b32.xlu1 %v6232_v30, %s4913_s27 }
 0x4c8   : > { %2750 = vrot.lane.b32.xlu0 %v6405_v16, %s4914_s29 }
 0x4c9   : > { %v6429_v3 = vpop.permute.xlu1 %2609 }
 0x4ca   : > { %8039 = vst [vmem:[#allocation85_spill] sm:$0xff] %v6429_v3  ;;  %v6431_v61 = vpop.permute.xlu0 %2611 }
 0x4cb   : > { %8040 = vst [vmem:[#allocation86_spill] sm:$0xff] %v6431_v61  ;;  %2730 = vrot.lane.b32.xlu1 %v6232_v30, %s4914_s29 }
 0x4cc   : > { %2881 = vrot.lane.b32.xlu0 %v6405_v16, %s4915_s30 }
 0x4cd   : > { %v6437_v19 = vpop.permute.xlu1 %2738 }
 0x4ce   : > { %8041 = vst [vmem:[#allocation87_spill] sm:$0xff] %v6437_v19  ;;  %v6439_v42 = vpop.permute.xlu0 %2740 }
 0x4cf   : > { %8042 = vst [vmem:[#allocation88_spill] sm:$0xff] %v6439_v42  ;;  %2861 = vrot.lane.b32.xlu1 %v6232_v30, %s4915_s30 }
 0x4d0   : > { %3010 = vrot.lane.b32.xlu0 %v6405_v16, %s4916_s13 }
 0x4d1   : > { %v6445_v51 = vpop.permute.xlu1 %2869 }
 0x4d2   : > { %8043 = vst [vmem:[#allocation89_spill] sm:$0xff] %v6445_v51  ;;  %v6447_v40 = vpop.permute.xlu0 %2871 }
 0x4d3   : > { %8044 = vst [vmem:[#allocation90_spill] sm:$0xff] %v6447_v40  ;;  %2990 = vrot.lane.b32.xlu1 %v6232_v30, %s4916_s13 }
 0x4d4   : > { %3139 = vrot.lane.b32.xlu0 %v6405_v16, %s4917_s28 }
 0x4d5   : > { %v6453_v55 = vpop.permute.xlu1 %2998 }
 0x4d6   : > { %8045 = vst [vmem:[#allocation91_spill] sm:$0xff] %v6453_v55  ;;  %v6459_v8 = vpop.permute.xlu0 %3000  ;;  %v6572_v55 = vld [vmem:[%s5863_s18 + $0x18] sm:$0xff] }
 0x4d7   : > { %8046 = vst [vmem:[#allocation92_spill] sm:$0xff] %v6459_v8  ;;  %3119 = vrot.lane.b32.xlu1 %v6232_v30, %s4917_s28 }
 0x4d8   : > { %2476 = vrot.lane.b32.xlu0 %v6457_v37, %s4912_s26 }
 0x4d9   : > { %v6465_v31 = vpop.permute.xlu1 %3127 }
 0x4da   : > { %8047 = vst [vmem:[#allocation93_spill] sm:$0xff] %v6465_v31  ;;  %v6467_v7 = vpop.permute.xlu0 %3129 }
 0x4db   : > { %8048 = vst [vmem:[#allocation94_spill] sm:$0xff] %v6467_v7  ;;  %2617 = vrot.lane.b32.xlu1 %v6241_v39, %s4913_s27 }
 0x4dc   : > { %2607 = vrot.lane.b32.xlu0 %v6457_v37, %s4913_s27 }
 0x4dd   : > { %v6473_v57 = vpop.permute.xlu1 %2464 }
 0x4de   : > { %v6475_v40 = vpop.permute.xlu0 %2470 }
 0x4df   : > { %8049 = vst [vmem:[#allocation95_spill] sm:$0xff] %v6475_v40  ;;  %2746 = vrot.lane.b32.xlu1 %v6241_v39, %s4914_s29 }
 0x4e0   : > { %2736 = vrot.lane.b32.xlu0 %v6457_v37, %s4914_s29 }
 0x4e1   : > { %v6481_v8 = vpop.permute.xlu1 %2480 }
 0x4e2   : > { %v6483_v31 = vpop.permute.xlu0 %2486 }
 0x4e3   : > { %8050 = vst [vmem:[#allocation96_spill] sm:$0xff] %v6483_v31  ;;  %2877 = vrot.lane.b32.xlu1 %v6241_v39, %s4915_s30  ;;  %v6501_v31 = vadd.f32 %v6195_v22, %v6074_v34 }
 0x4e4   : > { %2867 = vrot.lane.b32.xlu0 %v6457_v37, %s4915_s30 }
 0x4e5   : > { %v6489_v7 = vpop.permute.xlu1 %2466 }
 0x4e6   : > { %8051 = vst [vmem:[#allocation97_spill] sm:$0xff] %v6489_v7  ;;  %v6491_v5 = vpop.permute.xlu0 %2603 }
 0x4e7   : > { %8052 = vst [vmem:[#allocation98_spill] sm:$0xff] %v6491_v5  ;;  %3006 = vrot.lane.b32.xlu1 %v6241_v39, %s4916_s13 }
 0x4e8   : > { %2996 = vrot.lane.b32.xlu0 %v6457_v37, %s4916_s13 }
 0x4e9   : > { %v6497_v40 = vpop.permute.xlu1 %2597 }
 0x4ea   : > { %8053 = vst [vmem:[#allocation99_spill] sm:$0xff] %v6497_v40  ;;  %v6503_v50 = vpop.permute.xlu0 %2732 }
 0x4eb   : > { %8054 = vst [vmem:[#allocation100_spill] sm:$0xff] %v6503_v50  ;;  %3135 = vrot.lane.b32.xlu1 %v6241_v39, %s4917_s28 }
 0x4ec   : > { %2492 = vrot.lane.b32.xlu0 %v6501_v31, %s4912_s26 }
 0x4ed   : > { %v6509_v5 = vpop.permute.xlu1 %2726 }
 0x4ee   : > { %8055 = vst [vmem:[#allocation101_spill] sm:$0xff] %v6509_v5  ;;  %v6511_v7 = vpop.permute.xlu0 %2863 }
 0x4ef   : > { %8056 = vst [vmem:[#allocation102_spill] sm:$0xff] %v6511_v7  ;;  %2472 = vrot.lane.b32.xlu1 %v6255_v0, %s4912_s26 }
 0x4f0   : > { %2623 = vrot.lane.b32.xlu0 %v6501_v31, %s4913_s27 }
 0x4f1   : > { %v6517_v34 = vpop.permute.xlu1 %2857 }
 0x4f2   : > { %8057 = vst [vmem:[#allocation103_spill] sm:$0xff] %v6517_v34  ;;  %v6519_v22 = vpop.permute.xlu0 %2992 }
 0x4f3   : > { %8058 = vst [vmem:[#allocation104_spill] sm:$0xff] %v6519_v22  ;;  %2488 = vrot.lane.b32.xlu1 %v6315_v20, %s4912_s26 }
 0x4f4   : > { %2752 = vrot.lane.b32.xlu0 %v6501_v31, %s4914_s29 }
 0x4f5   : > { %v6525_v50 = vpop.permute.xlu1 %2986 }
 0x4f6   : > { %8059 = vst [vmem:[#allocation105_spill] sm:$0xff] %v6525_v50  ;;  %v6527_v5 = vpop.permute.xlu0 %3121 }
 0x4f7   : > { %8060 = vst [vmem:[#allocation106_spill] sm:$0xff] %v6527_v5  ;;  %3131 = vrot.lane.b32.xlu1 %v6299_v59, %s4917_s28 }
 0x4f8   : > { %2883 = vrot.lane.b32.xlu0 %v6501_v31, %s4915_s30 }
 0x4f9   : > { %v6533_v7 = vpop.permute.xlu1 %3115 }
 0x4fa   : > { %8061 = vst [vmem:[#allocation107_spill] sm:$0xff] %v6533_v7  ;;  %v6535_v22 = vpop.permute.xlu0 %3244 }
 0x4fb   : > { %8062 = vst [vmem:[#allocation108_spill] sm:$0xff] %v6535_v22  ;;  %3242 = vrot.lane.b32.xlu1 %v6132_v28, %s4918_s14 }
 0x4fc   : > { %3012 = vrot.lane.b32.xlu0 %v6501_v31, %s4916_s13 }
 0x4fd   : > { %v6541_v50 = vpop.permute.xlu1 %2482 }
 0x4fe   : > { %8063 = vst [vmem:[#allocation109_spill] sm:$0xff] %v6541_v50  ;;  %v6543_v5 = vpop.permute.xlu0 %3252  ;;  %v6564_v50 = vld [vmem:[%s5863_s18] sm:$0xff] }
 0x4ff   : > { %8064 = vst [vmem:[#allocation110_spill] sm:$0xff] %v6543_v5  ;;  %3250 = vrot.lane.b32.xlu1 %v6232_v30, %s4918_s14  ;;  %v8069_v5 = vmov 11  }
 0x500   : > { %3268 = vrot.lane.b32.xlu0 %v6315_v20, %s4918_s14 }
 0x501   : > { %v6549_v7 = vpop.permute.xlu1 %2613 }
 0x502   : > { %8065 = vst [vmem:[#allocation111_spill] sm:$0xff] %v6549_v7  ;;  %v6551_v34 = vpop.permute.xlu0 %3260 }
 0x503   : > { %8066 = vst [vmem:[#allocation112_spill] sm:$0xff] %v6551_v34  ;;  %3258 = vrot.lane.b32.xlu1 %v6134_v14, %s4918_s14 }
 0x504   : > { %3336 = vperm.xlu0 %4788, %v5917_v23  }
 0x505   : > { %v6556_v22 = vpop.permute.xlu1 %2742 }
 0x506   : > { %8067 = vst [vmem:[#allocation113_spill] sm:$0xff] %v6556_v22  ;;  %v6558_v40 = vpop.permute.xlu0 %2619  ;;  %v6582_v22 = vld [vmem:[%s5863_s18 + $0x10] sm:$0xff] }
 0x507   : > { %8068 = vst [vmem:[#allocation114_spill] sm:$0xff] %v6558_v40  ;;  %3266 = vrot.lane.b32.xlu1 %v6241_v39, %s4918_s14 }
 0x508   : > { %4792 = vset.pattern.permute.xlu0 %v8069_v5 }
 0x509   : > { %3439 = vperm.xlu0 %4792, %v6564_v50   ;;  %v6567_v34 = vpop.permute.xlu1 %2873 }
 0x50a   : > { %8070 = vst [vmem:[#allocation115_spill] sm:$0xff] %v6567_v34  ;;  %v6569_v7 = vpop.permute.xlu0 %2748 }
 0x50b   : > { %8071 = vst [vmem:[#allocation116_spill] sm:$0xff] %v6569_v7  ;;  %3320 = vperm.xlu1 %4791, %v6572_v55  }
 0x50d   : > { %3459 = vperm.xlu0 %4792, %v5905_v48   ;;  %v6576_v23 = vpop.permute.xlu1 %3002 }
 0x50e   : > { %8072 = vst [vmem:[#allocation117_spill] sm:$0xff] %v6576_v23  ;;  %v6578_v40 = vpop.permute.xlu0 %2879 }
 0x50f   : > { %8073 = vst [vmem:[#allocation118_spill] sm:$0xff] %v6578_v40  ;;  %4793 = vset.pattern.permute.xlu1 %v8069_v5 }
 0x510   : > { %3447 = vperm.xlu1 %4793, %v6582_v22  }
 0x511   : > { %3117 = vrot.lane.b32.xlu0 %v6339_v53, %s4917_s28  ;;  %v6587_v7 = vpop.permute.xlu1 %2468 }
 0x512   : > { %8074 = vst [vmem:[#allocation119_spill] sm:$0xff] %v6587_v7  ;;  %v6589_v34 = vpop.permute.xlu0 %3008 }
 0x513   : > { %8075 = vst [vmem:[#allocation120_spill] sm:$0xff] %v6589_v34 }
 0x514   : > { %3463 = vperm.xlu1 %4793, %v5912_v13  }
 0x515   : > { %3133 = vrot.lane.b32.xlu0 %v6161_v58, %s4917_s28  ;;  %v6594_v48 = vpop.permute.xlu1 %2599 }
 0x516   : > { %8076 = vst [vmem:[#allocation121_spill] sm:$0xff] %v6594_v48  ;;  %v6596_v40 = vpop.permute.xlu0 %3137 }
 0x517   : > { %8077 = vst [vmem:[#allocation122_spill] sm:$0xff] %v6596_v40  ;;  %v2088_v40 = vlaneseq }
 0x518   : > { %3125 = vrot.lane.b32.xlu1 %v6457_v37, %s4917_s28 }
 0x519   : > { %3246 = vrot.lane.b32.xlu0 %v6252_v9, %s4918_s14  ;;  %v6602_v5 = vpop.permute.xlu1 %2728  ;;  %v6620_v23 = vand.u32 127, %v2088_v40 }
 0x51a   : > { %8078 = vst [vmem:[#allocation123_spill] sm:$0xff] %v6602_v5  ;;  %v2475_v7 = vpop.permute.xlu0 %2474 }
 0x51b   : > { %v6631_v56 = vadd.s32 128, %v6620_v23  ;;  %vm2115_vm1 = vcmp.ge.s32.totalorder %v6620_v23, 16  ;;  %vm2494_vm4 = vcmp.lt.s32.totalorder %v6620_v23, 17  ;;  %vm2625_vm6 = vcmp.lt.s32.totalorder %v6620_v23, 16 }
 0x51c   : > { %3141 = vrot.lane.b32.xlu1 %v6501_v31, %s4917_s28  ;;  %vm2754_vm8 = vcmp.lt.s32.totalorder %v6620_v23, 15  ;;  %vm2885_vm9 = vcmp.lt.s32.totalorder %v6620_v23, 1  ;;  %vm3014_vm11 = vcmp.lt.s32.totalorder %v6620_v23, 127  ;;  %vm3143_vm12 = vcmp.lt.s32.totalorder %v6620_v23, 113 }
 0x51d   : > { %3262 = vrot.lane.b32.xlu0 %v6299_v59, %s4918_s14  ;;  %v6608_v13 = vpop.permute.xlu1 %2859  ;;  %vm2122_vm10 = vcmp.lt.s32.totalorder %v6631_v56, 240  ;;  %vm3274_vm13 = vcmp.lt.s32.totalorder %v6620_v23, 112  ;;  %vm3403_vm14 = vcmp.lt.s32.totalorder %v6620_v23, 111 }
 0x51e   : > { %8079 = vst [vmem:[#allocation124_spill] sm:$0xff] %v6608_v13  ;;  %v2606_v48 = vpop.permute.xlu0 %2605 }
 0x520   : > { %3254 = vrot.lane.b32.xlu1 %v6357_v63, %s4918_s14 }
 0x521   : > { %3371 = vrot.lane.b32.xlu0 %v6132_v28, %s4919_s15  ;;  %v6614_v34 = vpop.permute.xlu1 %2988 }
 0x522   : > { %8080 = vst [vmem:[#allocation125_spill] sm:$0xff] %v6614_v34  ;;  %v6616_v5 = vpop.permute.xlu0 %2734  ;;  %v2095_v34 = vand.u32 15, %v6620_v23 }
 0x524   : > { %3270 = vrot.lane.b32.xlu1 %v6405_v16, %s4918_s14  ;;  %vm2127_vm2 = vcmp.gt.s32.totalorder %v2095_v34, 0  ;;  %vm2133_vm5 = vcmp.lt.s32.totalorder %v2095_v34, 15  ;;  %v4834_v34 = vld [vmem:[%s5863_s18 + $0x8] sm:$0xff] }
 0x525   : > { %3379 = vrot.lane.b32.xlu0 %v6232_v30, %s4919_s15  ;;  %v6624_v13 = vpop.permute.xlu1 %2484  ;;  %v6654_v6 = vsel %vm2127_vm2, 1.0, %v7904_v15  ;;  %v6682_v62 = vsel %vm2133_vm5, 1.0, %v8086_v41 }
 0x526   : > { %8081 = vst [vmem:[#allocation126_spill] sm:$0xff] %v6624_v13  ;;  %v6626_v11 = vpop.permute.xlu0 %2865  ;;  %v2102_v13 = vand.u32 15, %v6631_v56 }
 0x528   : > { %3373 = vrot.lane.b32.xlu1 %v6144_v27, %s4919_s15  ;;  %vm2128_vm3 = vcmp.gt.s32.totalorder %v2102_v13, 0  ;;  %vm2134_vm7 = vcmp.lt.s32.totalorder %v2102_v13, 15 }
 0x529   : > { %3387 = vrot.lane.b32.xlu0 %v6134_v14, %s4919_s15  ;;  %v6636_v40 = vpop.permute.xlu1 %2615 }
 0x52a   : > { %8082 = vst [vmem:[#allocation127_spill] sm:$0xff] %v6636_v40  ;;  %v6638_v29 = vpop.permute.xlu0 %2994  ;;  %v6651_v40 = vsel %vm2115_vm1, 1.0, %v7904_v15 }
 0x52c   : > { %3381 = vrot.lane.b32.xlu1 %v6255_v0, %s4919_s15  ;;  %v6667_v0 = vsel %vm2128_vm3, 1.0, %v7904_v15 }
 0x52d   : > { %3395 = vrot.lane.b32.xlu0 %v6241_v39, %s4919_s15  ;;  %v6646_v24 = vpop.permute.xlu1 %2744  ;;  %v4921_v39 = vmov 12  }
 0x52e   : > { %8083 = vst [vmem:[#allocation128_spill] sm:$0xff] %v6646_v24  ;;  %v6648_v51 = vpop.permute.xlu0 %3123  ;;  %v6664_v24 = vmul.f32 %v6654_v6, %v6651_v40 }
 0x530   : > { %3389 = vrot.lane.b32.xlu1 %v6191_v25, %s4919_s15 }
 0x531   : > { %3451 = vperm.xlu0 %4792, %v6572_v55   ;;  %v6659_v42 = vpop.permute.xlu1 %2875 }
 0x532   : > { %8084 = vst [vmem:[#allocation129_spill] sm:$0xff] %v6659_v42  ;;  %v2491_v32 = vpop.permute.xlu0 %2490 }
 0x533   : > { %v2501_v1 = vsel %vm2494_vm4, %v2475_v7, %v2491_v32  ;;  %v2509_v61 = vsel %vm2494_vm4, %v2491_v32, %v2475_v7 }
 0x534   : > { %3397 = vrot.lane.b32.xlu1 %v6315_v20, %s4919_s15  ;;  %v2526_v42 = vmul.f32 %v6667_v0, %v2501_v1  ;;  %v2525_v15 = vmul.f32 %v6664_v24, %v2509_v61  ;;  %v6688_v1 = vld [vmem:[%s5863_s18 + $0x38] sm:$0xff]  ;;  %v2459_v61 = vmul.f32 %v6086_v54, %v6405_v16  ;;  %v6699_v20 = vsel %vm2134_vm7, 1.0, %v8086_v41 }
 0x535   : > { %4795 = vset.pattern.permute.xlu0 %v4921_v39  ;;  %v6676_v43 = vpop.permute.xlu1 %3004 }
 0x536   : > { %8085 = vst [vmem:[#allocation130_spill] sm:$0xff] %v6676_v43  ;;  %v2622_v30 = vpop.permute.xlu0 %2621  ;;  %3507 = vperm.xlu0 %4795, %v4834_v34   ;;  %v2574_v7 = vmul.f32 %v6156_v10, %v2526_v42  ;;  %v6704_v42 = vmul.f32 %v6682_v62, %v6651_v40  ;;  %v2573_v19 = vmul.f32 %v6156_v10, %v2525_v15 }
 0x537   : > { %v2640_v32 = vsel %vm2625_vm6, %v2622_v30, %v2606_v48  ;;  %v2632_v34 = vsel %vm2625_vm6, %v2606_v48, %v2622_v30  ;;  %v2458_v30 = vmul.f32 %v6086_v54, %v6357_v63 }
 0x538   : > { %3467 = vperm.xlu1 %4793, %v6688_v1   ;;  %v2654_v13 = vmul.f32 %v6651_v40, %v2640_v32  ;;  %v2590_v48 = vadd.f32 %v2574_v7, %v2459_v61  ;;  %v2703_v15 = vmul.f32 %v6203_v4, %v2632_v34 }
 0x539   : > { %v6696_v43 = vpop.permute.xlu1 %2601  ;;  %v2589_v7 = vadd.f32 %v2573_v19, %v2458_v30 }
 0x53a   : > { %8087 = vst [vmem:[#allocation131_spill] sm:$0xff] %v6696_v43  ;;  %v2751_v44 = vpop.permute.xlu0 %2750  ;;  %3248 = vrot.lane.b32.xlu0 %v6339_v53, %s4918_s14  ;;  %v2702_v25 = vmul.f32 %v6203_v4, %v2654_v13  ;;  %v2719_v19 = vadd.f32 %v2703_v15, %v2590_v48 }
 0x53b   : > { %v2761_v32 = vsel %vm2754_vm8, %v6616_v5, %v2751_v44  ;;  %v2769_v43 = vsel %vm2754_vm8, %v2751_v44, %v6616_v5 }
 0x53c   : > { %v2785_v10 = vmul.f32 %v6704_v42, %v2769_v43  ;;  %v2786_v3 = vmul.f32 %v6699_v20, %v2761_v32  ;;  %4794 = vset.pattern.permute.xlu1 %v4921_v39 }
 0x53d   : > { %3503 = vperm.xlu1 %4794, %v6564_v50   ;;  %v6722_v54 = vpop.permute.xlu1 %2730  ;;  %v2718_v50 = vadd.f32 %v2702_v25, %v2589_v7  ;;  %v6749_v25 = vsel %vm2122_vm10, 1.0, %v8086_v41 }
 0x53e   : > { %v2833_v61 = vmul.f32 %v6116_v26, %v2785_v10  ;;  %v2834_v44 = vmul.f32 %v6116_v26, %v2786_v3  ;;  %v2882_v5 = vpop.permute.xlu0 %2881  ;;  %3264 = vrot.lane.b32.xlu0 %v6161_v58, %s4918_s14  ;;  %v4836_v26 = vld [vmem:[%s5863_s18 + $0x20] sm:$0xff]  ;;  %v6765_v41 = vmul.f32 %v6667_v0, %v6749_v25 }
 0x53f   : > { %v2892_v4 = vsel %vm2885_vm9, %v6626_v11, %v2882_v5  ;;  %v2900_v43 = vsel %vm2885_vm9, %v2882_v5, %v6626_v11  ;;  %v4837_v5 = vld [vmem:[%s5863_s18 + $0x28] sm:$0xff] }
 0x540   : > { %v2914_v39 = vmul.f32 %v6654_v6, %v2900_v43  ;;  %v2915_v3 = vmul.f32 %v6667_v0, %v2892_v4  ;;  %v2849_v13 = vadd.f32 %v2833_v61, %v2718_v50  ;;  %v2850_v30 = vadd.f32 %v2834_v44, %v2719_v19 }
 0x541   : > { %3519 = vperm.xlu1 %4794, %v4836_v26   ;;  %v6740_v34 = vpop.permute.xlu1 %2861 }
 0x542   : > { %v2962_v32 = vmul.f32 %v6152_v60, %v2914_v39  ;;  %v2963_v10 = vmul.f32 %v6152_v60, %v2915_v3  ;;  %v3011_v11 = vpop.permute.xlu0 %3010  ;;  %3375 = vrot.lane.b32.xlu0 %v6252_v9, %s4919_s15 }
 0x543   : > { %v3021_v48 = vsel %vm3014_vm11, %v6638_v29, %v3011_v11  ;;  %v3029_v15 = vsel %vm3014_vm11, %v3011_v11, %v6638_v29 }
 0x544   : > { %v2978_v7 = vadd.f32 %v2962_v32, %v2849_v13  ;;  %v2979_v61 = vadd.f32 %v2963_v10, %v2850_v30  ;;  %v3043_v60 = vmul.f32 %v6682_v62, %v3021_v48  ;;  %v3044_v44 = vmul.f32 %v6699_v20, %v3029_v15 }
 0x545   : > { %3523 = vperm.xlu1 %4794, %v4837_v5   ;;  %v6760_v4 = vpop.permute.xlu1 %2990 }
 0x546   : > { %v3091_v56 = vmul.f32 %v6219_v45, %v3043_v60  ;;  %v3092_v29 = vmul.f32 %v6219_v45, %v3044_v44  ;;  %v3140_v43 = vpop.permute.xlu0 %3139  ;;  %3391 = vrot.lane.b32.xlu0 %v6299_v59, %s4919_s15  ;;  %v4838_v60 = vld [vmem:[%s5863_s18 + $0x30] sm:$0xff] }
 0x547   : > { %v3150_v50 = vsel %vm3143_vm12, %v6648_v51, %v3140_v43  ;;  %v3158_v19 = vsel %vm3143_vm12, %v3140_v43, %v6648_v51 }
 0x548   : > { %v3107_v39 = vadd.f32 %v3091_v56, %v2978_v7  ;;  %v3108_v3 = vadd.f32 %v3092_v29, %v2979_v61  ;;  %v3174_v26 = vmul.f32 %v6654_v6, %v3150_v50  ;;  %v3175_v13 = vmul.f32 %v6765_v41, %v3158_v19 }
 0x549   : > { %3256 = vrot.lane.b32.xlu1 %v6457_v37, %s4918_s14  ;;  %v6781_v45 = vpop.permute.xlu1 %3119  ;;  %v2461_v50 = vmul.f32 %v6130_v2, %v6501_v31 }
 0x54a   : > { %v3222_v30 = vmul.f32 %v6281_v18, %v3174_v26  ;;  %v3223_v32 = vmul.f32 %v6281_v18, %v3175_v13  ;;  %v2477_v10 = vpop.permute.xlu0 %2476  ;;  %3511 = vperm.xlu0 %4795, %v6582_v22  }
 0x54c   : > { %v6786_v51 = vadd.f32 %v3223_v32, %v3108_v3  ;;  %v6788_v11 = vadd.f32 %v3222_v30, %v3107_v39  ;;  %v2460_v32 = vmul.f32 %v6130_v2, %v6457_v37 }
 0x54d   : > { %3272 = vrot.lane.b32.xlu1 %v6501_v31, %s4918_s14  ;;  %v6792_v48 = vpop.permute.xlu1 %2617 }
 0x54e   : > { %8088 = vst [vmem:[#allocation132_spill] sm:$0xff] %v6786_v51  ;;  %8089 = vst [vmem:[#allocation133_spill] sm:$0xff] %v6788_v11  ;;  %v2608_v15 = vpop.permute.xlu0 %2607  ;;  %3377 = vrot.lane.b32.xlu0 %v6339_v53, %s4919_s15 }
 0x551   : > { %3383 = vrot.lane.b32.xlu1 %v6357_v63, %s4919_s15  ;;  %v6798_v18 = vpop.permute.xlu1 %2746 }
 0x552   : > { %v2737_v7 = vpop.permute.xlu0 %2736  ;;  %3393 = vrot.lane.b32.xlu0 %v6161_v58, %s4919_s15 }
 0x555   : > { %3399 = vrot.lane.b32.xlu1 %v6405_v16, %s4919_s15  ;;  %v6804_v22 = vpop.permute.xlu1 %2877 }
 0x556   : > { %v2868_v61 = vpop.permute.xlu0 %2867  ;;  %3515 = vperm.xlu0 %4795, %v6572_v55  }
 0x559   : > { %3527 = vperm.xlu1 %4794, %v4838_v60   ;;  %v6808_v44 = vpop.permute.xlu1 %3006 }
 0x55a   : > { %v2997_v5 = vpop.permute.xlu0 %2996 }
 0x55d   : > { %3385 = vrot.lane.b32.xlu1 %v6457_v37, %s4919_s15  ;;  %v6812_v63 = vpop.permute.xlu1 %3135 }
 0x55e   : > { %v2493_v56 = vpop.permute.xlu0 %2492 }
 0x55f   : > { %v2502_v29 = vsel %vm2494_vm4, %v2477_v10, %v2493_v56  ;;  %v2510_v16 = vsel %vm2494_vm4, %v2493_v56, %v2477_v10 }
 0x560   : > { %v2527_v43 = vmul.f32 %v6664_v24, %v2510_v16  ;;  %v2528_v55 = vmul.f32 %v6667_v0, %v2502_v29 }
 0x561   : > { %3401 = vrot.lane.b32.xlu1 %v6501_v31, %s4919_s15  ;;  %v6824_v19 = vpop.permute.xlu1 %2472 }
 0x562   : > { %v2624_v39 = vpop.permute.xlu0 %2623  ;;  %v2575_v3 = vmul.f32 %v6098_v38, %v2527_v43  ;;  %v2576_v26 = vmul.f32 %v6098_v38, %v2528_v55 }
 0x563   : > { %v2633_v13 = vsel %vm2625_vm6, %v2608_v15, %v2624_v39  ;;  %v2641_v30 = vsel %vm2625_vm6, %v2624_v39, %v2608_v15 }
 0x564   : > { %v2656_v10 = vmul.f32 %v6651_v40, %v2641_v30  ;;  %v2705_v31 = vmul.f32 %v6211_v47, %v2633_v13  ;;  %v2592_v60 = vadd.f32 %v2576_v26, %v2461_v50  ;;  %v2591_v56 = vadd.f32 %v2575_v3, %v2460_v32 }
 0x565   : > { %3531 = vperm.xlu1 %4794, %v6688_v1   ;;  %v6840_v15 = vpop.permute.xlu1 %2488 }
 0x566   : > { %v2704_v29 = vmul.f32 %v6211_v47, %v2656_v10  ;;  %v2753_v38 = vpop.permute.xlu0 %2752  ;;  %v2721_v16 = vadd.f32 %v2705_v31, %v2592_v60 }
 0x567   : > { %v2762_v43 = vsel %vm2754_vm8, %v2737_v7, %v2753_v38  ;;  %v2770_v2 = vsel %vm2754_vm8, %v2753_v38, %v2737_v7 }
 0x568   : > { %v2720_v55 = vadd.f32 %v2704_v29, %v2591_v56  ;;  %v2788_v37 = vmul.f32 %v6699_v20, %v2762_v43  ;;  %v2787_v50 = vmul.f32 %v6704_v42, %v2770_v2  ;;  %v2503_v43 = vsel %vm2494_vm4, %v6379_v52, %v6377_v49 }
 0x569   : > { %v6852_v32 = vpop.permute.xlu1 %3131 }
 0x56a   : > { %v2836_v1 = vmul.f32 %v6234_v33, %v2788_v37  ;;  %v2884_v39 = vpop.permute.xlu0 %2883  ;;  %v2835_v47 = vmul.f32 %v6234_v33, %v2787_v50  ;;  %8090 = vst [vmem:[#allocation134_spill] sm:$0xff] %v6852_v32  ;;  %v2446_v37 = vmul.f32 %v6118_v21, %v6132_v28  ;;  %v2513_v50 = vmul.f32 %v6664_v24, %v2503_v43 }
 0x56b   : > { %v2893_v26 = vsel %vm2885_vm9, %v2868_v61, %v2884_v39  ;;  %v2901_v13 = vsel %vm2885_vm9, %v2884_v39, %v2868_v61  ;;  %v2448_v28 = vmul.f32 %v6076_v12, %v6144_v27 }
 0x56c   : > { %v2852_v3 = vadd.f32 %v2836_v1, %v2721_v16  ;;  %v2851_v30 = vadd.f32 %v2835_v47, %v2720_v55  ;;  %v2916_v7 = vmul.f32 %v6654_v6, %v2901_v13  ;;  %v2917_v10 = vmul.f32 %v6667_v0, %v2893_v26 }
 0x56d   : > { %v2495_v16 = vsel %vm2494_vm4, %v6377_v49, %v6379_v52  ;;  %v2504_v1 = vsel %vm2494_vm4, %v6481_v8, %v6473_v57  ;;  %v6881_v39 = vpop.permute.xlu1 %3242  ;;  %v2447_v49 = vmul.f32 %v6118_v21, %v6134_v14  ;;  %v6898_v26 = vmul.f32 %v6126_v46, %v6252_v9  ;;  %v8091_v21 = vld [vmem:[#allocation85_spill] sm:$0xff] }
 0x56e   : > { %v3013_v31 = vpop.permute.xlu0 %3012  ;;  %v2964_v56 = vmul.f32 %v6275_v35, %v2916_v7  ;;  %v2965_v29 = vmul.f32 %v6275_v35, %v2917_v10  ;;  %v6902_v13 = vmul.f32 %v6126_v46, %v6299_v59  ;;  %v2634_v14 = vsel %vm2625_vm6, %v8091_v21, %v6385_v36  ;;  %v8093_v7 = vld [vmem:[#allocation77_spill] sm:$0xff]  ;;  %v8094_v10 = vld [vmem:[#allocation87_spill] sm:$0xff]  ;;  %v8098_v59 = vld [vmem:[#allocation24_spill] sm:$0xff] }
 0x56f   : > { %v3022_v60 = vsel %vm3014_vm11, %v2997_v5, %v3013_v31  ;;  %v3030_v33 = vsel %vm3014_vm11, %v3013_v31, %v2997_v5  ;;  %v2515_v9 = vmul.f32 %v6664_v24, %v2504_v1  ;;  %v8104_v1 = vld [vmem:[#allocation57_spill] sm:$0xff] }
 0x570   : > { %v3045_v61 = vmul.f32 %v6682_v62, %v3022_v60  ;;  %v3046_v38 = vmul.f32 %v6699_v20, %v3030_v33  ;;  %v2980_v55 = vadd.f32 %v2964_v56, %v2851_v30  ;;  %v2981_v5 = vadd.f32 %v2965_v29, %v2852_v3  ;;  %v8092_v30 = vld [vmem:[#allocation48_spill] sm:$0xff]  ;;  %v8099_v56 = vld [vmem:[#allocation53_spill] sm:$0xff]  ;;  %v8100_v29 = vld [vmem:[#allocation23_spill] sm:$0xff] }
 0x571   : > { %v2496_v3 = vsel %vm2494_vm4, %v6473_v57, %v6481_v8  ;;  %v2449_v27 = vmul.f32 %v6076_v12, %v8092_v30  ;;  %v2763_v8 = vsel %vm2754_vm8, %v8094_v10, %v8093_v7  ;;  %v8095_v57 = vld [vmem:[#allocation31_spill] sm:$0xff]  ;;  %v2561_v60 = vmul.f32 %v8098_v59, %v2513_v50  ;;  %v8108_v30 = vld [vmem:[#allocation78_spill] sm:$0xff] }
 0x572   : > { %v3093_v2 = vmul.f32 %v6307_v17, %v3045_v61  ;;  %v3094_v35 = vmul.f32 %v6307_v17, %v3046_v38  ;;  %v2514_v17 = vmul.f32 %v6667_v0, %v2495_v16  ;;  %v6917_v31 = vmul.f32 %v8095_v57, %v6339_v53  ;;  %v8101_v16 = vld [vmem:[#allocation54_spill] sm:$0xff] }
 0x573   : > { %v6921_v46 = vmul.f32 %v8095_v57, %v6161_v58  ;;  %v2755_v12 = vsel %vm2754_vm8, %v8093_v7, %v8094_v10  ;;  %v2516_v33 = vmul.f32 %v6667_v0, %v2496_v3  ;;  %v6931_v61 = vmul.f32 %v8100_v29, %v8099_v56  ;;  %v6956_v3 = vpop.permute.xlu1 %3250  ;;  %v8109_v10 = vld [vmem:[#allocation79_spill] sm:$0xff]  ;;  %v8110_v57 = vld [vmem:[#allocation89_spill] sm:$0xff] }
 0x574   : > { %v6883_v47 = vadd.f32 %v3093_v2, %v2980_v55  ;;  %v6885_v52 = vadd.f32 %v3094_v35, %v2981_v5  ;;  %8096 = vst [vmem:[#allocation85_spill] sm:$0xff] %v6917_v31  ;;  %v2562_v53 = vmul.f32 %v8098_v59, %v2514_v17  ;;  %v2626_v58 = vsel %vm2625_vm6, %v6385_v36, %v8091_v21  ;;  %v8102_v55 = vld [vmem:[#allocation86_spill] sm:$0xff]  ;;  %v8103_v5 = vld [vmem:[#allocation76_spill] sm:$0xff]  ;;  %v8105_v36 = vld [vmem:[#allocation39_spill] sm:$0xff] }
 0x575   : > { %8097 = vst [vmem:[#allocation48_spill] sm:$0xff] %v6921_v46  ;;  %v2642_v38 = vmul.f32 %v6651_v40, %v2634_v14  ;;  %v6941_v43 = vmul.f32 %v8100_v29, %v8101_v16  ;;  %v2627_v2 = vsel %vm2625_vm6, %v8103_v5, %v8102_v55  ;;  %v2635_v35 = vsel %vm2625_vm6, %v8102_v55, %v8103_v5  ;;  %v8107_v14 = vld [vmem:[#allocation88_spill] sm:$0xff]  ;;  %v8111_v56 = vld [vmem:[#allocation43_spill] sm:$0xff] }
 0x576   : > { %v2773_v50 = vmul.f32 %v6704_v42, %v2763_v8  ;;  %v6954_v17 = vmul.f32 %v8105_v36, %v8104_v1  ;;  %8106 = vst [vmem:[#allocation77_spill] sm:$0xff] %v6956_v3  ;;  %v2774_v21 = vmul.f32 %v6699_v20, %v2755_v12  ;;  %v2756_v7 = vsel %vm2754_vm8, %v8108_v30, %v8107_v14  ;;  %v8112_v16 = vld [vmem:[#allocation28_spill] sm:$0xff]  ;;  %v8113_v1 = vld [vmem:[#allocation65_spill] sm:$0xff] }
 0x577   : > { %v2894_v59 = vsel %vm2885_vm9, %v8110_v57, %v8109_v10  ;;  %v2563_v8 = vmul.f32 %v8111_v56, %v2515_v9  ;;  %v2577_v29 = vadd.f32 %v2561_v60, %v2446_v37  ;;  %v2691_v55 = vmul.f32 %v8112_v16, %v2626_v58  ;;  %v8114_v9 = vld [vmem:[#allocation29_spill] sm:$0xff] }
 0x578   : > { %v2564_v5 = vmul.f32 %v8111_v56, %v2516_v33  ;;  %v6972_v12 = vmul.f32 %v8105_v36, %v8113_v1  ;;  %v2578_v51 = vadd.f32 %v2562_v53, %v2447_v49  ;;  %v2690_v11 = vmul.f32 %v8112_v16, %v2642_v38  ;;  %v8115_v53 = vld [vmem:[#allocation33_spill] sm:$0xff]  ;;  %v8119_v16 = vld [vmem:[#allocation80_spill] sm:$0xff]  ;;  %v8120_v1 = vld [vmem:[#allocation90_spill] sm:$0xff] }
 0x579   : > { %v2644_v46 = vmul.f32 %v6651_v40, %v2635_v35  ;;  %v2764_v32 = vsel %vm2754_vm8, %v8107_v14, %v8108_v30  ;;  %v2693_v37 = vmul.f32 %v8114_v9, %v2627_v2  ;;  %v2776_v60 = vmul.f32 %v6699_v20, %v2756_v7  ;;  %v8116_v35 = vld [vmem:[#allocation91_spill] sm:$0xff]  ;;  %v8117_v36 = vld [vmem:[#allocation81_spill] sm:$0xff]  ;;  %v6993_v2 = vpop.permute.xlu0 %3268 }
 0x57a   : > { %v2886_v33 = vsel %vm2885_vm9, %v8109_v10, %v8110_v57  ;;  %v2902_v49 = vmul.f32 %v6654_v6, %v2894_v59  ;;  %v2821_v58 = vmul.f32 %v8115_v53, %v2773_v50  ;;  %v2822_v38 = vmul.f32 %v8115_v53, %v2774_v21  ;;  %8118 = vst [vmem:[#allocation87_spill] sm:$0xff] %v6993_v2  ;;  %v7000_v50 = vpop.permute.xlu1 %3258 }
 0x57b   : > { %v3015_v14 = vsel %vm3014_vm11, %v8117_v36, %v8116_v35  ;;  %v2579_v30 = vadd.f32 %v2563_v8, %v2448_v28  ;;  %v2707_v7 = vadd.f32 %v2691_v55, %v2578_v51  ;;  %v2775_v56 = vmul.f32 %v6704_v42, %v2764_v32  ;;  %v8121_v28 = vld [vmem:[#allocation34_spill] sm:$0xff]  ;;  %v8122_v8 = vld [vmem:[#allocation56_spill] sm:$0xff] }
 0x57c   : > { %v2895_v10 = vsel %vm2885_vm9, %v8120_v1, %v8119_v16  ;;  %v2580_v57 = vadd.f32 %v2564_v5, %v2449_v27  ;;  %v2706_v21 = vadd.f32 %v2690_v11, %v2577_v29  ;;  %v2692_v59 = vmul.f32 %v8114_v9, %v2644_v46 }
 0x57d   : > { %v2903_v53 = vmul.f32 %v6667_v0, %v2886_v33  ;;  %v2887_v51 = vsel %vm2885_vm9, %v8119_v16, %v8120_v1  ;;  %v2824_v32 = vmul.f32 %v8121_v28, %v2776_v60  ;;  %v2950_v55 = vmul.f32 %v8122_v8, %v2902_v49  ;;  %v8124_v16 = vld [vmem:[#allocation92_spill] sm:$0xff]  ;;  %v8125_v1 = vld [vmem:[#allocation82_spill] sm:$0xff] }
 0x57e   : > { %v3023_v27 = vsel %vm3014_vm11, %v8116_v35, %v8117_v36  ;;  %v3031_v11 = vmul.f32 %v6682_v62, %v3015_v14  ;;  %v2837_v29 = vadd.f32 %v2821_v58, %v2706_v21  ;;  %v2838_v46 = vadd.f32 %v2822_v38, %v2707_v7  ;;  %v8127_v7 = vld [vmem:[#allocation83_spill] sm:$0xff]  ;;  %v8128_v21 = vld [vmem:[#allocation61_spill] sm:$0xff] }
 0x57f   : > { %v2904_v5 = vmul.f32 %v6654_v6, %v2895_v10  ;;  %v2708_v9 = vadd.f32 %v2692_v59, %v2579_v30  ;;  %v2823_v60 = vmul.f32 %v8121_v28, %v2775_v56  ;;  %v2905_v49 = vmul.f32 %v6667_v0, %v2887_v51  ;;  %v8126_v30 = vld [vmem:[#allocation93_spill] sm:$0xff]  ;;  %v7044_v28 = vpop.permute.xlu1 %3266 }
 0x580   : > { %v3016_v35 = vsel %vm3014_vm11, %v8125_v1, %v8124_v16  ;;  %v2709_v36 = vadd.f32 %v2693_v37, %v2580_v57  ;;  %v2951_v58 = vmul.f32 %v8122_v8, %v2903_v53  ;;  %v3032_v38 = vmul.f32 %v6699_v20, %v3023_v27  ;;  %v8129_v57 = vld [vmem:[#allocation94_spill] sm:$0xff]  ;;  %v8130_v53 = vld [vmem:[#allocation84_spill] sm:$0xff]  ;;  %8131 = vst [vmem:[#allocation24_spill] sm:$0xff] %v7044_v28 }
 0x581   : > { %v3024_v14 = vsel %vm3014_vm11, %v8124_v16, %v8125_v1  ;;  %v3144_v56 = vsel %vm3143_vm12, %v8127_v7, %v8126_v30  ;;  %v2966_v10 = vadd.f32 %v2950_v55, %v2837_v29  ;;  %v3079_v59 = vmul.f32 %v8128_v21, %v3031_v11  ;;  %v8132_v8 = vld [vmem:[#allocation38_spill] sm:$0xff] }
 0x582   : > { %v3152_v37 = vsel %vm3143_vm12, %v8126_v30, %v8127_v7  ;;  %v3145_v51 = vsel %vm3143_vm12, %v8130_v53, %v8129_v57  ;;  %v2952_v27 = vmul.f32 %v8132_v8, %v2904_v5  ;;  %v3033_v16 = vmul.f32 %v6682_v62, %v3016_v35  ;;  %v8133_v7 = vld [vmem:[#allocation95_spill] sm:$0xff] }
 0x583   : > { %v7017_v33 = vpop.permute.xlu0 %3336  ;;  %v3153_v55 = vsel %vm3143_vm12, %v8129_v57, %v8130_v53  ;;  %v2839_v11 = vadd.f32 %v2823_v60, %v2708_v9  ;;  %v3034_v29 = vmul.f32 %v6699_v20, %v3024_v14  ;;  %v3162_v1 = vmul.f32 %v6654_v6, %v3144_v56  ;;  %v8136_v57 = vld [vmem:[#allocation109_spill] sm:$0xff] }
 0x584   : > { %8123 = vst [vmem:[#allocation31_spill] sm:$0xff] %v7017_v33  ;;  %v2840_v30 = vadd.f32 %v2824_v32, %v2709_v36  ;;  %v8134_v33 = vld [vmem:[#allocation96_spill] sm:$0xff]  ;;  %v3080_v5 = vmul.f32 %v8128_v21, %v3032_v38  ;;  %v3163_v35 = vmul.f32 %v6765_v41, %v3152_v37  ;;  %v3164_v28 = vmul.f32 %v6654_v6, %v3145_v51  ;;  %v8137_v9 = vld [vmem:[#allocation97_spill] sm:$0xff] }
 0x585   : > { %v2507_v31 = vsel %vm2494_vm4, %v8134_v33, %v8133_v7  ;;  %v2497_v60 = vsel %vm2494_vm4, %v8137_v9, %v8136_v57  ;;  %v2967_v14 = vadd.f32 %v2951_v58, %v2838_v46  ;;  %v2953_v32 = vmul.f32 %v8132_v8, %v2905_v49  ;;  %v8139_v58 = vld [vmem:[#allocation44_spill] sm:$0xff] }
 0x586   : > { %v3095_v36 = vadd.f32 %v3079_v59, %v2966_v10  ;;  %v3165_v56 = vmul.f32 %v6765_v41, %v3153_v55  ;;  %v2499_v38 = vsel %vm2494_vm4, %v8133_v7, %v8134_v33  ;;  %v2521_v21 = vmul.f32 %v6664_v24, %v2507_v31  ;;  %v8140_v10 = vld [vmem:[#allocation67_spill] sm:$0xff]  ;;  %v8142_v7 = vld [vmem:[#allocation52_spill] sm:$0xff] }
 0x587   : > { %v2505_v37 = vsel %vm2494_vm4, %v8136_v57, %v8137_v9  ;;  %v2968_v46 = vadd.f32 %v2952_v27, %v2839_v11  ;;  %v3081_v49 = vmul.f32 %v8139_v58, %v3033_v16  ;;  %v3210_v59 = vmul.f32 %v8140_v10, %v3162_v1  ;;  %v8143_v11 = vld [vmem:[#allocation99_spill] sm:$0xff]  ;;  %v8145_v57 = vld [vmem:[#allocation108_spill] sm:$0xff] }
 0x588   : > { %v7058_v2 = vpop.permute.xlu0 %3439  ;;  %v2518_v51 = vmul.f32 %v6667_v0, %v2497_v60  ;;  %v2969_v55 = vadd.f32 %v2953_v32, %v2840_v30  ;;  %v3082_v33 = vmul.f32 %v8139_v58, %v3034_v29  ;;  %v3211_v31 = vmul.f32 %v8140_v10, %v3163_v35  ;;  %v8144_v16 = vld [vmem:[#allocation111_spill] sm:$0xff]  ;;  %v8146_v9 = vld [vmem:[#allocation112_spill] sm:$0xff]  ;;  %v8148_v60 = vld [vmem:[#allocation101_spill] sm:$0xff] }
 0x589   : > { %8135 = vst [vmem:[#allocation53_spill] sm:$0xff] %v7058_v2  ;;  %v3212_v2 = vmul.f32 %v8142_v7, %v3164_v28  ;;  %v2522_v3 = vmul.f32 %v6667_v0, %v2499_v38  ;;  %v2517_v27 = vmul.f32 %v6664_v24, %v2505_v37  ;;  %v2636_v1 = vsel %vm2625_vm6, %v8144_v16, %v8143_v11  ;;  %v8149_v28 = vld [vmem:[#allocation113_spill] sm:$0xff]  ;;  %v8151_v37 = vld [vmem:[#allocation27_spill] sm:$0xff] }
 0x58a   : > { %v7069_v53 = vpop.permute.xlu1 %3320  ;;  %v3284_v30 = vsel %vm3274_vm13, %v8146_v9, %v8145_v57  ;;  %v3213_v29 = vmul.f32 %v8142_v7, %v3165_v56  ;;  %v3097_v38 = vadd.f32 %v3081_v49, %v2968_v46  ;;  %v2566_v58 = vmul.f32 %v8151_v37, %v2518_v51 }
 0x58b   : > { %8138 = vst [vmem:[#allocation23_spill] sm:$0xff] %v7069_v53  ;;  %v3096_v53 = vadd.f32 %v3080_v5, %v2967_v14  ;;  %v8147_v5 = vld [vmem:[#allocation25_spill] sm:$0xff]  ;;  %v2765_v14 = vsel %vm2754_vm8, %v8149_v28, %v8148_v60  ;;  %v2757_v10 = vsel %vm2754_vm8, %v8148_v60, %v8149_v28  ;;  %v2628_v7 = vsel %vm2625_vm6, %v8143_v11, %v8144_v16  ;;  %v8153_v11 = vld [vmem:[#allocation103_spill] sm:$0xff] }
 0x58c   : > { %v7083_v8 = vpop.permute.xlu0 %3459  ;;  %v2569_v35 = vmul.f32 %v8147_v5, %v2521_v21  ;;  %v3098_v21 = vadd.f32 %v3082_v33, %v2969_v55  ;;  %v3294_v46 = vmul.f32 %v6749_v25, %v3284_v30  ;;  %v2570_v51 = vmul.f32 %v8147_v5, %v2522_v3  ;;  %v8154_v16 = vld [vmem:[#allocation115_spill] sm:$0xff] }
 0x58d   : > { %8141 = vst [vmem:[#allocation54_spill] sm:$0xff] %v7083_v8  ;;  %v7111_v8 = vadd.f32 %v3210_v59, %v3095_v36  ;;  %v7121_v49 = vadd.f32 %v3211_v31, %v3096_v53  ;;  %v2565_v60 = vmul.f32 %v8151_v37, %v2517_v27  ;;  %v3276_v36 = vsel %vm3274_vm13, %v8145_v57, %v8146_v9  ;;  %v8157_v57 = vld [vmem:[#allocation98_spill] sm:$0xff] }
 0x58e   : > { %v2777_v59 = vmul.f32 %v6704_v42, %v2765_v14  ;;  %v7131_v55 = vadd.f32 %v2569_v35, %v6931_v61  ;;  %v2778_v33 = vmul.f32 %v6699_v20, %v2757_v10  ;;  %v2896_v53 = vsel %vm2885_vm9, %v8154_v16, %v8153_v11  ;;  %v8158_v9 = vld [vmem:[#allocation114_spill] sm:$0xff] }
 0x58f   : > { %v7104_v32 = vpop.permute.xlu1 %3447  ;;  %v3228_v31 = vadd.f32 %v3212_v2, %v3097_v38  ;;  %v2582_v27 = vadd.f32 %v2566_v58, %v6902_v13  ;;  %v2639_v61 = vsel %vm2625_vm6, %v8158_v9, %v8157_v57  ;;  %v3229_v35 = vadd.f32 %v3213_v29, %v3098_v21  ;;  %v8160_v14 = vld [vmem:[#allocation62_spill] sm:$0xff]  ;;  %v8161_v38 = vld [vmem:[#allocation37_spill] sm:$0xff] }
 0x590   : > { %8150 = vst [vmem:[#allocation86_spill] sm:$0xff] %v7104_v32  ;;  %v7113_v56 = vpop.permute.xlu0 %3117  ;;  %v2646_v32 = vmul.f32 %v6651_v40, %v2636_v1  ;;  %v8156_v1 = vld [vmem:[#allocation32_spill] sm:$0xff]  ;;  %v3341_v37 = vmul.f32 %v8160_v14, %v3276_v36  ;;  %v3342_v10 = vmul.f32 %v8160_v14, %v3294_v46  ;;  %v2888_v13 = vsel %vm2885_vm9, %v8153_v11, %v8154_v16 }
 0x591   : > { %8152 = vst [vmem:[#allocation76_spill] sm:$0xff] %v7113_v56  ;;  %v2695_v30 = vmul.f32 %v8156_v1, %v2628_v7  ;;  %v2581_v2 = vadd.f32 %v2565_v60, %v6898_v26  ;;  %v2825_v58 = vmul.f32 %v8161_v38, %v2777_v59  ;;  %v2631_v29 = vsel %vm2625_vm6, %v8157_v57, %v8158_v9  ;;  %v8162_v46 = vld [vmem:[#allocation100_spill] sm:$0xff]  ;;  %v8164_v9 = vld [vmem:[#allocation30_spill] sm:$0xff] }
 0x592   : > { %v2694_v28 = vmul.f32 %v8156_v1, %v2646_v32  ;;  %v2906_v32 = vmul.f32 %v6654_v6, %v2896_v53  ;;  %v2826_v21 = vmul.f32 %v8161_v38, %v2778_v33  ;;  %v2652_v7 = vmul.f32 %v6651_v40, %v2639_v61  ;;  %v8163_v36 = vld [vmem:[#allocation116_spill] sm:$0xff] }
 0x593   : > { %v7138_v3 = vpop.permute.xlu1 %3463  ;;  %v2768_v11 = vsel %vm2754_vm8, %v8163_v36, %v8162_v46  ;;  %v2508_v26 = vsel %vm2494_vm4, %v6840_v15, %v6824_v19  ;;  %v2711_v59 = vadd.f32 %v2695_v30, %v2582_v27  ;;  %v2907_v16 = vmul.f32 %v6667_v0, %v2888_v13  ;;  %v8165_v27 = vld [vmem:[#allocation42_spill] sm:$0xff] }
 0x594   : > { %8155 = vst [vmem:[#allocation57_spill] sm:$0xff] %v7138_v3  ;;  %v7146_v5 = vpop.permute.xlu0 %3133  ;;  %v2760_v33 = vsel %vm2754_vm8, %v8162_v46, %v8163_v36  ;;  %v7178_v53 = vadd.f32 %v2570_v51, %v6941_v43  ;;  %v2710_v57 = vadd.f32 %v2694_v28, %v2581_v2  ;;  %v7183_v61 = vmul.f32 %v8164_v9, %v2631_v29  ;;  %v8167_v29 = vld [vmem:[#allocation105_spill] sm:$0xff] }
 0x595   : > { %8159 = vst [vmem:[#allocation39_spill] sm:$0xff] %v7146_v5  ;;  %v7185_v14 = vadd.f32 %v3341_v37, %v3228_v31  ;;  %v7187_v38 = vadd.f32 %v3342_v10, %v3229_v35  ;;  %v2954_v30 = vmul.f32 %v8165_v27, %v2906_v32  ;;  %v2783_v13 = vmul.f32 %v6704_v42, %v2768_v11  ;;  %v8166_v10 = vld [vmem:[#allocation117_spill] sm:$0xff] }
 0x596   : > { %v2500_v43 = vsel %vm2494_vm4, %v6824_v19, %v6840_v15  ;;  %v2523_v51 = vmul.f32 %v6664_v24, %v2508_v26  ;;  %v2841_v46 = vadd.f32 %v2825_v58, %v2710_v57  ;;  %v2842_v28 = vadd.f32 %v2826_v21, %v2711_v59  ;;  %v8168_v58 = vld [vmem:[#allocation131_spill] sm:$0xff]  ;;  %v8170_v57 = vld [vmem:[#allocation26_spill] sm:$0xff] }
 0x597   : > { %v3126_v60 = vpop.permute.xlu1 %3125  ;;  %v2700_v2 = vmul.f32 %v8164_v9, %v2652_v7  ;;  %v2784_v31 = vmul.f32 %v6699_v20, %v2760_v33  ;;  %v2955_v35 = vmul.f32 %v8165_v27, %v2907_v16  ;;  %v3017_v32 = vsel %vm3014_vm11, %v8167_v29, %v8166_v10  ;;  %v8169_v16 = vld [vmem:[#allocation35_spill] sm:$0xff] }
 0x598   : > { %v7180_v1 = vpop.permute.xlu0 %3246  ;;  %v2638_v21 = vsel %vm2625_vm6, %v6792_v48, %v8168_v58  ;;  %v2524_v7 = vmul.f32 %v6667_v0, %v2500_v43  ;;  %v7216_v59 = vadd.f32 %v2954_v30, %v2841_v46  ;;  %v2831_v33 = vmul.f32 %v8169_v16, %v2783_v13  ;;  %v8171_v43 = vld [vmem:[#allocation118_spill] sm:$0xff]  ;;  %v8173_v30 = vld [vmem:[#allocation71_spill] sm:$0xff] }
 0x599   : > { %v2571_v9 = vmul.f32 %v8170_v57, %v2523_v51  ;;  %v7227_v27 = vmul.f32 %v8169_v16, %v2784_v31  ;;  %v2630_v51 = vsel %vm2625_vm6, %v8168_v58, %v6792_v48  ;;  %v2650_v31 = vmul.f32 %v6651_v40, %v2638_v21 }
 0x59a   : > { %v2572_v16 = vmul.f32 %v8170_v57, %v2524_v7  ;;  %v7263_v58 = vadd.f32 %v2955_v35, %v2842_v28  ;;  %v7266_v21 = vmul.f32 %v6682_v62, %v3017_v32  ;;  %v8176_v7 = vld [vmem:[#allocation120_spill] sm:$0xff]  ;;  %v2890_v35 = vsel %vm2885_vm9, %v6740_v34, %v6804_v22 }
 0x59b   : > { %v3142_v37 = vpop.permute.xlu1 %3141 }
 0x59c   : > { %v3151_v36 = vsel %vm3143_vm12, %v3126_v60, %v3142_v37  ;;  %v3159_v19 = vsel %vm3143_vm12, %v3142_v37, %v3126_v60  ;;  %v7207_v15 = vpop.permute.xlu0 %3262  ;;  %v7223_v60 = vsel %vm3014_vm11, %v8166_v10, %v8167_v29  ;;  %v8172_v37 = vld [vmem:[#allocation102_spill] sm:$0xff]  ;;  %v2767_v29 = vsel %vm2754_vm8, %v6798_v18, %v6722_v54 }
 0x59d   : > { %v3176_v11 = vmul.f32 %v6654_v6, %v3151_v36  ;;  %v3177_v26 = vmul.f32 %v6765_v41, %v3159_v19  ;;  %v2891_v36 = vsel %vm2885_vm9, %v8172_v37, %v8171_v43  ;;  %v2899_v10 = vsel %vm2885_vm9, %v8171_v43, %v8172_v37 }
 0x59e   : > { %v2898_v37 = vsel %vm2885_vm9, %v6804_v22, %v6740_v34  ;;  %v2781_v28 = vmul.f32 %v6704_v42, %v2767_v29  ;;  %v2913_v57 = vmul.f32 %v6667_v0, %v2891_v36  ;;  %v3019_v29 = vsel %vm3014_vm11, %v6760_v4, %v6808_v44 }
 0x59f   : > { %v3224_v46 = vmul.f32 %v8173_v30, %v3176_v11  ;;  %v3225_v13 = vmul.f32 %v8173_v30, %v3177_v26  ;;  %v7235_v19 = vpop.permute.xlu1 %3254  ;;  %v2759_v26 = vsel %vm2754_vm8, %v6722_v54, %v6798_v18  ;;  %v2587_v54 = vadd.f32 %v2571_v9, %v6954_v17  ;;  %v8178_v30 = vld [vmem:[#allocation47_spill] sm:$0xff] }
 0x5a0   : > { %v7250_v11 = vpop.permute.xlu0 %3371  ;;  %v2912_v18 = vmul.f32 %v6654_v6, %v2899_v10  ;;  %v2698_v17 = vmul.f32 %v8178_v30, %v2650_v31  ;;  %v2699_v9 = vmul.f32 %v8178_v30, %v2630_v51  ;;  %v2910_v10 = vmul.f32 %v6654_v6, %v2898_v37  ;;  %v8179_v37 = vld [vmem:[#allocation122_spill] sm:$0xff] }
 0x5a1   : > { %v7258_v43 = vadd.f32 %v3225_v13, %v6885_v52  ;;  %v7261_v48 = vadd.f32 %v3224_v46, %v6883_v47  ;;  %v8177_v52 = vld [vmem:[#allocation104_spill] sm:$0xff]  ;;  %v2782_v46 = vmul.f32 %v6699_v20, %v2759_v26  ;;  %v3027_v34 = vsel %vm3014_vm11, %v6808_v44, %v6760_v4  ;;  %v8180_v30 = vld [vmem:[#allocation106_spill] sm:$0xff] }
 0x5a2   : > { %v3020_v47 = vsel %vm3014_vm11, %v8177_v52, %v8176_v7  ;;  %v2588_v22 = vadd.f32 %v2572_v16, %v6972_v12  ;;  %v3028_v36 = vsel %vm3014_vm11, %v8176_v7, %v8177_v52  ;;  %v2911_v31 = vmul.f32 %v6667_v0, %v2890_v35  ;;  %v8182_v35 = vld [vmem:[#allocation40_spill] sm:$0xff] }
 0x5a3   : > { %8174 = vst [vmem:[#allocation88_spill] sm:$0xff] %v7258_v43  ;;  %8175 = vst [vmem:[#allocation78_spill] sm:$0xff] %v7261_v48  ;;  %v7283_v32 = vpop.permute.xlu1 %3270  ;;  %v3041_v51 = vmul.f32 %v6682_v62, %v3020_v47  ;;  %v2716_v26 = vadd.f32 %v2700_v2, %v2587_v54  ;;  %v3149_v43 = vsel %vm3143_vm12, %v8180_v30, %v8179_v37  ;;  %v8181_v48 = vld [vmem:[#allocation51_spill] sm:$0xff] }
 0x5a4   : > { %v7289_v13 = vpop.permute.xlu0 %3379  ;;  %v2829_v3 = vmul.f32 %v8181_v48, %v2781_v28  ;;  %v3148_v4 = vsel %vm3143_vm12, %v6781_v45, %v6812_v63  ;;  %v3156_v44 = vsel %vm3143_vm12, %v6812_v63, %v6781_v45  ;;  %v3157_v2 = vsel %vm3143_vm12, %v8179_v37, %v8180_v30  ;;  %v8184_v30 = vld [vmem:[#allocation46_spill] sm:$0xff] }
 0x5a5   : > { %v2830_v16 = vmul.f32 %v8181_v48, %v2782_v46  ;;  %v3039_v54 = vmul.f32 %v6682_v62, %v3019_v29  ;;  %v3040_v7 = vmul.f32 %v6699_v20, %v3027_v34  ;;  %v2714_v47 = vadd.f32 %v2698_v17, %v7131_v55 }
 0x5a6   : > { %v2715_v28 = vadd.f32 %v2699_v9, %v7178_v53  ;;  %v2958_v56 = vmul.f32 %v8182_v35, %v2910_v10  ;;  %v2717_v45 = vadd.f32 %v7183_v61, %v2588_v22  ;;  %v2959_v63 = vmul.f32 %v8182_v35, %v2911_v31  ;;  %v8183_v53 = vld [vmem:[#allocation59_spill] sm:$0xff] }
 0x5a7   : > { %v3374_v12 = vpop.permute.xlu1 %3373  ;;  %v3170_v5 = vmul.f32 %v6654_v6, %v3148_v4  ;;  %v3171_v37 = vmul.f32 %v6765_v41, %v3156_v44  ;;  %v2847_v48 = vadd.f32 %v2831_v33, %v2716_v26  ;;  %v3042_v46 = vmul.f32 %v6699_v20, %v3028_v36 }
 0x5a8   : > { %v3388_v52 = vpop.permute.xlu0 %3387  ;;  %v3172_v29 = vmul.f32 %v6654_v6, %v3149_v43  ;;  %v3173_v34 = vmul.f32 %v6765_v41, %v3157_v2  ;;  %v2845_v55 = vadd.f32 %v2829_v3, %v2714_v47  ;;  %v2960_v9 = vmul.f32 %v8183_v53, %v2912_v18  ;;  %v8185_v3 = vld [vmem:[#allocation55_spill] sm:$0xff]  ;;  %v8187_v47 = vld [vmem:[#allocation69_spill] sm:$0xff] }
 0x5a9   : > { %v2846_v10 = vadd.f32 %v2830_v16, %v2715_v28  ;;  %v3087_v61 = vmul.f32 %v8184_v30, %v3039_v54  ;;  %v3088_v22 = vmul.f32 %v8184_v30, %v3040_v7  ;;  %v7342_v4 = vmul.f32 %v6699_v20, %v7223_v60  ;;  %v8186_v16 = vld [vmem:[#allocation63_spill] sm:$0xff] }
 0x5aa   : > { %v2961_v33 = vmul.f32 %v8183_v53, %v2913_v57  ;;  %v2974_v36 = vadd.f32 %v2958_v56, %v2845_v55  ;;  %v2848_v43 = vadd.f32 %v7227_v27, %v2717_v45  ;;  %v3218_v44 = vmul.f32 %v8185_v3, %v3170_v5  ;;  %v8189_v27 = vld [vmem:[#allocation126_spill] sm:$0xff]  ;;  %v8192_v55 = vld [vmem:[#allocation24_spill] sm:$0xff] }
 0x5ab   : > { %v3382_v17 = vpop.permute.xlu1 %3381  ;;  %v2975_v26 = vadd.f32 %v2959_v63, %v2846_v10  ;;  %v3219_v18 = vmul.f32 %v8185_v3, %v3171_v37  ;;  %v2976_v2 = vadd.f32 %v2960_v9, %v2847_v48  ;;  %v3089_v54 = vmul.f32 %v8186_v16, %v3041_v51  ;;  %v8190_v51 = vld [vmem:[#allocation119_spill] sm:$0xff]  ;;  %v8193_v10 = vld [vmem:[#allocation110_spill] sm:$0xff] }
 0x5ac   : > { %v3396_v31 = vpop.permute.xlu0 %3395  ;;  %v3090_v7 = vmul.f32 %v8186_v16, %v3042_v46  ;;  %v3220_v28 = vmul.f32 %v8187_v47, %v3172_v29  ;;  %v3221_v60 = vmul.f32 %v8187_v47, %v3173_v34  ;;  %v3103_v30 = vadd.f32 %v3087_v61, %v2974_v36  ;;  %v8191_v34 = vld [vmem:[#allocation77_spill] sm:$0xff]  ;;  %v8194_v61 = vld [vmem:[#allocation87_spill] sm:$0xff] }
 0x5ad   : > { %v3104_v57 = vadd.f32 %v3088_v22, %v2975_v26  ;;  %v3283_v56 = vsel %vm3274_vm13, %v7000_v50, %v6881_v39  ;;  %v2498_v45 = vsel %vm2494_vm4, %v8190_v51, %v8189_v27  ;;  %v2506_v63 = vsel %vm2494_vm4, %v8189_v27, %v8190_v51 }
 0x5ae   : > { %v7369_v37 = vmul.f32 %v6699_v20, %v6749_v25  ;;  %v2977_v48 = vadd.f32 %v2961_v33, %v2848_v43  ;;  %v3105_v46 = vadd.f32 %v3089_v54, %v2976_v2  ;;  %v3234_v29 = vadd.f32 %v3218_v44, %v3103_v30  ;;  %v8195_v30 = vld [vmem:[#allocation73_spill] sm:$0xff] }
 0x5af   : > { %v3390_v35 = vpop.permute.xlu1 %3389  ;;  %v3287_v53 = vsel %vm3274_vm13, %v8192_v55, %v8191_v34  ;;  %v3235_v9 = vadd.f32 %v3219_v18, %v3104_v57  ;;  %v3288_v22 = vsel %vm3274_vm13, %v8194_v61, %v8193_v10  ;;  %v3292_v36 = vmul.f32 %v6749_v25, %v3283_v56 }
 0x5b0   : > { %v7357_v5 = vpop.permute.xlu0 %3451  ;;  %v3404_v26 = vsel %vm3403_vm14, %v7250_v11, %v3388_v52  ;;  %v3412_v33 = vsel %vm3403_vm14, %v3388_v52, %v7250_v11  ;;  %v3280_v3 = vsel %vm3274_vm13, %v8193_v10, %v8194_v61  ;;  %v3275_v44 = vsel %vm3274_vm13, %v6881_v39, %v7000_v50  ;;  %v8198_v61 = vld [vmem:[#allocation64_spill] sm:$0xff] }
 0x5b1   : > { %8188 = vst [vmem:[#allocation79_spill] sm:$0xff] %v7357_v5  ;;  %v3408_v18 = vsel %vm3403_vm14, %v7289_v13, %v3396_v31  ;;  %v3416_v2 = vsel %vm3403_vm14, %v3396_v31, %v7289_v13  ;;  %v3300_v11 = vmul.f32 %v6749_v25, %v3287_v53  ;;  %v3405_v52 = vsel %vm3403_vm14, %v3374_v12, %v3390_v35  ;;  %v8197_v53 = vld [vmem:[#allocation75_spill] sm:$0xff] }
 0x5b2   : > { %v3413_v16 = vsel %vm3403_vm14, %v3390_v35, %v3374_v12  ;;  %v3106_v47 = vadd.f32 %v3090_v7, %v2977_v48  ;;  %v3302_v39 = vmul.f32 %v6749_v25, %v3288_v22  ;;  %v3279_v50 = vsel %vm3274_vm13, %v8191_v34, %v8192_v55 }
 0x5b3   : > { %v3398_v43 = vpop.permute.xlu1 %3397  ;;  %v3422_v13 = vmul.f32 %v6682_v62, %v3404_v26  ;;  %v3423_v31 = vmul.f32 %v7369_v37, %v3412_v33  ;;  %v3339_v57 = vmul.f32 %v8195_v30, %v3275_v44  ;;  %v3340_v56 = vmul.f32 %v8195_v30, %v3292_v36  ;;  %v8199_v44 = vld [vmem:[#allocation53_spill] sm:$0xff] }
 0x5b4   : > { %v3430_v12 = vmul.f32 %v6682_v62, %v3408_v18  ;;  %v3431_v35 = vmul.f32 %v7369_v37, %v3416_v2  ;;  %v3424_v27 = vmul.f32 %v6682_v62, %v3405_v52  ;;  %v3425_v51 = vmul.f32 %v7369_v37, %v3413_v16  ;;  %v8200_v16 = vld [vmem:[#allocation74_spill] sm:$0xff] }
 0x5b5   : > { %v7405_v54 = vpop.permute.xlu0 %3507  ;;  %v3409_v48 = vsel %vm3403_vm14, %v3382_v17, %v3398_v43  ;;  %v3417_v34 = vsel %vm3403_vm14, %v3398_v43, %v3382_v17  ;;  %v3236_v55 = vadd.f32 %v3220_v28, %v3105_v46  ;;  %v3349_v10 = vmul.f32 %v8197_v53, %v3280_v3  ;;  %v8201_v3 = vld [vmem:[#allocation72_spill] sm:$0xff] }
 0x5b6   : > { %v3347_v22 = vmul.f32 %v8198_v61, %v3279_v50  ;;  %v3348_v36 = vmul.f32 %v8198_v61, %v3300_v11  ;;  %v3350_v33 = vmul.f32 %v8197_v53, %v3302_v39  ;;  %v3470_v18 = vmul.f32 %v8199_v44, %v3422_v13  ;;  %v8204_v53 = vld [vmem:[#allocation127_spill] sm:$0xff] }
 0x5b7   : > { %v7418_v7 = vpop.permute.xlu1 %3467  ;;  %v3471_v2 = vmul.f32 %v8199_v44, %v3423_v31  ;;  %v3237_v52 = vadd.f32 %v3221_v60, %v3106_v47  ;;  %v3478_v30 = vmul.f32 %v8200_v16, %v3430_v12  ;;  %v3479_v17 = vmul.f32 %v8200_v16, %v3431_v35 }
 0x5b8   : > { %8196 = vst [vmem:[#allocation89_spill] sm:$0xff] %v7418_v7  ;;  %v3432_v28 = vmul.f32 %v6682_v62, %v3409_v48  ;;  %v3433_v46 = vmul.f32 %v7369_v37, %v3417_v34  ;;  %v3355_v43 = vadd.f32 %v3339_v57, %v7111_v8  ;;  %v3472_v11 = vmul.f32 %v8201_v3, %v3424_v27  ;;  %v8203_v48 = vld [vmem:[#allocation121_spill] sm:$0xff]  ;;  %v8205_v57 = vld [vmem:[#allocation123_spill] sm:$0xff]  ;;  %v8206_v27 = vld [vmem:[#allocation128_spill] sm:$0xff] }
 0x5b9   : > { %v7429_v26 = vpop.permute.xlu0 %3248  ;;  %v3473_v50 = vmul.f32 %v8201_v3, %v3425_v51  ;;  %v3356_v39 = vadd.f32 %v3340_v56, %v7121_v49  ;;  %v2519_v31 = vmul.f32 %v6664_v24, %v2506_v63  ;;  %v2520_v60 = vmul.f32 %v6667_v0, %v2498_v45  ;;  %v8207_v34 = vld [vmem:[#allocation54_spill] sm:$0xff] }
 0x5ba   : > { %v3363_v47 = vadd.f32 %v3347_v22, %v3234_v29  ;;  %v3364_v35 = vadd.f32 %v3348_v36, %v3235_v9  ;;  %v2637_v8 = vsel %vm2625_vm6, %v8204_v53, %v8203_v48  ;;  %v2766_v51 = vsel %vm2754_vm8, %v8206_v27, %v8205_v57 }
 0x5bb   : > { %v3487_v49 = vadd.f32 %v3471_v2, %v3356_v39  ;;  %v3486_v56 = vadd.f32 %v3470_v18, %v3355_v43  ;;  %v3480_v24 = vmul.f32 %v8207_v34, %v3432_v28  ;;  %v3481_v45 = vmul.f32 %v8207_v34, %v3433_v46  ;;  %v8208_v18 = vld [vmem:[#allocation50_spill] sm:$0xff]  ;;  %v8209_v28 = vld [vmem:[#allocation45_spill] sm:$0xff] }
 0x5bc   : > { %v3504_v13 = vpop.permute.xlu1 %3503  ;;  %v3494_v63 = vadd.f32 %v3478_v30, %v3363_v47  ;;  %v3495_v29 = vadd.f32 %v3479_v17, %v3364_v35  ;;  %v3365_v61 = vadd.f32 %v3349_v10, %v3236_v55  ;;  %v3488_v9 = vadd.f32 %v3472_v11, %v7185_v14  ;;  %v8211_v35 = vld [vmem:[#allocation36_spill] sm:$0xff] }
 0x5bd   : > { %v7444_v12 = vpop.permute.xlu0 %3264  ;;  %v3489_v22 = vadd.f32 %v3473_v50, %v7187_v38  ;;  %v3366_v44 = vadd.f32 %v3350_v33, %v3237_v52  ;;  %v3534_v16 = vadd.f32 %v3504_v13, %v3486_v56  ;;  %v3535_v3 = vadd.f32 %v3504_v13, %v3487_v49 }
 0x5be   : > { %8202 = vst [vmem:[#allocation43_spill] sm:$0xff] %v7444_v12  ;;  %v3083_v2 = vmul.f32 %v8208_v18, %v7266_v21  ;;  %v2567_v43 = vmul.f32 %v8209_v28, %v2519_v31  ;;  %v2568_v30 = vmul.f32 %v8209_v28, %v2520_v60  ;;  %v2648_v55 = vmul.f32 %v6651_v40, %v2637_v8  ;;  %v8210_v60 = vld [vmem:[#allocation85_spill] sm:$0xff] }
 0x5bf   : > { %v3496_v17 = vadd.f32 %v3480_v24, %v3365_v61  ;;  %v3497_v38 = vadd.f32 %v3481_v45, %v3366_v44  ;;  %v2629_v33 = vsel %vm2625_vm6, %v8203_v48, %v8204_v53  ;;  %v2758_v21 = vsel %vm2754_vm8, %v8205_v57, %v8206_v27  ;;  %v8212_v53 = vld [vmem:[#allocation124_spill] sm:$0xff]  ;;  %v8214_v57 = vld [vmem:[#allocation134_spill] sm:$0xff] }
 0x5c0   : > { %v3520_v36 = vpop.permute.xlu1 %3519  ;;  %v2779_v52 = vmul.f32 %v6704_v42, %v2766_v51  ;;  %v3536_v46 = vadd.f32 %v7405_v54, %v3488_v9  ;;  %v3537_v40 = vadd.f32 %v7405_v54, %v3489_v22  ;;  %v3084_v13 = vmul.f32 %v8208_v18, %v7342_v4  ;;  %v8213_v42 = vld [vmem:[#allocation129_spill] sm:$0xff]  ;;  %v8215_v54 = vld [vmem:[#allocation107_spill] sm:$0xff]  ;;  %v8216_v4 = vld [vmem:[#allocation48_spill] sm:$0xff] }
 0x5c1   : > { %v3542_v7 = vadd.f32 %v3520_v36, %v3494_v63  ;;  %v3543_v5 = vadd.f32 %v3520_v36, %v3495_v29  ;;  %v3376_v12 = vpop.permute.xlu0 %3375  ;;  %v3099_v31 = vadd.f32 %v3083_v2, %v7216_v59  ;;  %v2583_v47 = vadd.f32 %v2567_v43, %v8210_v60  ;;  %v8217_v63 = vld [vmem:[#allocation41_spill] sm:$0xff] }
 0x5c2   : > { %v2696_v48 = vmul.f32 %v8211_v35, %v2648_v55  ;;  %v2897_v8 = vsel %vm2885_vm9, %v8213_v42, %v8212_v53  ;;  %v3146_v27 = vsel %vm3143_vm12, %v8215_v54, %v8214_v57  ;;  %v2584_v56 = vadd.f32 %v2568_v30, %v8216_v4 }
 0x5c3   : > { %v3550_v10 = vmul.f32 %v3542_v7, %v3534_v16  ;;  %v3551_v14 = vmul.f32 %v3543_v5, %v3535_v3  ;;  %v2697_v59 = vmul.f32 %v8211_v35, %v2629_v33  ;;  %v2780_v34 = vmul.f32 %v6699_v20, %v2758_v21 }
 0x5c4   : > { %v3524_v11 = vpop.permute.xlu1 %3523  ;;  %v3154_v24 = vsel %vm3143_vm12, %v8214_v57, %v8215_v54  ;;  %v2827_v29 = vmul.f32 %v8217_v63, %v2779_v52  ;;  %v2889_v61 = vsel %vm2885_vm9, %v8212_v53, %v8213_v42  ;;  %v2908_v36 = vmul.f32 %v6654_v6, %v2897_v8  ;;  %v8218_v52 = vld [vmem:[#allocation49_spill] sm:$0xff]  ;;  %v8222_v42 = vld [vmem:[#allocation39_spill] sm:$0xff]  ;;  %v8223_v8 = vld [vmem:[#allocation76_spill] sm:$0xff] }
 0x5c5   : > { %v3544_v5 = vadd.f32 %v3524_v11, %v3496_v17  ;;  %v3545_v7 = vadd.f32 %v3524_v11, %v3497_v38  ;;  %v3392_v50 = vpop.permute.xlu0 %3391  ;;  %v3558_v39 = vadd.f32 %v3551_v14, %v3550_v10  ;;  %v3166_v44 = vmul.f32 %v6654_v6, %v3146_v27  ;;  %v8220_v11 = vld [vmem:[#allocation125_spill] sm:$0xff]  ;;  %v8224_v27 = vld [vmem:[#allocation68_spill] sm:$0xff] }
 0x5c6   : > { %v3285_v16 = vsel %vm3274_vm13, %v7207_v15, %v7180_v1  ;;  %v3100_v2 = vadd.f32 %v3084_v13, %v7263_v58  ;;  %v2712_v28 = vadd.f32 %v2696_v48, %v2583_v47  ;;  %v3167_v43 = vmul.f32 %v6765_v41, %v3154_v24  ;;  %v8226_v24 = vld [vmem:[#allocation86_spill] sm:$0xff] }
 0x5c7   : > { %v3552_v51 = vmul.f32 %v3544_v5, %v3536_v46  ;;  %3559 = vadd.xlane.f32.xlu0 %v3558_v39  ;;  %v3553_v49 = vmul.f32 %v3545_v7, %v3537_v40  ;;  %v2828_v30 = vmul.f32 %v8217_v63, %v2780_v34  ;;  %v2909_v55 = vmul.f32 %v6667_v0, %v2889_v61  ;;  %v8219_v46 = vld [vmem:[#allocation130_spill] sm:$0xff] }
 0x5c8   : > { %v7494_v45 = vpop.permute.xlu1 %3256  ;;  %v3414_v17 = vsel %vm3403_vm14, %v3392_v50, %v3376_v12  ;;  %v2843_v58 = vadd.f32 %v2827_v29, %v2712_v28  ;;  %v3296_v33 = vmul.f32 %v6749_v25, %v3285_v16  ;;  %v3289_v21 = vsel %vm3274_vm13, %v7283_v32, %v7235_v19 }
 0x5c9   : > { %v3615_v9 = vpack.c.bf16 %v3553_v49, %v3551_v14  ;;  %v3561_v22 = vadd.f32 %v3553_v49, %v3552_v51  ;;  %v7507_v3 = vpop.permute.xlu0 %3511  ;;  %v3614_v18 = vpack.c.bf16 %v3552_v51, %v3550_v10  ;;  %v3406_v14 = vsel %vm3403_vm14, %v3376_v12, %v3392_v50  ;;  %v8221_v12 = vld [vmem:[#allocation60_spill] sm:$0xff] }
 0x5ca   : > { %v2713_v10 = vadd.f32 %v2697_v59, %v2584_v56  ;;  %v2956_v0 = vmul.f32 %v8218_v52, %v2908_v36  ;;  %v3018_v40 = vsel %vm3014_vm11, %v8220_v11, %v8219_v46  ;;  %v3214_v5 = vmul.f32 %v8221_v12, %v3166_v44  ;;  %v8225_v59 = vld [vmem:[#allocation70_spill] sm:$0xff] }
 0x5cb   : > { %3640 = vmatprep.subr.bf16.mxu1 %v3615_v9  ;;  %3562 = vadd.xlane.f32.xlu1 %v3561_v22  ;;  %v3277_v7 = vsel %vm3274_vm13, %v7180_v1, %v7207_v15  ;;  %v3026_v50 = vsel %vm3014_vm11, %v8219_v46, %v8220_v11  ;;  %v3215_v39 = vmul.f32 %v8221_v12, %v3167_v43  ;;  %v8227_v43 = vld [vmem:[#allocation58_spill] sm:$0xff] }
 0x5cc   : > { %v7517_v38 = vpop.permute.xlu1 %3272  ;;  %3641 = vmatpush1.bf16.msra.mxu1 %v3614_v18  ;;  %v3426_v13 = vmul.f32 %v6682_v62, %v3406_v14  ;;  %v3427_v60 = vmul.f32 %v7369_v37, %v3414_v17  ;;  %v2844_v47 = vadd.f32 %v2828_v30, %v2713_v10  ;;  %v2957_v35 = vmul.f32 %v8218_v52, %v2909_v55  ;;  %v8228_v14 = vld [vmem:[#allocation133_spill] sm:$0xff]  ;;  %v8229_v10 = vld [vmem:[#allocation43_spill] sm:$0xff] }
 0x5cd   : > { %v3281_v48 = vsel %vm3274_vm13, %v7235_v19, %v7283_v32  ;;  %v3304_v1 = vmul.f32 %v6749_v25, %v3289_v21  ;;  %v3378_v15 = vpop.permute.xlu0 %3377  ;;  %v3147_v57 = vsel %vm3143_vm12, %v8223_v8, %v8222_v42  ;;  %v3155_v54 = vsel %vm3143_vm12, %v8222_v42, %v8223_v8 }
 0x5ce   : > { %v3343_v51 = vmul.f32 %v8224_v27, %v3277_v7  ;;  %v3344_v49 = vmul.f32 %v8224_v27, %v3296_v33  ;;  %v2972_v4 = vadd.f32 %v2956_v0, %v2843_v58  ;;  %v3037_v19 = vmul.f32 %v6682_v62, %v3018_v40  ;;  %v8230_v0 = vld [vmem:[#allocation57_spill] sm:$0xff]  ;;  %v8231_v40 = vld [vmem:[#allocation132_spill] sm:$0xff]  ;;  %v8232_v7 = vld [vmem:[#allocation66_spill] sm:$0xff] }
 0x5cf   : > { %v3038_v32 = vmul.f32 %v6699_v20, %v3026_v50  ;;  %v3230_v56 = vadd.f32 %v3214_v5, %v3099_v31  ;;  %v3351_v34 = vmul.f32 %v8225_v59, %v3281_v48  ;;  %v3474_v63 = vmul.f32 %v8226_v24, %v3426_v13 }
 0x5d0   : > { %v3384_v53 = vpop.permute.xlu1 %3383  ;;  %v3475_v29 = vmul.f32 %v8226_v24, %v3427_v60  ;;  %v3231_v61 = vadd.f32 %v3215_v39, %v3100_v2  ;;  %v2973_v9 = vadd.f32 %v2957_v35, %v2844_v47  ;;  %v3168_v22 = vmul.f32 %v6654_v6, %v3147_v57 }
 0x5d1   : > { %v3169_v36 = vmul.f32 %v6765_v41, %v3155_v54  ;;  %v3352_v44 = vmul.f32 %v8225_v59, %v3304_v1  ;;  %v3359_v18 = vadd.f32 %v3343_v51, %v3230_v56  ;;  %v3085_v30 = vmul.f32 %v8227_v43, %v3037_v19  ;;  %v3394_v55 = vpop.permute.xlu0 %3393 }
 0x5d2   : > { %v3360_v28 = vadd.f32 %v3344_v49, %v3231_v61  ;;  %v3086_v2 = vmul.f32 %v8227_v43, %v3038_v32  ;;  %v3367_v17 = vadd.f32 %v3351_v34, %v8228_v14  ;;  %v3286_v58 = vsel %vm3274_vm13, %v8229_v10, %v7429_v26  ;;  %v8233_v32 = vld [vmem:[#allocation23_spill] sm:$0xff] }
 0x5d3   : > { %v3490_v33 = vadd.f32 %v3474_v63, %v3359_v18  ;;  %v3290_v52 = vsel %vm3274_vm13, %v7517_v38, %v7494_v45  ;;  %v3368_v12 = vadd.f32 %v3352_v44, %v8231_v40  ;;  %v3216_v50 = vmul.f32 %v8232_v7, %v3168_v22  ;;  %v8234_v63 = vld [vmem:[#allocation31_spill] sm:$0xff] }
 0x5d4   : > { %v3400_v16 = vpop.permute.xlu1 %3399  ;;  %v3491_v21 = vadd.f32 %v3475_v29, %v3360_v28  ;;  %v3217_v39 = vmul.f32 %v8232_v7, %v3169_v36  ;;  %v3407_v13 = vsel %vm3403_vm14, %v3378_v15, %v3394_v55  ;;  %v3415_v60 = vsel %vm3403_vm14, %v3394_v55, %v3378_v15  ;;  %v8235_v29 = vld [vmem:[#allocation79_spill] sm:$0xff] }
 0x5d5   : > { %v3410_v20 = vsel %vm3403_vm14, %v3384_v53, %v3400_v16  ;;  %v3418_v31 = vsel %vm3403_vm14, %v3400_v16, %v3384_v53  ;;  %v3278_v47 = vsel %vm3274_vm13, %v7429_v26, %v8229_v10  ;;  %v3298_v35 = vmul.f32 %v6749_v25, %v3286_v58  ;;  %v3516_v58 = vpop.permute.xlu0 %3515  ;;  %v7622_v7 = vld [vmem:[%s5863_s18] sm:$0xff] }
 0x5d6   : > { %v3434_v6 = vmul.f32 %v6682_v62, %v3410_v20  ;;  %v3435_v41 = vmul.f32 %v7369_v37, %v3418_v31  ;;  %v3538_v53 = vadd.f32 %v7507_v3, %v3490_v33  ;;  %v3539_v42 = vadd.f32 %v7507_v3, %v3491_v21  ;;  %v8236_v31 = vld [vmem:[#allocation78_spill] sm:$0xff] }
 0x5d7   : > { %v3282_v8 = vsel %vm3274_vm13, %v7494_v45, %v7517_v38  ;;  %v3306_v15 = vmul.f32 %v6749_v25, %v3290_v52  ;;  %v3428_v57 = vmul.f32 %v6682_v62, %v3407_v13  ;;  %v3429_v54 = vmul.f32 %v7369_v37, %v3415_v60 }
 0x5d8   : > { %v3482_v46 = vmul.f32 %v8230_v0, %v3434_v6  ;;  %v3483_v11 = vmul.f32 %v8230_v0, %v3435_v41  ;;  %v3528_v5 = vpop.permute.xlu1 %3527  ;;  %v3101_v49 = vadd.f32 %v3085_v30, %v2972_v4  ;;  %v3102_v19 = vadd.f32 %v3086_v2, %v2973_v9  ;;  %v8237_v30 = vld [vmem:[#allocation88_spill] sm:$0xff]  ;;  %v8238_v41 = vld [vmem:[#allocation89_spill] sm:$0xff] }
 0x5d9   : > { %v3345_v56 = vmul.f32 %v8233_v32, %v3278_v47  ;;  %v3346_v3 = vmul.f32 %v8233_v32, %v3298_v35  ;;  %v3353_v45 = vmul.f32 %v8234_v63, %v3282_v8  ;;  %v3354_v25 = vmul.f32 %v8234_v63, %v3306_v15  ;;  %v7636_v35 = vld [vmem:[%s5863_s18 + $0x18] sm:$0xff] }
 0x5da   : > { %v3498_v48 = vadd.f32 %v3482_v46, %v3367_v17  ;;  %v3499_v1 = vadd.f32 %v3483_v11, %v3368_v12  ;;  %v3233_v24 = vadd.f32 %v3217_v39, %v3102_v19  ;;  %v3232_v38 = vadd.f32 %v3216_v50, %v3101_v49  ;;  %v7626_v50 = vld [vmem:[%s5863_s18 + $0x8] sm:$0xff]  ;;  %v7630_v39 = vld [vmem:[%s5863_s18 + $0x10] sm:$0xff] }
 0x5db   : > { %v3476_v61 = vmul.f32 %v8235_v29, %v3428_v57  ;;  %v3477_v22 = vmul.f32 %v8235_v29, %v3429_v54  ;;  %v3369_v43 = vadd.f32 %v3353_v45, %v8236_v31  ;;  %v3370_v2 = vadd.f32 %v3354_v25, %v8237_v30  ;;  %v4375_v31 = vld [vmem:[%s5871_s25 + $0x38] sm:$0xff]  }
 0x5dc   : > { %v3546_v26 = vadd.f32 %v3528_v5, %v3498_v48  ;;  %v3547_v27 = vadd.f32 %v3528_v5, %v3499_v1  ;;  %v3386_v51 = vpop.permute.xlu1 %3385  ;;  %v3361_v16 = vadd.f32 %v3345_v56, %v3232_v38  ;;  %v3362_v18 = vadd.f32 %v3346_v3, %v3233_v24 }
 0x5dd   : > { %v4922_v5 = vmov 13   ;;  %v4923_v13 = vmov 16   ;;  %v4924_v60 = vmov 14   ;;  %v4925_v47 = vmov 15  }
 0x5de   : > { %v3554_v59 = vmul.f32 %v3546_v26, %v3538_v53  ;;  %v3555_v34 = vmul.f32 %v3547_v27, %v3539_v42  ;;  %v3492_v55 = vadd.f32 %v3476_v61, %v3361_v16  ;;  %v3493_v6 = vadd.f32 %v3477_v22, %v3362_v18  ;;  %4796 = vset.pattern.permute.xlu1 %v4922_v5  ;;  %v4372_v53 = vld [vmem:[%s5871_s25 + $0x20] sm:$0xff]   ;;  %v4373_v42 = vld [vmem:[%s5871_s25 + $0x28] sm:$0xff]  }
 0x5df   : > { %4797 = vset.pattern.permute.xlu0 %v4922_v5  ;;  %3619 = vperm.xlu1 %4796, %v7622_v7   ;;  %v4351_v15 = vunpack.c.h.bf16 %v4372_v53  ;;  %v4350_v54 = vunpack.c.l.bf16 %v4372_v53  ;;  %v4354_v27 = vunpack.c.l.bf16 %v4373_v42  ;;  %v4355_v3 = vunpack.c.h.bf16 %v4373_v42  ;;  %v4376_v16 = vld [vmem:[%s5871_s25 + $0x40] sm:$0xff]   ;;  %v4846_v53 = vld [vmem:[%s5863_s18 + $0x38] sm:$0xff] }
 0x5e0   : > { %v3402_v36 = vpop.permute.xlu1 %3401  ;;  %v3564_v44 = vadd.f32 %v3555_v34, %v3554_v59  ;;  %v3540_v21 = vadd.f32 %v3516_v58, %v3492_v55  ;;  %v4366_v30 = vunpack.c.l.bf16 %v4376_v16 }
 0x5e1   : > { %v3411_v4 = vsel %vm3403_vm14, %v3386_v51, %v3402_v36  ;;  %v3419_v9 = vsel %vm3403_vm14, %v3402_v36, %v3386_v51 }
 0x5e2   : > { %v3436_v28 = vmul.f32 %v6682_v62, %v3411_v4  ;;  %v3437_v20 = vmul.f32 %v7369_v37, %v3419_v9  ;;  %3565 = vadd.xlane.f32.xlu0 %v3564_v44  ;;  %v3541_v62 = vadd.f32 %v3516_v58, %v3493_v6  ;;  %v4374_v4 = vld [vmem:[%s5871_s25 + $0x30] sm:$0xff]  }
 0x5e3   : > { %3627 = vperm.xlu1 %4796, %v7630_v39  }
 0x5e4   : > { %v3484_v14 = vmul.f32 %v8238_v41, %v3436_v28  ;;  %v3485_v17 = vmul.f32 %v8238_v41, %v3437_v20  ;;  %v3532_v33 = vpop.permute.xlu1 %3531  ;;  %v4358_v28 = vunpack.c.l.bf16 %v4374_v4  ;;  %v4359_v20 = vunpack.c.h.bf16 %v4374_v4 }
 0x5e5   : > { %v4362_v41 = vunpack.c.l.bf16 %v4375_v31 }
 0x5e6   : > { %v3500_v10 = vadd.f32 %v3484_v14, %v3369_v43  ;;  %v3501_v23 = vadd.f32 %v3485_v17, %v3370_v2  ;;  %v4367_v2 = vunpack.c.h.bf16 %v4376_v16  ;;  %v4363_v14 = vunpack.c.h.bf16 %v4375_v31  ;;  %v4377_v17 = vld [vmem:[%s5871_s25 + $0x48] sm:$0xff]  }
 0x5e7   : > { %4798 = vset.pattern.permute.xlu1 %v4924_v60  ;;  %v4370_v58 = vunpack.c.l.bf16 %v4377_v17 }
 0x5e8   : > { %v3548_v37 = vadd.f32 %v3532_v33, %v3500_v10  ;;  %v3549_v52 = vadd.f32 %v3532_v33, %v3501_v23  ;;  %3694 = vperm.xlu1 %4798, %v7622_v7  }
 0x5ea   : > { %v3556_v0 = vmul.f32 %v3548_v37, %v3540_v21  ;;  %v3557_v46 = vmul.f32 %v3549_v52, %v3541_v62  ;;  %v4371_v21 = vunpack.c.h.bf16 %v4377_v17  ;;  %v8239_v52 = vmov 0   ;;  %v4852_v17 = vld [vmem:[%s5029_s12 + $0x28] sm:$0xff] }
 0x5ec   : > { %v3617_v11 = vpack.c.bf16 %v3557_v46, %v3555_v34  ;;  %v3567_v40 = vadd.f32 %v3557_v46, %v3556_v0  ;;  %v3616_v12 = vpack.c.bf16 %v3556_v0, %v3554_v59  ;;  %3698 = vperm.xlu1 %4798, %v7626_v50  }
 0x5ee   : > { %3642 = vmatprep.subr.bf16.mxu1 %v3617_v11  ;;  %3568 = vadd.xlane.f32.xlu0 %v3567_v40 }
 0x5ef   : > { %3643 = vmatpush1.bf16.msra.mxu1 %v3616_v12 }
 0x5f0   : > { %4799 = vset.pattern.permute.xlu1 %v4922_v5  ;;  %v4926_v5 = vmov 17  }
 0x5f1   : > { %3631 = vperm.xlu1 %4799, %v7636_v35  }
 0x5f5   : > { %4800 = vset.pattern.permute.xlu1 %v4924_v60  ;;  %v4843_v60 = vld [vmem:[%s5863_s18 + $0x20] sm:$0xff] }
 0x5f6   : > { %3702 = vperm.xlu1 %4800, %v7630_v39  }
 0x5fa   : > { %3706 = vperm.xlu1 %4800, %v7636_v35  }
 0x5fe   : > { %4801 = vset.pattern.permute.xlu1 %v4925_v47 }
 0x5ff   : > { %3802 = vperm.xlu1 %4801, %v7622_v7  }
 0x603   : > { %3806 = vperm.xlu1 %4801, %v7626_v50  }
 0x604   : > { %3623 = vperm.xlu0 %4797, %v7626_v50  }
 0x607   : > { %4803 = vset.pattern.permute.xlu1 %v4923_v13 }
 0x608   : > { %4802 = vset.pattern.permute.xlu0 %v4923_v13  ;;  %3830 = vperm.xlu1 %4803, %v7626_v50  }
 0x609   : > { %3826 = vperm.xlu0 %4802, %v7622_v7  }
 0x60c   : > { %4804 = vset.pattern.permute.xlu1 %v4925_v47 }
 0x60d   : > { %4805 = vset.pattern.permute.xlu0 %v4925_v47  ;;  %3810 = vperm.xlu1 %4804, %v7630_v39   ;;  %v4844_v47 = vld [vmem:[%s5863_s18 + $0x28] sm:$0xff] }
 0x60e   : > { %3814 = vperm.xlu0 %4805, %v7636_v35  }
 0x611   : > { %4806 = vset.pattern.permute.xlu1 %v4923_v13 }
 0x612   : > { %3834 = vperm.xlu1 %4806, %v7630_v39   ;;  %4807 = vset.pattern.permute.xlu0 %v4926_v5 }
 0x613   : > { %3854 = vperm.xlu0 %4807, %v7622_v7  }
 0x616   : > { %3838 = vperm.xlu1 %4806, %v7636_v35  }
 0x617   : > { %3874 = vperm.xlu0 %4807, %v4844_v47  }
 0x61a   : > { %4808 = vset.pattern.permute.xlu1 %v4926_v5 }
 0x61b   : > { %3858 = vperm.xlu1 %4808, %v7626_v50   ;;  %3866 = vperm.xlu0 %4807, %v7636_v35  }
 0x61f   : > { %3870 = vperm.xlu1 %4808, %v4843_v60   ;;  %3882 = vperm.xlu0 %4807, %v4846_v53  }
 0x623   : > { %3862 = vperm.xlu1 %4808, %v7630_v39  }
 0x654   : > { %v3560_v48 = vpop.xlane.xlu0 %3559 }
 0x655   : > { %v3571_v26 = vmul.f32 0.00390625, %v3560_v48 }
 0x657   : > { %v3579_v19 = vmul.f32 %v4350_v54, %v3571_v26 }
 0x658   : > { %v3563_v1 = vpop.xlane.xlu1 %3562 }
 0x659   : > { %v3572_v57 = vmul.f32 0.00390625, %v3563_v1  ;;  %v3583_v34 = vsel %vm2328_vm0, %v3579_v19, 0.0  ;;  %v4845_v1 = vld [vmem:[%s5863_s18 + $0x30] sm:$0xff] }
 0x65a   : > { %3878 = vperm.xlu1 %4808, %v4845_v1  }
 0x65b   : > { %v3580_v49 = vmul.f32 %v4351_v15, %v3572_v57 }
 0x65d   : > { %v3584_v56 = vsel %vm2328_vm0, %v3580_v49, 0.0 }
 0x65e   : > { %v3585_v45 = vadd.f32 %v3584_v56, %v3583_v34  ;;  %v3620_v40 = vpop.permute.xlu1 %3619 }
 0x662   : > { %v3628_v12 = vpop.permute.xlu1 %3627 }
 0x667   : > { %v3695_v13 = vpop.permute.xlu1 %3694 }
 0x66b   : > { %v3699_v48 = vpop.permute.xlu1 %3698 }
 0x66f   : > { %v3566_v8 = vpop.xlane.xlu0 %3565 }
 0x670   : > { %v3573_v51 = vmul.f32 0.00390625, %v3566_v8  ;;  %v3632_v42 = vpop.permute.xlu1 %3631 }
 0x672   : > { %v3581_v32 = vmul.f32 %v4354_v27, %v3573_v51 }
 0x674   : > { %v3586_v24 = vsel %vm2328_vm0, %v3581_v32, 0.0 }
 0x675   : > { %v3587_v38 = vadd.f32 %v3586_v24, %v3585_v45 }
 0x67b   : > { %v3569_v59 = vpop.xlane.xlu0 %3568 }
 0x67c   : > { %v3574_v63 = vmul.f32 0.00390625, %v3569_v59 }
 0x67e   : > { %v3582_v25 = vmul.f32 %v4355_v3, %v3574_v63  ;;  %v3703_v3 = vpop.permute.xlu1 %3702  ;;  %v4847_v63 = vld [vmem:[%s5029_s12 + $0x10] sm:$0xff] }
 0x680   : > { %v3588_v29 = vsel %vm2328_vm0, %v3582_v25, 0.0 }
 0x681   : > { %v3589_v61 = vadd.f32 %v3588_v29, %v3587_v38  ;;  %v4848_v29 = vld [vmem:[%s5029_s12 + $0x18] sm:$0xff] }
 0x682   : > { %v3707_v31 = vpop.permute.xlu1 %3706 }
 0x683   : > { %v3590_v22 = vrot.slane %v3589_v61, 4  ;;  %v3624_v15 = vpop.permute.xlu0 %3623 }
 0x685   : > { %v3591_v36 = vadd.f32 %v3590_v22, %v3589_v61 }
 0x687   : > { %v3592_v44 = vrot.slane %v3591_v36, 2 }
 0x689   : > { %v3593_v9 = vadd.f32 %v3592_v44, %v3591_v36  ;;  %v4849_v44 = vld [vmem:[%s5029_s12] sm:$0xff] }
 0x68b   : > { %v3594_v18 = vrot.slane %v3593_v9, 1 }
 0x68d   : > { %v3595_v43 = vadd.f32 %v3594_v18, %v3593_v9 }
 0x68f   : > { %v3600_v55 = vmul.f32 %v4358_v28, %v3595_v43  ;;  %v3601_v6 = vmul.f32 %v4359_v20, %v3595_v43  ;;  %v3602_v62 = vmul.f32 %v4362_v41, %v3595_v43  ;;  %v3603_v37 = vmul.f32 %v4363_v14, %v3595_v43  ;;  %v4850_v28 = vld [vmem:[%s5029_s12 + $0x8] sm:$0xff] }
 0x691   : > { %v3608_v10 = vadd.f32 %v4366_v30, %v3600_v55  ;;  %v3609_v23 = vadd.f32 %v4367_v2, %v3601_v6  ;;  %v3610_v0 = vadd.f32 %v4370_v58, %v3602_v62  ;;  %v3611_v46 = vadd.f32 %v4371_v21, %v3603_v37  ;;  %v4851_v55 = vld [vmem:[%s5029_s12 + $0x20] sm:$0xff]  ;;  %v4854_v37 = vld [vmem:[%s5029_s12 + $0x38] sm:$0xff] }
 0x693   : > { %v3612_v33 = vpack.c.bf16 %v3609_v23, %v3608_v10  ;;  %v3613_v11 = vpack.c.bf16 %v3611_v46, %v3610_v0 }
 0x695   : > { %4329 = vmatmul.mubr.msk.bf16.vlgmr.msra.gmra.mrb[0].mxu1 %vm2328_vm0, %v3612_v33  ;;  %v4853_v33 = vld [vmem:[%s5029_s12 + $0x30] sm:$0xff] }
 0x696   : > { %3682 = vmatprep.mubr.bf16.mxu1 %v8239_v52 }
 0x69d   : > { %4330 = vmatmul.mubr.msk.bf16.gmra.mrb[4].mxu1 %vm2328_vm0, %v3613_v11 }
 0x69e   : > { %3949 = vmatprep.mubr.bf16.mxu1 %v8239_v52 }
 0x768   : > { %v3674_v8 = vpop.f32.mrb[0].mxu1 }
 0x769   : > { %v3676_v57 = vpop.f32.mrb[1].mxu1  ;;  %v3675_v26 = vadd.f32 %v3674_v8, %v3620_v40 }
 0x76a   : > { %v3678_v54 = vpop.f32.mrb[2].mxu1  ;;  %v3677_v49 = vadd.f32 %v3676_v57, %v3620_v40 }
 0x76b   : > { %v3679_v27 = vadd.f32 %v3678_v54, %v3624_v15  ;;  %v3680_v51 = vpop.f32.mrb[3].mxu1  ;;  %v3709_v59 = vmul.f32 %v3695_v13, %v3675_v26 }
 0x76c   : > { %v3681_v19 = vadd.f32 %v3680_v51, %v3624_v15  ;;  %v3710_v34 = vmul.f32 %v3695_v13, %v3677_v49 }
 0x76d   : > { %v3711_v32 = vmul.f32 %v3699_v48, %v3679_v27  ;;  %v7678_v4 = vadd.f32 %v4849_v44, %v3709_v59 }
 0x76e   : > { %v3712_v56 = vmul.f32 %v3699_v48, %v3681_v19  ;;  %v7681_v20 = vadd.f32 %v4850_v28, %v3710_v34 }
 0x76f   : > { %v7672_v45 = vadd.f32 %v4847_v63, %v3711_v32 }
 0x770   : > { %v3684_v24 = vpop.f32.mrb[4].mxu1  ;;  %v7675_v61 = vadd.f32 %v4848_v29, %v3712_v56 }
 0x771   : > { %v3685_v25 = vadd.f32 %v3684_v24, %v3628_v12  ;;  %v3686_v38 = vpop.f32.mrb[5].mxu1  ;;  %v3733_v2 = vadd.f32 %v7672_v45, %v7678_v4 }
 0x772   : > { %v3687_v22 = vadd.f32 %v3686_v38, %v3628_v12  ;;  %v3688_v36 = vpop.f32.mrb[6].mxu1  ;;  %v3742_v14 = vadd.f32 %v7675_v61, %v7681_v20 }
 0x773   : > { %v3713_v9 = vmul.f32 %v3703_v3, %v3685_v25  ;;  %v3689_v16 = vadd.f32 %v3688_v36, %v3632_v42  ;;  %v3690_v18 = vpop.f32.mrb[7].mxu1 }
 0x774   : > { %v3714_v43 = vmul.f32 %v3703_v3, %v3687_v22  ;;  %v3691_v30 = vadd.f32 %v3690_v18, %v3632_v42 }
 0x775   : > { %v7686_v6 = vadd.f32 %v4851_v55, %v3713_v9  ;;  %v3715_v41 = vmul.f32 %v3707_v31, %v3689_v16 }
 0x776   : > { %v7691_v10 = vadd.f32 %v4852_v17, %v3714_v43  ;;  %v3716_v23 = vmul.f32 %v3707_v31, %v3691_v30  ;;  %v3803_v43 = vpop.permute.xlu1 %3802 }
 0x777   : > { %v3734_v58 = vadd.f32 %v3733_v2, %v7686_v6  ;;  %v7695_v21 = vadd.f32 %v4853_v33, %v3715_v41 }
 0x778   : > { %v3743_v62 = vadd.f32 %v3742_v14, %v7691_v10  ;;  %v7699_v0 = vadd.f32 %v4854_v37, %v3716_v23 }
 0x779   : > { %v3735_v46 = vadd.f32 %v3734_v58, %v7695_v21 }
 0x77a   : > { %v3744_v11 = vadd.f32 %v3743_v62, %v7699_v0  ;;  %v3807_v58 = vpop.permute.xlu1 %3806 }
 0x77b   : > { %v3736_v40 = vrot.slane %v3735_v46, 4 }
 0x77c   : > { %v3745_v12 = vrot.slane %v3744_v11, 4 }
 0x77d   : > { %v3737_v5 = vadd.f32 %v3736_v40, %v3735_v46 }
 0x77e   : > { %v3746_v13 = vadd.f32 %v3745_v12, %v3744_v11  ;;  %v3831_v11 = vpop.permute.xlu1 %3830 }
 0x77f   : > { %v3738_v60 = vrot.slane %v3737_v5, 2 }
 0x780   : > { %v3747_v47 = vrot.slane %v3746_v13, 2 }
 0x781   : > { %v3739_v48 = vadd.f32 %v3738_v60, %v3737_v5 }
 0x782   : > { %v3748_v1 = vadd.f32 %v3747_v47, %v3746_v13  ;;  %v3811_v60 = vpop.permute.xlu1 %3810  ;;  %v3827_v47 = vpop.permute.xlu0 %3826 }
 0x783   : > { %v3740_v53 = vrot.slane %v3739_v48, 1 }
 0x784   : > { %v3749_v42 = vrot.slane %v3748_v1, 1 }
 0x785   : > { %v3741_v8 = vadd.f32 %v3740_v53, %v3739_v48 }
 0x786   : > { %v3750_v15 = vadd.f32 %v3749_v42, %v3748_v1  ;;  %v3835_v48 = vpop.permute.xlu1 %3834 }
 0x787   : > { %v3751_v57 = vmul.f32 0.03125, %v3741_v8 }
 0x788   : > { %v3752_v54 = vmul.f32 0.03125, %v3750_v15 }
 0x789   : > { %v3755_v26 = vsub.f32 %v7672_v45, %v3751_v57  ;;  %v3757_v27 = vsub.f32 %v7686_v6, %v3751_v57  ;;  %v3753_v51 = vsub.f32 %v7678_v4, %v3751_v57  ;;  %v3759_v56 = vsub.f32 %v7695_v21, %v3751_v57 }
 0x78a   : > { %v3756_v49 = vsub.f32 %v7675_v61, %v3752_v54  ;;  %v3758_v19 = vsub.f32 %v7691_v10, %v3752_v54  ;;  %v3754_v32 = vsub.f32 %v7681_v20, %v3752_v54  ;;  %v3760_v34 = vsub.f32 %v7699_v0, %v3752_v54  ;;  %v3815_v54 = vpop.permute.xlu0 %3814 }
 0x78b   : > { %v3761_v3 = vmul.f32 %v3753_v51, %v3753_v51  ;;  %v3763_v59 = vmul.f32 %v3755_v26, %v3755_v26  ;;  %v3765_v25 = vmul.f32 %v3757_v27, %v3757_v27  ;;  %v3767_v36 = vmul.f32 %v3759_v56, %v3759_v56 }
 0x78c   : > { %v3762_v24 = vmul.f32 %v3754_v32, %v3754_v32  ;;  %v3764_v63 = vmul.f32 %v3756_v49, %v3756_v49  ;;  %v3766_v29 = vmul.f32 %v3758_v19, %v3758_v19  ;;  %v3768_v9 = vmul.f32 %v3760_v34, %v3760_v34 }
 0x78d   : > { %v3769_v38 = vadd.f32 %v3763_v59, %v3761_v3 }
 0x78e   : > { %v3778_v22 = vadd.f32 %v3764_v63, %v3762_v24 }
 0x78f   : > { %v3770_v44 = vadd.f32 %v3769_v38, %v3765_v25 }
 0x790   : > { %v3779_v16 = vadd.f32 %v3778_v22, %v3766_v29  ;;  %v3839_v29 = vpop.permute.xlu1 %3838 }
 0x791   : > { %v3771_v18 = vadd.f32 %v3770_v44, %v3767_v36 }
 0x792   : > { %v3780_v28 = vadd.f32 %v3779_v16, %v3768_v9 }
 0x793   : > { %v3772_v31 = vrot.slane %v3771_v18, 4 }
 0x794   : > { %v3781_v30 = vrot.slane %v3780_v28, 4 }
 0x795   : > { %v3773_v2 = vadd.f32 %v3772_v31, %v3771_v18 }
 0x796   : > { %v3782_v55 = vadd.f32 %v3781_v30, %v3780_v28 }
 0x797   : > { %v3774_v41 = vrot.slane %v3773_v2, 2 }
 0x798   : > { %v3783_v14 = vrot.slane %v3782_v55, 2 }
 0x799   : > { %v3775_v17 = vadd.f32 %v3774_v41, %v3773_v2  ;;  %v4817_v2 = vld [vmem:[%s5871_s25 + $0x50] sm:$0xff]   ;;  %v4819_v41 = vld [vmem:[%s5871_s25 + $0x60] sm:$0xff]  }
 0x79a   : > { %v3784_v23 = vadd.f32 %v3783_v14, %v3782_v55  ;;  %v4818_v55 = vld [vmem:[%s5871_s25 + $0x58] sm:$0xff]   ;;  %v4820_v14 = vld [vmem:[%s5871_s25 + $0x68] sm:$0xff]  }
 0x79b   : > { %v3776_v33 = vrot.slane %v3775_v17, 1 }
 0x79c   : > { %v3785_v62 = vrot.slane %v3784_v23, 1 }
 0x79d   : > { %v3777_v37 = vadd.f32 %v3776_v33, %v3775_v17  ;;  %v4927_v17 = vmov 18  }
 0x79e   : > { %v3786_v46 = vadd.f32 %v3785_v62, %v3784_v23  ;;  %4809 = vset.pattern.permute.xlu1 %v4927_v17  ;;  %4810 = vset.pattern.permute.xlu0 %v4927_v17  ;;  %v4928_v23 = vmov 19   ;;  %v4822_v17 = vld [vmem:[%s5871_s25 + $0x78] sm:$0xff]  }
 0x79f   : > { %v3787_v40 = vmul.f32 0.03125, %v3777_v37  ;;  %4003 = vperm.xlu1 %4809, %v7622_v7   ;;  %4007 = vperm.xlu0 %4810, %v7626_v50  }
 0x7a0   : > { %v3788_v12 = vmul.f32 0.03125, %v3786_v46  ;;  %v3859_v46 = vpop.permute.xlu1 %3858 }
 0x7a1   : > { %v3789_v5 = vadd.f32 1e-06, %v3787_v40 }
 0x7a2   : > { %v3790_v13 = vadd.f32 1e-06, %v3788_v12  ;;  %v3855_v12 = vpop.permute.xlu0 %3854 }
 0x7a3   : > { %4827 = vrsqrt.f32 %v3789_v5  ;;  %4011 = vperm.xlu1 %4809, %v7630_v39   ;;  %4811 = vset.pattern.permute.xlu0 %v4928_v23 }
 0x7a4   : > { %4829 = vrsqrt.f32 %v3790_v13  ;;  %4096 = vperm.xlu0 %4811, %v7622_v7   ;;  %v3871_v7 = vpop.permute.xlu1 %3870 }
 0x7a7   : > { %4015 = vperm.xlu1 %4809, %v7636_v35  }
 0x7a8   : > { %4108 = vperm.xlu0 %4811, %v7636_v35  }
 0x7ab   : > { %4812 = vset.pattern.permute.xlu1 %v4928_v23 }
 0x7ac   : > { %4100 = vperm.xlu1 %4812, %v7626_v50  }
 0x7ad   : > { %v4828_v1 = vpop.eup %4827 }
 0x7ae   : > { %v4830_v53 = vpop.eup %4829  ;;  %v3793_v42 = vmul.f32 %v4828_v1, %v3753_v51  ;;  %v3795_v8 = vmul.f32 %v4828_v1, %v3755_v26  ;;  %v3797_v15 = vmul.f32 %v4828_v1, %v3757_v27  ;;  %v3799_v57 = vmul.f32 %v4828_v1, %v3759_v56 }
 0x7af   : > { %v3794_v3 = vmul.f32 %v4830_v53, %v3754_v32  ;;  %v3796_v59 = vmul.f32 %v4830_v53, %v3756_v49  ;;  %v3798_v24 = vmul.f32 %v4830_v53, %v3758_v19  ;;  %v3800_v63 = vmul.f32 %v4830_v53, %v3760_v34 }
 0x7b0   : > { %v3817_v25 = vmul.f32 %v3803_v43, %v3793_v42  ;;  %v3819_v38 = vmul.f32 %v3807_v58, %v3795_v8  ;;  %v3821_v18 = vmul.f32 %v3811_v60, %v3797_v15  ;;  %v3823_v51 = vmul.f32 %v3815_v54, %v3799_v57  ;;  %4104 = vperm.xlu1 %4812, %v7630_v39  }
 0x7b1   : > { %v3818_v22 = vmul.f32 %v3803_v43, %v3794_v3  ;;  %v3820_v36 = vmul.f32 %v3807_v58, %v3796_v59  ;;  %v3822_v44 = vmul.f32 %v3811_v60, %v3798_v24  ;;  %v3824_v9 = vmul.f32 %v3815_v54, %v3800_v63  ;;  %v3875_v60 = vpop.permute.xlu0 %3874  ;;  %v3863_v3 = vpop.permute.xlu1 %3862 }
 0x7b2   : > { %v3843_v16 = vadd.f32 %v3831_v11, %v3819_v38  ;;  %v3841_v28 = vadd.f32 %v3827_v47, %v3817_v25  ;;  %v3845_v34 = vadd.f32 %v3835_v48, %v3821_v18  ;;  %v3847_v31 = vadd.f32 %v3839_v29, %v3823_v51 }
 0x7b3   : > { %v3844_v26 = vadd.f32 %v3831_v11, %v3820_v36  ;;  %v3842_v27 = vadd.f32 %v3827_v47, %v3818_v22  ;;  %v3846_v56 = vadd.f32 %v3835_v48, %v3822_v44  ;;  %v3848_v32 = vadd.f32 %v3839_v29, %v3824_v9 }
 0x7b4   : > { %v3849_v19 = vpack.c.bf16 %v3843_v16, %v3841_v28  ;;  %v3851_v30 = vpack.c.bf16 %v3847_v31, %v3845_v34 }
 0x7b5   : > { %v3850_v49 = vpack.c.bf16 %v3844_v26, %v3842_v27  ;;  %v3852_v43 = vpack.c.bf16 %v3848_v32, %v3846_v56  ;;  %v3867_v59 = vpop.permute.xlu0 %3866  ;;  %v3879_v22 = vpop.permute.xlu1 %3878 }
 0x7b7   : > { %3917 = vmatprep.subr.bf16.mxu1 %v3850_v49 }
 0x7b8   : > { %3918 = vmatpush1.bf16.msra.mxu1 %v3849_v19 }
 0x7b9   : > { %3919 = vmatprep.subr.bf16.mxu1 %v3852_v43  ;;  %v3883_v51 = vpop.permute.xlu0 %3882 }
 0x7bc   : > { %3920 = vmatpush1.bf16.msra.mxu1 %v3851_v30 }
 0x7bf   : > { %4335 = vmatmul.mubr.msk.bf16.vlgmr.msra.gmra.mrb[8].mxu1 %vm2328_vm0, %v4817_v2 }
 0x7c0   : > { %3959 = vmatprep.mubr.bf16.mxu1 %v8239_v52 }
 0x7c7   : > { %4336 = vmatmul.mubr.msk.bf16.gmra.mrb[12].mxu1 %vm2328_vm0, %v4818_v55 }
 0x7c8   : > { %3969 = vmatprep.mubr.bf16.mxu1 %v8239_v52 }
 0x7cf   : > { %4337 = vmatmul.mubr.msk.bf16.gmra.mrb[16].mxu1 %vm2328_vm0, %v4819_v41 }
 0x7d0   : > { %3979 = vmatprep.mubr.bf16.mxu1 %v8239_v52 }
 0x7d7   : > { %4338 = vmatmul.mubr.msk.bf16.gmra.mrb[20].mxu1 %vm2328_vm0, %v4820_v14  ;;  %v4821_v14 = vld [vmem:[%s5871_s25 + $0x70] sm:$0xff]  }
 0x81e   : > { %v4004_v23 = vpop.permute.xlu1 %4003 }
 0x892   : > { %v3951_v58 = vpop.f32.mrb[8].mxu1 }
 0x893   : > { %v3953_v33 = vpop.f32.mrb[9].mxu1  ;;  %v3952_v48 = vadd.f32 %v3951_v58, %v3855_v12  ;;  %v4012_v58 = vpop.permute.xlu1 %4011 }
 0x894   : > { %v3955_v62 = vpop.f32.mrb[10].mxu1  ;;  %v3954_v53 = vadd.f32 %v3953_v33, %v3855_v12  ;;  %v4008_v33 = vpop.permute.xlu0 %4007 }
 0x895   : > { %v3957_v37 = vpop.f32.mrb[11].mxu1  ;;  %v3956_v39 = vadd.f32 %v3955_v62, %v3859_v46 }
 0x896   : > { %v3958_v54 = vadd.f32 %v3957_v37, %v3859_v46 }
 0x897   : > { %v4016_v62 = vpop.permute.xlu1 %4015 }
 0x898   : > { %v4097_v46 = vpop.permute.xlu0 %4096 }
 0x89a   : > { %v3961_v11 = vpop.f32.mrb[12].mxu1 }
 0x89b   : > { %v3963_v40 = vpop.f32.mrb[13].mxu1  ;;  %v3962_v9 = vadd.f32 %v3961_v11, %v3863_v3 }
 0x89c   : > { %v3965_v5 = vpop.f32.mrb[14].mxu1  ;;  %v3964_v28 = vadd.f32 %v3963_v40, %v3863_v3 }
 0x89d   : > { %v3967_v13 = vpop.f32.mrb[15].mxu1  ;;  %v3966_v56 = vadd.f32 %v3965_v5, %v3867_v59 }
 0x89e   : > { %v3968_v34 = vadd.f32 %v3967_v13, %v3867_v59  ;;  %v4101_v13 = vpop.permute.xlu1 %4100 }
 0x8a2   : > { %v3971_v47 = vpop.f32.mrb[16].mxu1 }
 0x8a3   : > { %v3972_v35 = vadd.f32 %v3971_v47, %v3871_v7  ;;  %v3973_v1 = vpop.f32.mrb[17].mxu1 }
 0x8a4   : > { %v3974_v50 = vadd.f32 %v3973_v1, %v3871_v7  ;;  %v3975_v42 = vpop.f32.mrb[18].mxu1 }
 0x8a5   : > { %v3990_v8 = vmul.f32 %v3972_v35, %v3952_v48  ;;  %v3976_v15 = vadd.f32 %v3975_v42, %v3875_v60  ;;  %v3977_v57 = vpop.f32.mrb[19].mxu1 }
 0x8a6   : > { %v3991_v24 = vmul.f32 %v3974_v50, %v3954_v53  ;;  %v3978_v63 = vadd.f32 %v3977_v57, %v3875_v60 }
 0x8a7   : > { %v3992_v25 = vmul.f32 %v3976_v15, %v3956_v39  ;;  %v4105_v15 = vpop.permute.xlu1 %4104 }
 0x8a8   : > { %v3993_v38 = vmul.f32 %v3978_v63, %v3958_v54 }
 0x8a9   : > { %v3998_v29 = vpack.c.bf16 %v3992_v25, %v3990_v8  ;;  %v4109_v25 = vpop.permute.xlu0 %4108 }
 0x8aa   : > { %v3981_v36 = vpop.f32.mrb[20].mxu1  ;;  %v3999_v44 = vpack.c.bf16 %v3993_v38, %v3991_v24 }
 0x8ab   : > { %v3982_v16 = vadd.f32 %v3981_v36, %v3879_v22  ;;  %v3983_v18 = vpop.f32.mrb[21].mxu1 }
 0x8ac   : > { %v3984_v26 = vadd.f32 %v3983_v18, %v3879_v22  ;;  %v3985_v27 = vpop.f32.mrb[22].mxu1  ;;  %4034 = vmatprep.subr.bf16.mxu0 %v3999_v44 }
 0x8ad   : > { %v3994_v32 = vmul.f32 %v3982_v16, %v3962_v9  ;;  %v3986_v49 = vadd.f32 %v3985_v27, %v3883_v51  ;;  %v3987_v19 = vpop.f32.mrb[23].mxu1  ;;  %4035 = vmatpush1.bf16.msra.mxu0 %v3998_v29 }
 0x8ae   : > { %v3995_v31 = vmul.f32 %v3984_v26, %v3964_v28  ;;  %v3988_v43 = vadd.f32 %v3987_v19, %v3883_v51 }
 0x8af   : > { %v3996_v30 = vmul.f32 %v3986_v49, %v3966_v56 }
 0x8b0   : > { %v3997_v2 = vmul.f32 %v3988_v43, %v3968_v34 }
 0x8b1   : > { %v4000_v55 = vpack.c.bf16 %v3996_v30, %v3994_v32 }
 0x8b2   : > { %v4001_v41 = vpack.c.bf16 %v3997_v2, %v3995_v31 }
 0x8b4   : > { %4036 = vmatprep.subr.bf16.mxu0 %v4001_v41 }
 0x8b5   : > { %4037 = vmatpush1.bf16.msra.mxu0 %v4000_v55 }
 0x8b8   : > { %4341 = vmatmul.mubr.msk.bf16.vlgmr.msra.gmra.mrb[16].mxu0 %vm2328_vm0, %v4821_v14 }
 0x8b9   : > { %4076 = vmatprep.mubr.bf16.mxu0 %v8239_v52 }
 0x8c0   : > { %4342 = vmatmul.mubr.msk.bf16.gmra.mrb[20].mxu0 %vm2328_vm0, %v4822_v17 }
 0x98b   : > { %v4068_v37 = vpop.f32.mrb[16].mxu0 }
 0x98c   : > { %v4069_v11 = vadd.f32 %v4068_v37, %v4004_v23  ;;  %v4070_v40 = vpop.f32.mrb[17].mxu0 }
 0x98d   : > { %v4071_v12 = vadd.f32 %v4070_v40, %v4004_v23  ;;  %v4072_v5 = vpop.f32.mrb[18].mxu0 }
 0x98e   : > { %v4073_v7 = vadd.f32 %v4072_v5, %v4008_v33  ;;  %v4111_v60 = vmul.f32 %v4097_v46, %v4069_v11  ;;  %v4074_v52 = vpop.f32.mrb[19].mxu0 }
 0x98f   : > { %v4112_v47 = vmul.f32 %v4097_v46, %v4071_v12  ;;  %v4075_v48 = vadd.f32 %v4074_v52, %v4008_v33 }
 0x990   : > { %v4119_v35 = vadd.f32 %v4111_v60, %v7678_v4  ;;  %v4113_v1 = vmul.f32 %v4101_v13, %v4073_v7 }
 0x991   : > { %v4120_v53 = vadd.f32 %v4112_v47, %v7681_v20  ;;  %v4114_v50 = vmul.f32 %v4101_v13, %v4075_v48 }
 0x992   : > { %4127 = vst [vmem:[%s5029_s12] sm:$0xff] %v4119_v35  ;;  %v4121_v42 = vadd.f32 %v4113_v1, %v7672_v45 }
 0x993   : > { %4128 = vst [vmem:[%s5029_s12 + $0x8] sm:$0xff] %v4120_v53  ;;  %v4122_v39 = vadd.f32 %v4114_v50, %v7675_v61  ;;  %v4078_v8 = vpop.f32.mrb[20].mxu0 }
 0x994   : > { %4129 = vst [vmem:[%s5029_s12 + $0x10] sm:$0xff] %v4121_v42  ;;  %v4079_v57 = vadd.f32 %v4078_v8, %v4012_v58  ;;  %v4080_v54 = vpop.f32.mrb[21].mxu0 }
 0x995   : > { %4130 = vst [vmem:[%s5029_s12 + $0x18] sm:$0xff] %v4122_v39  ;;  %v4081_v3 = vadd.f32 %v4080_v54, %v4012_v58  ;;  %v4082_v4 = vpop.f32.mrb[22].mxu0 }
 0x996   : > { %v4115_v20 = vmul.f32 %v4105_v15, %v4079_v57  ;;  %v4083_v59 = vadd.f32 %v4082_v4, %v4016_v62  ;;  %v4084_v24 = vpop.f32.mrb[23].mxu0 }
 0x997   : > { %v4116_v63 = vmul.f32 %v4105_v15, %v4081_v3  ;;  %v4085_v45 = vadd.f32 %v4084_v24, %v4016_v62 }
 0x998   : > { %v4123_v61 = vadd.f32 %v4115_v20, %v7686_v6  ;;  %v4117_v38 = vmul.f32 %v4109_v25, %v4083_v59 }
 0x999   : > { %v4124_v29 = vadd.f32 %v4116_v63, %v7691_v10  ;;  %v4118_v22 = vmul.f32 %v4109_v25, %v4085_v45 }
 0x99a   : > { %4131 = vst [vmem:[%s5029_s12 + $0x20] sm:$0xff] %v4123_v61  ;;  %v4125_v36 = vadd.f32 %v4117_v38, %v7695_v21 }
 0x99b   : > { %4132 = vst [vmem:[%s5029_s12 + $0x28] sm:$0xff] %v4124_v29  ;;  %v4126_v44 = vadd.f32 %v4118_v22, %v7699_v0 }
 0x99c   : > { %4133 = vst [vmem:[%s5029_s12 + $0x30] sm:$0xff] %v4125_v36 }
 0x99d   : > { %4134 = vst [vmem:[%s5029_s12 + $0x38] sm:$0xff] %v4126_v44 }
 0x99e PF: > { %s21_s21 = sadd.s32 1, %s4893_s21   ;;  %s8240_s17 = smov %s4885_s19 }
 0x99f   : > { %p18_p9 = scmp.ge.s32.totalorder %s21_s21, 8   ;;  %s8241_s18 = smov %s4889_s20 }
 0x9a0   : > { %s8242_s19 = smov %s8245_s22  ;;  %s8243_s20 = smov %s8249_s23 }
 0x9a1   :  { %20 = sbr.rel (!%p18_p9) target bundleno = 3 (0x3), region = 107 }

</bundles_post_ra>
